<compile_context>
chip_gen: v7x
topology: tpu7x:2x2x1
jax: 0.10.0
libtpu: 0.0.40
codegen_flags: <defaults>
</compile_context>

<pallas_src>
import math

import numpy as np
import jax
import jax.numpy as jnp
from jax.experimental import pallas as pl
from jax.experimental.pallas import tpu as pltpu

# ---------------- synthetic config (tiny Camembert/RoBERTa encoder) ---------
B = 2              # batch size
W = 8              # max words per sentence (max_word_len)
WORD_VOCAB = 20    # word-level vocab (pad=0, unk=1)
WP_VOCAB = 64      # wordpiece vocab
H = 32             # hidden size
NH = 2             # attention heads
HD = H // NH       # head dim
INTER = 64         # FFN intermediate size
LAYERS = 2         # encoder layers
WORD_PAD = 0
WP_PAD = 0
CLS_ID = 1         # '<s>'
SEP_ID = 2         # '</s>'
MAX_POS = 64
LN_EPS = 1e-12

# ---------------- padded / fused-layout sizes --------------------------------
HP = 128                 # hidden padded to one full lane register
HEAD_BLOCK = 128         # each head gets its own 128-lane block
NHP = NH * HEAD_BLOCK    # 256
INTER_P = 128            # FFN intermediate padded to 128 lanes
S_PAD = 32               # static per-sentence wordpiece length (mult of 8)
BS = B * S_PAD           # batch folded into sublanes
BW = B * W
NEG = -1e9


# ------------------------------ fused Pallas kernel ---------------------------
def fused_encoder_kernel(emb_ref, bias_ref, sel_ref, eg_ref, eb_ref,
                         wqkv_ref, bqkv_ref, wo_ref, bo_ref, g1_ref, b1_ref,
                         wi_ref, bi_ref, w2_ref, b2_ref, g2_ref, b2b_ref,
                         out_ref):
    # lane-validity mask so LayerNorm statistics use only the real H features
    lane = jax.lax.broadcasted_iota(jnp.int32, (1, HP), 1)
    valid = (lane < H).astype(jnp.float32)

    def layer_norm(x, g, b):
        mu = jnp.sum(x, axis=-1, keepdims=True) * (1.0 / H)
        xc = (x - mu) * valid
        var = jnp.sum(xc * xc, axis=-1, keepdims=True) * (1.0 / H)
        return xc * jax.lax.rsqrt(var + LN_EPS) * g + b

    def gelu(x):
        # TODO(synk): HF Camembert uses exact erf-GELU; tanh approximation here
        # (tanh lowers to the EUP; erf has no guaranteed Mosaic lowering).
        c = math.sqrt(2.0 / math.pi)
        return 0.5 * x * (1.0 + jnp.tanh(c * (x + 0.044715 * x * x * x)))

    bias = bias_ref[...]                                    # (BS, BS) additive mask
    h = layer_norm(emb_ref[...], eg_ref[...], eb_ref[...])  # (BS, HP)
    scale = 1.0 / math.sqrt(HD)

    for li in range(LAYERS):                                # unrolled; static idx
        # fused QKV projection: heads live in separate 128-lane blocks
        qkv = jnp.dot(h, wqkv_ref[li],
                      preferred_element_type=jnp.float32) + bqkv_ref[li]
        ctx_parts = []
        for n in range(NH):
            q_n = qkv[:, n * HEAD_BLOCK:(n + 1) * HEAD_BLOCK]
            k_n = qkv[:, NHP + n * HEAD_BLOCK: NHP + (n + 1) * HEAD_BLOCK]
            v_n = qkv[:, 2 * NHP + n * HEAD_BLOCK: 2 * NHP + (n + 1) * HEAD_BLOCK]
            s = jax.lax.dot_general(q_n, k_n, (((1,), (1,)), ((), ())),
                                    preferred_element_type=jnp.float32) * scale
            s = s + bias
            s = s - jnp.max(s, axis=-1, keepdims=True)
            e = jnp.exp(s)
            p = e * pl.reciprocal(jnp.sum(e, axis=-1, keepdims=True), approx=True)
            ctx_parts.append(jnp.dot(p, v_n, preferred_element_type=jnp.float32))
        ctx = jnp.concatenate(ctx_parts, axis=1)            # (BS, NHP)
        attn = jnp.dot(ctx, wo_ref[li],
                       preferred_element_type=jnp.float32) + bo_ref[li]

        h1 = layer_norm(h + attn, g1_ref[li], b1_ref[li])
        ff = jnp.dot(h1, wi_ref[li],
                     preferred_element_type=jnp.float32) + bi_ref[li]
        ff = gelu(ff)
        ff = jnp.dot(ff, w2_ref[li],
                     preferred_element_type=jnp.float32) + b2_ref[li]
        h = layer_norm(h1 + ff, g2_ref[li], b2b_ref[li])

    # 'first'-wordpiece pooling (+ word-mask zeroing) as one selection matmul;
    # output is (BW, 128) -> lane-dense, unmasked stores.
    out_ref[...] = jnp.dot(sel_ref[...], h, preferred_element_type=jnp.float32)


def fused_encoder_call(emb_p, attn_bias, select, prep):
    args = (emb_p, attn_bias, select,
            prep["emb_g"], prep["emb_b"],
            prep["wqkv"], prep["bqkv"], prep["wo"], prep["bo"],
            prep["g1"], prep["b1"], prep["wi"], prep["bi"],
            prep["w2"], prep["b2"], prep["g2"], prep["b2b"])

    def full_spec(a):
        nd = a.ndim
        return pl.BlockSpec(a.shape, lambda i, nd=nd: (0,) * nd)

    return pl.pallas_call(
        fused_encoder_kernel,
        grid=(1,),
        in_specs=[full_spec(a) for a in args],
        out_specs=pl.BlockSpec((BW, HP), lambda i: (0, 0)),
        out_shape=jax.ShapeDtypeStruct((BW, HP), jnp.float32),
        compiler_params=pltpu.CompilerParams(
            dimension_semantics=("arbitrary",),
            vmem_limit_bytes=64 << 20),
    )(*args)


# ------------------------------ parameters ------------------------------------
def init_params(key):
    def nrm(k, shp):
        return jax.random.normal(k, shp, jnp.float32) * 0.02

    keys = jax.random.split(key, 3 + LAYERS)
    params = {
        "wp_emb": nrm(keys[0], (WP_VOCAB, H)),
        "pos_emb": nrm(keys[1], (MAX_POS, H)),
        "type_emb": nrm(keys[2], (2, H)),
        "emb_g": jnp.ones((1, H), jnp.float32),
        "emb_b": jnp.zeros((1, H), jnp.float32),
        "layers": [],
    }
    for li in range(LAYERS):
        lk = jax.random.split(keys[3 + li], 6)
        params["layers"].append(dict(
            wq=nrm(lk[0], (H, H)), bq=jnp.zeros((1, H), jnp.float32),
            wk=nrm(lk[1], (H, H)), bk=jnp.zeros((1, H), jnp.float32),
            wv=nrm(lk[2], (H, H)), bv=jnp.zeros((1, H), jnp.float32),
            wo=nrm(lk[3], (H, H)), bo=jnp.zeros((1, H), jnp.float32),
            g1=jnp.ones((1, H), jnp.float32), b1=jnp.zeros((1, H), jnp.float32),
            wi=nrm(lk[4], (H, INTER)), bi=jnp.zeros((1, INTER), jnp.float32),
            w2=nrm(lk[5], (INTER, H)), b2=jnp.zeros((1, H), jnp.float32),
            g2=jnp.ones((1, H), jnp.float32), b2b=jnp.zeros((1, H), jnp.float32),
        ))
    return params


def prepare_params(params):
    """Pad / head-expand / stack per-layer weights once (host-side)."""
    def pad2(x, shape):
        out = np.zeros(shape, np.float32)
        x = np.asarray(x, np.float32)
        out[:x.shape[0], :x.shape[1]] = x
        return out

    prep = {
        "emb_g": jnp.asarray(pad2(params["emb_g"], (1, HP))),
        "emb_b": jnp.asarray(pad2(params["emb_b"], (1, HP))),
    }
    stacks = {k: [] for k in ("wqkv", "bqkv", "wo", "bo", "g1", "b1",
                              "wi", "bi", "w2", "b2", "g2", "b2b")}
    for lp in params["layers"]:
        wq, wk, wv = (np.asarray(lp[k], np.float32) for k in ("wq", "wk", "wv"))
        bq, bk, bv = (np.asarray(lp[k], np.float32) for k in ("bq", "bk", "bv"))
        wqkv = np.zeros((HP, 3 * NHP), np.float32)
        bqkv = np.zeros((1, 3 * NHP), np.float32)
        for n in range(NH):
            src = slice(n * HD, (n + 1) * HD)
            for t, (w_, b_) in enumerate(((wq, bq), (wk, bk), (wv, bv))):
                dst = slice(t * NHP + n * HEAD_BLOCK,
                            t * NHP + n * HEAD_BLOCK + HD)
                wqkv[:H, dst] = w_[:, src]
                bqkv[0, dst] = b_[0, src]
        wo = np.zeros((NHP, HP), np.float32)
        wo_src = np.asarray(lp["wo"], np.float32)
        for n in range(NH):
            wo[n * HEAD_BLOCK:n * HEAD_BLOCK + HD, :H] = wo_src[n * HD:(n + 1) * HD, :]
        stacks["wqkv"].append(wqkv)
        stacks["bqkv"].append(bqkv)
        stacks["wo"].append(wo)
        stacks["bo"].append(pad2(lp["bo"], (1, HP)))
        stacks["g1"].append(pad2(lp["g1"], (1, HP)))
        stacks["b1"].append(pad2(lp["b1"], (1, HP)))
        stacks["wi"].append(pad2(lp["wi"], (HP, INTER_P)))
        stacks["bi"].append(pad2(lp["bi"], (1, INTER_P)))
        stacks["w2"].append(pad2(lp["w2"], (INTER_P, HP)))
        stacks["b2"].append(pad2(lp["b2"], (1, HP)))
        stacks["g2"].append(pad2(lp["g2"], (1, HP)))
        stacks["b2b"].append(pad2(lp["b2b"], (1, HP)))
    for k, v in stacks.items():
        prep[k] = jnp.asarray(np.stack(v, axis=0))
    return prep


# ------------------------------ forward ---------------------------------------
def camembert_word_forward(words, params, prep, word_to_wordpieces,
                           word_pieces_lengths):
    """words: (batch, max_word_len) int word ids; returns (1, batch, max_word_len, H)."""
    words_np = np.asarray(words)
    batch_size, max_word_len = words_np.shape
    word_mask = words_np != WORD_PAD                               # (B, W)
    seq_len = word_mask.sum(-1)
    batch_wp_len = word_pieces_lengths[words_np] * word_mask       # (B, W)
    wp_lens = batch_wp_len.sum(-1)                                 # (B,)
    max_wp_len = int(wp_lens.max())
    # TODO(synk): auto_truncate branch (inputs longer than max_position_embeddings)
    # is not exercised at these small synthetic shapes.
    assert max_wp_len + 2 <= S_PAD, "static S_PAD too small for this batch"

    word_pieces = np.full((batch_size, S_PAD), WP_PAD, dtype=np.int32)
    attn_masks = np.zeros((batch_size, S_PAD), dtype=np.int32)
    for i in range(batch_size):
        pieces = [p for wd in words_np[i, :seq_len[i]]
                  for p in word_to_wordpieces[int(wd)]]
        word_pieces[i, 1:wp_lens[i] + 1] = np.asarray(pieces, dtype=np.int32)
        attn_masks[i, :wp_lens[i] + 2] = 1
    word_pieces[:, 0] = CLS_ID
    word_pieces[np.arange(batch_size), wp_lens + 1] = SEP_ID
    token_type_ids = np.zeros_like(word_pieces)

    # -------- embeddings (plain jnp lookups), padded to 128 lanes ----------
    wp = jnp.asarray(word_pieces)
    # TODO(synk): RoBERTa pad-offset position ids simplified to plain arange.
    positions = jnp.arange(S_PAD, dtype=jnp.int32)[None, :]
    emb = (params["wp_emb"][wp]
           + params["pos_emb"][positions]
           + params["type_emb"][jnp.asarray(token_type_ids)]).astype(jnp.float32)
    emb = emb.reshape(batch_size * S_PAD, H)
    emb_p = jnp.pad(emb, ((0, 0), (0, HP - H)))                    # (BS, HP)

    # block-diagonal additive attention bias: blocks cross-sentence attention
    # and pad-key positions (batch is folded into the sublane dim).
    attn_bias = np.full((BS, BS), NEG, dtype=np.float32)
    for b in range(batch_size):
        row = np.where(attn_masks[b] == 1, 0.0, NEG).astype(np.float32)
        attn_bias[b * S_PAD:(b + 1) * S_PAD, b * S_PAD:(b + 1) * S_PAD] = row[None, :]

    # 'first'-wordpiece selection matrix (gather + word-mask zeroing as matmul)
    cum = np.zeros((batch_size, max_word_len + 1), dtype=np.int64)
    cum[:, 1:] = np.cumsum(batch_wp_len, axis=-1)
    first_idx = cum[:, :max_word_len]
    select = np.zeros((batch_size * max_word_len, BS), dtype=np.float32)
    for b in range(batch_size):
        for j in range(max_word_len):
            if word_mask[b, j]:
                select[b * max_word_len + j,
                       b * S_PAD + 1 + int(first_idx[b, j])] = 1.0

    pooled = fused_encoder_call(emb_p, jnp.asarray(attn_bias),
                                jnp.asarray(select), prep)          # (B*W, HP)

    out = pooled[:, :H].reshape(batch_size, max_word_len, H)
    # num_layers(=1) x batch x max_word_len x hidden (include_cls_sep=False)
    return out[None, ...]


# ------------------------------ main -------------------------------------------
if __name__ == "__main__":
    key = jax.random.PRNGKey(0)
    pkey, wkey = jax.random.split(key)
    params = init_params(pkey)
    prep = prepare_params(params)

    # synthetic word->wordpiece table (replaces the tokenizer part of __init__)
    tbl_rng = np.random.RandomState(0)
    word_pieces_lengths = np.ones(WORD_VOCAB, dtype=np.int64)
    word_pieces_lengths[2:] = tbl_rng.randint(1, 4, size=WORD_VOCAB - 2)
    word_to_wordpieces = [list(tbl_rng.randint(3, WP_VOCAB, size=int(n)))
                          for n in word_pieces_lengths]

    # words: batch_size x max_len, real word ids in [2, WORD_VOCAB), pad=0 at tail
    words = np.array(jax.random.randint(wkey, (B, W), 2, WORD_VOCAB,
                                        dtype=jnp.int32))
    words[1, 5:] = WORD_PAD          # second sentence has 5 real words

    out = camembert_word_forward(words, params, prep, word_to_wordpieces,
                                 word_pieces_lengths)
    out = jax.block_until_ready(out)
    assert out.shape == (1, B, W, H) and out.dtype == jnp.float32
    assert bool(jnp.all(jnp.isfinite(out)))
    # padded word positions must be exactly zero (as in the PyTorch module)
    assert bool(jnp.all(out[0, 1, 5:, :] == 0.0))
    print("KERNEL_OK")
</pallas_src>

<mosaic_0001>
module attributes {stable_mosaic.version = 11 : i64} {
  func.func @fused_encoder_kernel(%arg0: i32, %arg1: memref<64x128xf32, #tpu.memory_space<vmem>>, %arg2: memref<64x64xf32, #tpu.memory_space<vmem>>, %arg3: memref<16x64xf32, #tpu.memory_space<vmem>>, %arg4: memref<1x128xf32, #tpu.memory_space<vmem>>, %arg5: memref<1x128xf32, #tpu.memory_space<vmem>>, %arg6: memref<2x128x768xf32, #tpu.memory_space<vmem>>, %arg7: memref<2x1x768xf32, #tpu.memory_space<vmem>>, %arg8: memref<2x256x128xf32, #tpu.memory_space<vmem>>, %arg9: memref<2x1x128xf32, #tpu.memory_space<vmem>>, %arg10: memref<2x1x128xf32, #tpu.memory_space<vmem>>, %arg11: memref<2x1x128xf32, #tpu.memory_space<vmem>>, %arg12: memref<2x128x128xf32, #tpu.memory_space<vmem>>, %arg13: memref<2x1x128xf32, #tpu.memory_space<vmem>>, %arg14: memref<2x128x128xf32, #tpu.memory_space<vmem>>, %arg15: memref<2x1x128xf32, #tpu.memory_space<vmem>>, %arg16: memref<2x1x128xf32, #tpu.memory_space<vmem>>, %arg17: memref<2x1x128xf32, #tpu.memory_space<vmem>>, %arg18: memref<16x128xf32, #tpu.memory_space<vmem>>) attributes {dimension_semantics = [#tpu.dimension_semantics<arbitrary>], iteration_bounds = array<i64: 1>, scalar_prefetch = 0 : i64, scratch_operands = 0 : i64, tpu.core_type = #tpu.core_type<tc>, window_params = [{pipeline_mode = #tpu.pipeline_mode<synchronous>, transform_indices = @transform_0, window_bounds = array<i64: 64, 128>}, {pipeline_mode = #tpu.pipeline_mode<synchronous>, transform_indices = @transform_1, window_bounds = array<i64: 64, 64>}, {pipeline_mode = #tpu.pipeline_mode<synchronous>, transform_indices = @transform_2, window_bounds = array<i64: 16, 64>}, {pipeline_mode = #tpu.pipeline_mode<synchronous>, transform_indices = @transform_3, window_bounds = array<i64: 1, 128>}, {pipeline_mode = #tpu.pipeline_mode<synchronous>, transform_indices = @transform_4, window_bounds = array<i64: 1, 128>}, {pipeline_mode = #tpu.pipeline_mode<synchronous>, transform_indices = @transform_5, window_bounds = array<i64: 2, 128, 768>}, {pipeline_mode = #tpu.pipeline_mode<synchronous>, transform_indices = @transform_6, window_bounds = array<i64: 2, 1, 768>}, {pipeline_mode = #tpu.pipeline_mode<synchronous>, transform_indices = @transform_7, window_bounds = array<i64: 2, 256, 128>}, {pipeline_mode = #tpu.pipeline_mode<synchronous>, transform_indices = @transform_8, window_bounds = array<i64: 2, 1, 128>}, {pipeline_mode = #tpu.pipeline_mode<synchronous>, transform_indices = @transform_9, window_bounds = array<i64: 2, 1, 128>}, {pipeline_mode = #tpu.pipeline_mode<synchronous>, transform_indices = @transform_10, window_bounds = array<i64: 2, 1, 128>}, {pipeline_mode = #tpu.pipeline_mode<synchronous>, transform_indices = @transform_11, window_bounds = array<i64: 2, 128, 128>}, {pipeline_mode = #tpu.pipeline_mode<synchronous>, transform_indices = @transform_12, window_bounds = array<i64: 2, 1, 128>}, {pipeline_mode = #tpu.pipeline_mode<synchronous>, transform_indices = @transform_13, window_bounds = array<i64: 2, 128, 128>}, {pipeline_mode = #tpu.pipeline_mode<synchronous>, transform_indices = @transform_14, window_bounds = array<i64: 2, 1, 128>}, {pipeline_mode = #tpu.pipeline_mode<synchronous>, transform_indices = @transform_15, window_bounds = array<i64: 2, 1, 128>}, {pipeline_mode = #tpu.pipeline_mode<synchronous>, transform_indices = @transform_16, window_bounds = array<i64: 2, 1, 128>}, {pipeline_mode = #tpu.pipeline_mode<synchronous>, transform_indices = @transform_17, window_bounds = array<i64: 16, 128>}]} {
    %0 = tpu.iota {dimensions = array<i32: 1>} : vector<1x128xi32>
    %c32_i32 = arith.constant 32 : i32
    %1 = vector.broadcast %c32_i32 : i32 to vector<1x128xi32>
    %2 = arith.cmpi slt, %0, %1 : vector<1x128xi32>
    %3 = arith.extui %2 : vector<1x128xi1> to vector<1x128xi32>
    %4 = arith.sitofp %3 : vector<1x128xi32> to vector<1x128xf32>
    %c0 = arith.constant 0 : index
    %c0_0 = arith.constant 0 : index
    %5 = vector.load %arg2[%c0, %c0_0] : memref<64x64xf32, #tpu.memory_space<vmem>>, vector<64x64xf32>
    %c0_1 = arith.constant 0 : index
    %c0_2 = arith.constant 0 : index
    %6 = vector.load %arg1[%c0_1, %c0_2] : memref<64x128xf32, #tpu.memory_space<vmem>>, vector<64x128xf32>
    %c0_3 = arith.constant 0 : index
    %c0_4 = arith.constant 0 : index
    %7 = vector.load %arg4[%c0_3, %c0_4] : memref<1x128xf32, #tpu.memory_space<vmem>>, vector<1x128xf32>
    %c0_5 = arith.constant 0 : index
    %c0_6 = arith.constant 0 : index
    %8 = vector.load %arg5[%c0_5, %c0_6] : memref<1x128xf32, #tpu.memory_space<vmem>>, vector<1x128xf32>
    %cst = arith.constant dense<0.000000e+00> : vector<64xf32>
    %9 = vector.multi_reduction <add>, %6, %cst [1] : vector<64x128xf32> to vector<64xf32>
    %10 = vector.shape_cast %9 : vector<64xf32> to vector<64x1xf32>
    %cst_7 = arith.constant 3.125000e-02 : f32
    %11 = vector.broadcast %cst_7 : f32 to vector<64x1xf32>
    %12 = arith.mulf %10, %11 : vector<64x1xf32>
    %13 = vector.broadcast %12 : vector<64x1xf32> to vector<64x128xf32>
    %14 = arith.subf %6, %13 : vector<64x128xf32>
    %15 = vector.broadcast %4 : vector<1x128xf32> to vector<64x128xf32>
    %16 = arith.mulf %14, %15 : vector<64x128xf32>
    %17 = arith.mulf %16, %16 : vector<64x128xf32>
    %cst_8 = arith.constant dense<0.000000e+00> : vector<64xf32>
    %18 = vector.multi_reduction <add>, %17, %cst_8 [1] : vector<64x128xf32> to vector<64xf32>
    %19 = vector.shape_cast %18 : vector<64xf32> to vector<64x1xf32>
    %cst_9 = arith.constant 3.125000e-02 : f32
    %20 = vector.broadcast %cst_9 : f32 to vector<64x1xf32>
    %21 = arith.mulf %19, %20 : vector<64x1xf32>
    %cst_10 = arith.constant 9.99999996E-13 : f32
    %22 = vector.broadcast %cst_10 : f32 to vector<64x1xf32>
    %23 = arith.addf %21, %22 : vector<64x1xf32>
    %24 = math.rsqrt %23 : vector<64x1xf32>
    %25 = vector.broadcast %24 : vector<64x1xf32> to vector<64x128xf32>
    %26 = arith.mulf %16, %25 : vector<64x128xf32>
    %27 = vector.broadcast %7 : vector<1x128xf32> to vector<64x128xf32>
    %28 = arith.mulf %26, %27 : vector<64x128xf32>
    %29 = vector.broadcast %8 : vector<1x128xf32> to vector<64x128xf32>
    %30 = arith.addf %28, %29 : vector<64x128xf32>
    %c0_11 = arith.constant 0 : index
    %c0_12 = arith.constant 0 : index
    %c0_13 = arith.constant 0 : index
    %31 = vector.load %arg6[%c0_11, %c0_12, %c0_13] : memref<2x128x768xf32, #tpu.memory_space<vmem>>, vector<1x128x768xf32>
    %32 = vector.shape_cast %31 : vector<1x128x768xf32> to vector<128x768xf32>
    %cst_14 = arith.constant dense<0.000000e+00> : vector<64x768xf32>
    %33 = tpu.matmul %30, %32, %cst_14 {dimension_numbers = #tpu.dot_dimension_numbers<[1], [0], [0], [1], [0, 0, 1, 1], [], []>} : vector<64x128xf32>, vector<128x768xf32>, vector<64x768xf32> -> vector<64x768xf32>
    %c0_15 = arith.constant 0 : index
    %c0_16 = arith.constant 0 : index
    %c0_17 = arith.constant 0 : index
    %34 = vector.load %arg7[%c0_15, %c0_16, %c0_17] : memref<2x1x768xf32, #tpu.memory_space<vmem>>, vector<1x1x768xf32>
    %35 = vector.shape_cast %34 : vector<1x1x768xf32> to vector<1x768xf32>
    %36 = vector.broadcast %35 : vector<1x768xf32> to vector<64x768xf32>
    %37 = arith.addf %33, %36 : vector<64x768xf32>
    %38 = vector.extract_strided_slice %37 {offsets = [0, 0], sizes = [64, 128], strides = [1, 1]} : vector<64x768xf32> to vector<64x128xf32>
    %39 = vector.extract_strided_slice %37 {offsets = [0, 256], sizes = [64, 128], strides = [1, 1]} : vector<64x768xf32> to vector<64x128xf32>
    %40 = vector.extract_strided_slice %37 {offsets = [0, 512], sizes = [64, 128], strides = [1, 1]} : vector<64x768xf32> to vector<64x128xf32>
    %cst_18 = arith.constant dense<0.000000e+00> : vector<64x64xf32>
    %41 = tpu.matmul %38, %39, %cst_18 {dimension_numbers = #tpu.dot_dimension_numbers<[1], [1], [0], [0], [0, 0, 1, 0], [], []>} : vector<64x128xf32>, vector<64x128xf32>, vector<64x64xf32> -> vector<64x64xf32>
    %cst_19 = arith.constant 2.500000e-01 : f32
    %42 = vector.broadcast %cst_19 : f32 to vector<64x64xf32>
    %43 = arith.mulf %41, %42 : vector<64x64xf32>
    %44 = arith.addf %43, %5 : vector<64x64xf32>
    %cst_20 = arith.constant dense<0xFF800000> : vector<64xf32>
    %45 = vector.multi_reduction <maximumf>, %44, %cst_20 [1] : vector<64x64xf32> to vector<64xf32>
    %46 = vector.shape_cast %45 : vector<64xf32> to vector<64x1xf32>
    %47 = vector.broadcast %46 : vector<64x1xf32> to vector<64x64xf32>
    %48 = arith.subf %44, %47 : vector<64x64xf32>
    %49 = math.exp %48 : vector<64x64xf32>
    %cst_21 = arith.constant dense<0.000000e+00> : vector<64xf32>
    %50 = vector.multi_reduction <add>, %49, %cst_21 [1] : vector<64x64xf32> to vector<64xf32>
    %51 = vector.shape_cast %50 : vector<64xf32> to vector<64x1xf32>
    %52 = tpu.reciprocal %51 {approx = true} : vector<64x1xf32> -> vector<64x1xf32>
    %53 = vector.broadcast %52 : vector<64x1xf32> to vector<64x64xf32>
    %54 = arith.mulf %49, %53 : vector<64x64xf32>
    %cst_22 = arith.constant dense<0.000000e+00> : vector<64x128xf32>
    %55 = tpu.matmul %54, %40, %cst_22 {dimension_numbers = #tpu.dot_dimension_numbers<[1], [0], [0], [1], [0, 0, 1, 1], [], []>} : vector<64x64xf32>, vector<64x128xf32>, vector<64x128xf32> -> vector<64x128xf32>
    %56 = vector.extract_strided_slice %37 {offsets = [0, 128], sizes = [64, 128], strides = [1, 1]} : vector<64x768xf32> to vector<64x128xf32>
    %57 = vector.extract_strided_slice %37 {offsets = [0, 384], sizes = [64, 128], strides = [1, 1]} : vector<64x768xf32> to vector<64x128xf32>
    %58 = vector.extract_strided_slice %37 {offsets = [0, 640], sizes = [64, 128], strides = [1, 1]} : vector<64x768xf32> to vector<64x128xf32>
    %cst_23 = arith.constant dense<0.000000e+00> : vector<64x64xf32>
    %59 = tpu.matmul %56, %57, %cst_23 {dimension_numbers = #tpu.dot_dimension_numbers<[1], [1], [0], [0], [0, 0, 1, 0], [], []>} : vector<64x128xf32>, vector<64x128xf32>, vector<64x64xf32> -> vector<64x64xf32>
    %cst_24 = arith.constant 2.500000e-01 : f32
    %60 = vector.broadcast %cst_24 : f32 to vector<64x64xf32>
    %61 = arith.mulf %59, %60 : vector<64x64xf32>
    %62 = arith.addf %61, %5 : vector<64x64xf32>
    %cst_25 = arith.constant dense<0xFF800000> : vector<64xf32>
    %63 = vector.multi_reduction <maximumf>, %62, %cst_25 [1] : vector<64x64xf32> to vector<64xf32>
    %64 = vector.shape_cast %63 : vector<64xf32> to vector<64x1xf32>
    %65 = vector.broadcast %64 : vector<64x1xf32> to vector<64x64xf32>
    %66 = arith.subf %62, %65 : vector<64x64xf32>
    %67 = math.exp %66 : vector<64x64xf32>
    %cst_26 = arith.constant dense<0.000000e+00> : vector<64xf32>
    %68 = vector.multi_reduction <add>, %67, %cst_26 [1] : vector<64x64xf32> to vector<64xf32>
    %69 = vector.shape_cast %68 : vector<64xf32> to vector<64x1xf32>
    %70 = tpu.reciprocal %69 {approx = true} : vector<64x1xf32> -> vector<64x1xf32>
    %71 = vector.broadcast %70 : vector<64x1xf32> to vector<64x64xf32>
    %72 = arith.mulf %67, %71 : vector<64x64xf32>
    %cst_27 = arith.constant dense<0.000000e+00> : vector<64x128xf32>
    %73 = tpu.matmul %72, %58, %cst_27 {dimension_numbers = #tpu.dot_dimension_numbers<[1], [0], [0], [1], [0, 0, 1, 1], [], []>} : vector<64x64xf32>, vector<64x128xf32>, vector<64x128xf32> -> vector<64x128xf32>
    %74 = tpu.concatenate %55, %73 in 1 : vector<64x128xf32>, vector<64x128xf32> -> vector<64x256xf32>
    %c0_28 = arith.constant 0 : index
    %c0_29 = arith.constant 0 : index
    %c0_30 = arith.constant 0 : index
    %75 = vector.load %arg8[%c0_28, %c0_29, %c0_30] : memref<2x256x128xf32, #tpu.memory_space<vmem>>, vector<1x256x128xf32>
    %76 = vector.shape_cast %75 : vector<1x256x128xf32> to vector<256x128xf32>
    %cst_31 = arith.constant dense<0.000000e+00> : vector<64x128xf32>
    %77 = tpu.matmul %74, %76, %cst_31 {dimension_numbers = #tpu.dot_dimension_numbers<[1], [0], [0], [1], [0, 0, 1, 1], [], []>} : vector<64x256xf32>, vector<256x128xf32>, vector<64x128xf32> -> vector<64x128xf32>
    %c0_32 = arith.constant 0 : index
    %c0_33 = arith.constant 0 : index
    %c0_34 = arith.constant 0 : index
    %78 = vector.load %arg9[%c0_32, %c0_33, %c0_34] : memref<2x1x128xf32, #tpu.memory_space<vmem>>, vector<1x1x128xf32>
    %79 = vector.shape_cast %78 : vector<1x1x128xf32> to vector<1x128xf32>
    %80 = vector.broadcast %79 : vector<1x128xf32> to vector<64x128xf32>
    %81 = arith.addf %77, %80 : vector<64x128xf32>
    %82 = arith.addf %30, %81 : vector<64x128xf32>
    %c0_35 = arith.constant 0 : index
    %c0_36 = arith.constant 0 : index
    %c0_37 = arith.constant 0 : index
    %83 = vector.load %arg10[%c0_35, %c0_36, %c0_37] : memref<2x1x128xf32, #tpu.memory_space<vmem>>, vector<1x1x128xf32>
    %84 = vector.shape_cast %83 : vector<1x1x128xf32> to vector<1x128xf32>
    %c0_38 = arith.constant 0 : index
    %c0_39 = arith.constant 0 : index
    %c0_40 = arith.constant 0 : index
    %85 = vector.load %arg11[%c0_38, %c0_39, %c0_40] : memref<2x1x128xf32, #tpu.memory_space<vmem>>, vector<1x1x128xf32>
    %86 = vector.shape_cast %85 : vector<1x1x128xf32> to vector<1x128xf32>
    %cst_41 = arith.constant dense<0.000000e+00> : vector<64xf32>
    %87 = vector.multi_reduction <add>, %82, %cst_41 [1] : vector<64x128xf32> to vector<64xf32>
    %88 = vector.shape_cast %87 : vector<64xf32> to vector<64x1xf32>
    %cst_42 = arith.constant 3.125000e-02 : f32
    %89 = vector.broadcast %cst_42 : f32 to vector<64x1xf32>
    %90 = arith.mulf %88, %89 : vector<64x1xf32>
    %91 = vector.broadcast %90 : vector<64x1xf32> to vector<64x128xf32>
    %92 = arith.subf %82, %91 : vector<64x128xf32>
    %93 = vector.broadcast %4 : vector<1x128xf32> to vector<64x128xf32>
    %94 = arith.mulf %92, %93 : vector<64x128xf32>
    %95 = arith.mulf %94, %94 : vector<64x128xf32>
    %cst_43 = arith.constant dense<0.000000e+00> : vector<64xf32>
    %96 = vector.multi_reduction <add>, %95, %cst_43 [1] : vector<64x128xf32> to vector<64xf32>
    %97 = vector.shape_cast %96 : vector<64xf32> to vector<64x1xf32>
    %cst_44 = arith.constant 3.125000e-02 : f32
    %98 = vector.broadcast %cst_44 : f32 to vector<64x1xf32>
    %99 = arith.mulf %97, %98 : vector<64x1xf32>
    %cst_45 = arith.constant 9.99999996E-13 : f32
    %100 = vector.broadcast %cst_45 : f32 to vector<64x1xf32>
    %101 = arith.addf %99, %100 : vector<64x1xf32>
    %102 = math.rsqrt %101 : vector<64x1xf32>
    %103 = vector.broadcast %102 : vector<64x1xf32> to vector<64x128xf32>
    %104 = arith.mulf %94, %103 : vector<64x128xf32>
    %105 = vector.broadcast %84 : vector<1x128xf32> to vector<64x128xf32>
    %106 = arith.mulf %104, %105 : vector<64x128xf32>
    %107 = vector.broadcast %86 : vector<1x128xf32> to vector<64x128xf32>
    %108 = arith.addf %106, %107 : vector<64x128xf32>
    %c0_46 = arith.constant 0 : index
    %c0_47 = arith.constant 0 : index
    %c0_48 = arith.constant 0 : index
    %109 = vector.load %arg12[%c0_46, %c0_47, %c0_48] : memref<2x128x128xf32, #tpu.memory_space<vmem>>, vector<1x128x128xf32>
    %110 = vector.shape_cast %109 : vector<1x128x128xf32> to vector<128x128xf32>
    %cst_49 = arith.constant dense<0.000000e+00> : vector<64x128xf32>
    %111 = tpu.matmul %108, %110, %cst_49 {dimension_numbers = #tpu.dot_dimension_numbers<[1], [0], [0], [1], [0, 0, 1, 1], [], []>} : vector<64x128xf32>, vector<128x128xf32>, vector<64x128xf32> -> vector<64x128xf32>
    %c0_50 = arith.constant 0 : index
    %c0_51 = arith.constant 0 : index
    %c0_52 = arith.constant 0 : index
    %112 = vector.load %arg13[%c0_50, %c0_51, %c0_52] : memref<2x1x128xf32, #tpu.memory_space<vmem>>, vector<1x1x128xf32>
    %113 = vector.shape_cast %112 : vector<1x1x128xf32> to vector<1x128xf32>
    %114 = vector.broadcast %113 : vector<1x128xf32> to vector<64x128xf32>
    %115 = arith.addf %111, %114 : vector<64x128xf32>
    %cst_53 = arith.constant 5.000000e-01 : f32
    %116 = vector.broadcast %cst_53 : f32 to vector<64x128xf32>
    %117 = arith.mulf %116, %115 : vector<64x128xf32>
    %cst_54 = arith.constant 4.471500e-02 : f32
    %118 = vector.broadcast %cst_54 : f32 to vector<64x128xf32>
    %119 = arith.mulf %118, %115 : vector<64x128xf32>
    %120 = arith.mulf %119, %115 : vector<64x128xf32>
    %121 = arith.mulf %120, %115 : vector<64x128xf32>
    %122 = arith.addf %115, %121 : vector<64x128xf32>
    %cst_55 = arith.constant 0.797884583 : f32
    %123 = vector.broadcast %cst_55 : f32 to vector<64x128xf32>
    %124 = arith.mulf %123, %122 : vector<64x128xf32>
    %125 = math.tanh %124 : vector<64x128xf32>
    %cst_56 = arith.constant 1.000000e+00 : f32
    %126 = vector.broadcast %cst_56 : f32 to vector<64x128xf32>
    %127 = arith.addf %126, %125 : vector<64x128xf32>
    %128 = arith.mulf %117, %127 : vector<64x128xf32>
    %c0_57 = arith.constant 0 : index
    %c0_58 = arith.constant 0 : index
    %c0_59 = arith.constant 0 : index
    %129 = vector.load %arg14[%c0_57, %c0_58, %c0_59] : memref<2x128x128xf32, #tpu.memory_space<vmem>>, vector<1x128x128xf32>
    %130 = vector.shape_cast %129 : vector<1x128x128xf32> to vector<128x128xf32>
    %cst_60 = arith.constant dense<0.000000e+00> : vector<64x128xf32>
    %131 = tpu.matmul %128, %130, %cst_60 {dimension_numbers = #tpu.dot_dimension_numbers<[1], [0], [0], [1], [0, 0, 1, 1], [], []>} : vector<64x128xf32>, vector<128x128xf32>, vector<64x128xf32> -> vector<64x128xf32>
    %c0_61 = arith.constant 0 : index
    %c0_62 = arith.constant 0 : index
    %c0_63 = arith.constant 0 : index
    %132 = vector.load %arg15[%c0_61, %c0_62, %c0_63] : memref<2x1x128xf32, #tpu.memory_space<vmem>>, vector<1x1x128xf32>
    %133 = vector.shape_cast %132 : vector<1x1x128xf32> to vector<1x128xf32>
    %134 = vector.broadcast %133 : vector<1x128xf32> to vector<64x128xf32>
    %135 = arith.addf %131, %134 : vector<64x128xf32>
    %136 = arith.addf %108, %135 : vector<64x128xf32>
    %c0_64 = arith.constant 0 : index
    %c0_65 = arith.constant 0 : index
    %c0_66 = arith.constant 0 : index
    %137 = vector.load %arg16[%c0_64, %c0_65, %c0_66] : memref<2x1x128xf32, #tpu.memory_space<vmem>>, vector<1x1x128xf32>
    %138 = vector.shape_cast %137 : vector<1x1x128xf32> to vector<1x128xf32>
    %c0_67 = arith.constant 0 : index
    %c0_68 = arith.constant 0 : index
    %c0_69 = arith.constant 0 : index
    %139 = vector.load %arg17[%c0_67, %c0_68, %c0_69] : memref<2x1x128xf32, #tpu.memory_space<vmem>>, vector<1x1x128xf32>
    %140 = vector.shape_cast %139 : vector<1x1x128xf32> to vector<1x128xf32>
    %cst_70 = arith.constant dense<0.000000e+00> : vector<64xf32>
    %141 = vector.multi_reduction <add>, %136, %cst_70 [1] : vector<64x128xf32> to vector<64xf32>
    %142 = vector.shape_cast %141 : vector<64xf32> to vector<64x1xf32>
    %cst_71 = arith.constant 3.125000e-02 : f32
    %143 = vector.broadcast %cst_71 : f32 to vector<64x1xf32>
    %144 = arith.mulf %142, %143 : vector<64x1xf32>
    %145 = vector.broadcast %144 : vector<64x1xf32> to vector<64x128xf32>
    %146 = arith.subf %136, %145 : vector<64x128xf32>
    %147 = vector.broadcast %4 : vector<1x128xf32> to vector<64x128xf32>
    %148 = arith.mulf %146, %147 : vector<64x128xf32>
    %149 = arith.mulf %148, %148 : vector<64x128xf32>
    %cst_72 = arith.constant dense<0.000000e+00> : vector<64xf32>
    %150 = vector.multi_reduction <add>, %149, %cst_72 [1] : vector<64x128xf32> to vector<64xf32>
    %151 = vector.shape_cast %150 : vector<64xf32> to vector<64x1xf32>
    %cst_73 = arith.constant 3.125000e-02 : f32
    %152 = vector.broadcast %cst_73 : f32 to vector<64x1xf32>
    %153 = arith.mulf %151, %152 : vector<64x1xf32>
    %cst_74 = arith.constant 9.99999996E-13 : f32
    %154 = vector.broadcast %cst_74 : f32 to vector<64x1xf32>
    %155 = arith.addf %153, %154 : vector<64x1xf32>
    %156 = math.rsqrt %155 : vector<64x1xf32>
    %157 = vector.broadcast %156 : vector<64x1xf32> to vector<64x128xf32>
    %158 = arith.mulf %148, %157 : vector<64x128xf32>
    %159 = vector.broadcast %138 : vector<1x128xf32> to vector<64x128xf32>
    %160 = arith.mulf %158, %159 : vector<64x128xf32>
    %161 = vector.broadcast %140 : vector<1x128xf32> to vector<64x128xf32>
    %162 = arith.addf %160, %161 : vector<64x128xf32>
    %c1 = arith.constant 1 : index
    %c0_75 = arith.constant 0 : index
    %c0_76 = arith.constant 0 : index
    %163 = vector.load %arg6[%c1, %c0_75, %c0_76] : memref<2x128x768xf32, #tpu.memory_space<vmem>>, vector<1x128x768xf32>
    %164 = vector.shape_cast %163 : vector<1x128x768xf32> to vector<128x768xf32>
    %cst_77 = arith.constant dense<0.000000e+00> : vector<64x768xf32>
    %165 = tpu.matmul %162, %164, %cst_77 {dimension_numbers = #tpu.dot_dimension_numbers<[1], [0], [0], [1], [0, 0, 1, 1], [], []>} : vector<64x128xf32>, vector<128x768xf32>, vector<64x768xf32> -> vector<64x768xf32>
    %c1_78 = arith.constant 1 : index
    %c0_79 = arith.constant 0 : index
    %c0_80 = arith.constant 0 : index
    %166 = vector.load %arg7[%c1_78, %c0_79, %c0_80] : memref<2x1x768xf32, #tpu.memory_space<vmem>>, vector<1x1x768xf32>
    %167 = vector.shape_cast %166 : vector<1x1x768xf32> to vector<1x768xf32>
    %168 = vector.broadcast %167 : vector<1x768xf32> to vector<64x768xf32>
    %169 = arith.addf %165, %168 : vector<64x768xf32>
    %170 = vector.extract_strided_slice %169 {offsets = [0, 0], sizes = [64, 128], strides = [1, 1]} : vector<64x768xf32> to vector<64x128xf32>
    %171 = vector.extract_strided_slice %169 {offsets = [0, 256], sizes = [64, 128], strides = [1, 1]} : vector<64x768xf32> to vector<64x128xf32>
    %172 = vector.extract_strided_slice %169 {offsets = [0, 512], sizes = [64, 128], strides = [1, 1]} : vector<64x768xf32> to vector<64x128xf32>
    %cst_81 = arith.constant dense<0.000000e+00> : vector<64x64xf32>
    %173 = tpu.matmul %170, %171, %cst_81 {dimension_numbers = #tpu.dot_dimension_numbers<[1], [1], [0], [0], [0, 0, 1, 0], [], []>} : vector<64x128xf32>, vector<64x128xf32>, vector<64x64xf32> -> vector<64x64xf32>
    %cst_82 = arith.constant 2.500000e-01 : f32
    %174 = vector.broadcast %cst_82 : f32 to vector<64x64xf32>
    %175 = arith.mulf %173, %174 : vector<64x64xf32>
    %176 = arith.addf %175, %5 : vector<64x64xf32>
    %cst_83 = arith.constant dense<0xFF800000> : vector<64xf32>
    %177 = vector.multi_reduction <maximumf>, %176, %cst_83 [1] : vector<64x64xf32> to vector<64xf32>
    %178 = vector.shape_cast %177 : vector<64xf32> to vector<64x1xf32>
    %179 = vector.broadcast %178 : vector<64x1xf32> to vector<64x64xf32>
    %180 = arith.subf %176, %179 : vector<64x64xf32>
    %181 = math.exp %180 : vector<64x64xf32>
    %cst_84 = arith.constant dense<0.000000e+00> : vector<64xf32>
    %182 = vector.multi_reduction <add>, %181, %cst_84 [1] : vector<64x64xf32> to vector<64xf32>
    %183 = vector.shape_cast %182 : vector<64xf32> to vector<64x1xf32>
    %184 = tpu.reciprocal %183 {approx = true} : vector<64x1xf32> -> vector<64x1xf32>
    %185 = vector.broadcast %184 : vector<64x1xf32> to vector<64x64xf32>
    %186 = arith.mulf %181, %185 : vector<64x64xf32>
    %cst_85 = arith.constant dense<0.000000e+00> : vector<64x128xf32>
    %187 = tpu.matmul %186, %172, %cst_85 {dimension_numbers = #tpu.dot_dimension_numbers<[1], [0], [0], [1], [0, 0, 1, 1], [], []>} : vector<64x64xf32>, vector<64x128xf32>, vector<64x128xf32> -> vector<64x128xf32>
    %188 = vector.extract_strided_slice %169 {offsets = [0, 128], sizes = [64, 128], strides = [1, 1]} : vector<64x768xf32> to vector<64x128xf32>
    %189 = vector.extract_strided_slice %169 {offsets = [0, 384], sizes = [64, 128], strides = [1, 1]} : vector<64x768xf32> to vector<64x128xf32>
    %190 = vector.extract_strided_slice %169 {offsets = [0, 640], sizes = [64, 128], strides = [1, 1]} : vector<64x768xf32> to vector<64x128xf32>
    %cst_86 = arith.constant dense<0.000000e+00> : vector<64x64xf32>
    %191 = tpu.matmul %188, %189, %cst_86 {dimension_numbers = #tpu.dot_dimension_numbers<[1], [1], [0], [0], [0, 0, 1, 0], [], []>} : vector<64x128xf32>, vector<64x128xf32>, vector<64x64xf32> -> vector<64x64xf32>
    %cst_87 = arith.constant 2.500000e-01 : f32
    %192 = vector.broadcast %cst_87 : f32 to vector<64x64xf32>
    %193 = arith.mulf %191, %192 : vector<64x64xf32>
    %194 = arith.addf %193, %5 : vector<64x64xf32>
    %cst_88 = arith.constant dense<0xFF800000> : vector<64xf32>
    %195 = vector.multi_reduction <maximumf>, %194, %cst_88 [1] : vector<64x64xf32> to vector<64xf32>
    %196 = vector.shape_cast %195 : vector<64xf32> to vector<64x1xf32>
    %197 = vector.broadcast %196 : vector<64x1xf32> to vector<64x64xf32>
    %198 = arith.subf %194, %197 : vector<64x64xf32>
    %199 = math.exp %198 : vector<64x64xf32>
    %cst_89 = arith.constant dense<0.000000e+00> : vector<64xf32>
    %200 = vector.multi_reduction <add>, %199, %cst_89 [1] : vector<64x64xf32> to vector<64xf32>
    %201 = vector.shape_cast %200 : vector<64xf32> to vector<64x1xf32>
    %202 = tpu.reciprocal %201 {approx = true} : vector<64x1xf32> -> vector<64x1xf32>
    %203 = vector.broadcast %202 : vector<64x1xf32> to vector<64x64xf32>
    %204 = arith.mulf %199, %203 : vector<64x64xf32>
    %cst_90 = arith.constant dense<0.000000e+00> : vector<64x128xf32>
    %205 = tpu.matmul %204, %190, %cst_90 {dimension_numbers = #tpu.dot_dimension_numbers<[1], [0], [0], [1], [0, 0, 1, 1], [], []>} : vector<64x64xf32>, vector<64x128xf32>, vector<64x128xf32> -> vector<64x128xf32>
    %206 = tpu.concatenate %187, %205 in 1 : vector<64x128xf32>, vector<64x128xf32> -> vector<64x256xf32>
    %c1_91 = arith.constant 1 : index
    %c0_92 = arith.constant 0 : index
    %c0_93 = arith.constant 0 : index
    %207 = vector.load %arg8[%c1_91, %c0_92, %c0_93] : memref<2x256x128xf32, #tpu.memory_space<vmem>>, vector<1x256x128xf32>
    %208 = vector.shape_cast %207 : vector<1x256x128xf32> to vector<256x128xf32>
    %cst_94 = arith.constant dense<0.000000e+00> : vector<64x128xf32>
    %209 = tpu.matmul %206, %208, %cst_94 {dimension_numbers = #tpu.dot_dimension_numbers<[1], [0], [0], [1], [0, 0, 1, 1], [], []>} : vector<64x256xf32>, vector<256x128xf32>, vector<64x128xf32> -> vector<64x128xf32>
    %c1_95 = arith.constant 1 : index
    %c0_96 = arith.constant 0 : index
    %c0_97 = arith.constant 0 : index
    %210 = vector.load %arg9[%c1_95, %c0_96, %c0_97] : memref<2x1x128xf32, #tpu.memory_space<vmem>>, vector<1x1x128xf32>
    %211 = vector.shape_cast %210 : vector<1x1x128xf32> to vector<1x128xf32>
    %212 = vector.broadcast %211 : vector<1x128xf32> to vector<64x128xf32>
    %213 = arith.addf %209, %212 : vector<64x128xf32>
    %214 = arith.addf %162, %213 : vector<64x128xf32>
    %c1_98 = arith.constant 1 : index
    %c0_99 = arith.constant 0 : index
    %c0_100 = arith.constant 0 : index
    %215 = vector.load %arg10[%c1_98, %c0_99, %c0_100] : memref<2x1x128xf32, #tpu.memory_space<vmem>>, vector<1x1x128xf32>
    %216 = vector.shape_cast %215 : vector<1x1x128xf32> to vector<1x128xf32>
    %c1_101 = arith.constant 1 : index
    %c0_102 = arith.constant 0 : index
    %c0_103 = arith.constant 0 : index
    %217 = vector.load %arg11[%c1_101, %c0_102, %c0_103] : memref<2x1x128xf32, #tpu.memory_space<vmem>>, vector<1x1x128xf32>
    %218 = vector.shape_cast %217 : vector<1x1x128xf32> to vector<1x128xf32>
    %cst_104 = arith.constant dense<0.000000e+00> : vector<64xf32>
    %219 = vector.multi_reduction <add>, %214, %cst_104 [1] : vector<64x128xf32> to vector<64xf32>
    %220 = vector.shape_cast %219 : vector<64xf32> to vector<64x1xf32>
    %cst_105 = arith.constant 3.125000e-02 : f32
    %221 = vector.broadcast %cst_105 : f32 to vector<64x1xf32>
    %222 = arith.mulf %220, %221 : vector<64x1xf32>
    %223 = vector.broadcast %222 : vector<64x1xf32> to vector<64x128xf32>
    %224 = arith.subf %214, %223 : vector<64x128xf32>
    %225 = vector.broadcast %4 : vector<1x128xf32> to vector<64x128xf32>
    %226 = arith.mulf %224, %225 : vector<64x128xf32>
    %227 = arith.mulf %226, %226 : vector<64x128xf32>
    %cst_106 = arith.constant dense<0.000000e+00> : vector<64xf32>
    %228 = vector.multi_reduction <add>, %227, %cst_106 [1] : vector<64x128xf32> to vector<64xf32>
    %229 = vector.shape_cast %228 : vector<64xf32> to vector<64x1xf32>
    %cst_107 = arith.constant 3.125000e-02 : f32
    %230 = vector.broadcast %cst_107 : f32 to vector<64x1xf32>
    %231 = arith.mulf %229, %230 : vector<64x1xf32>
    %cst_108 = arith.constant 9.99999996E-13 : f32
    %232 = vector.broadcast %cst_108 : f32 to vector<64x1xf32>
    %233 = arith.addf %231, %232 : vector<64x1xf32>
    %234 = math.rsqrt %233 : vector<64x1xf32>
    %235 = vector.broadcast %234 : vector<64x1xf32> to vector<64x128xf32>
    %236 = arith.mulf %226, %235 : vector<64x128xf32>
    %237 = vector.broadcast %216 : vector<1x128xf32> to vector<64x128xf32>
    %238 = arith.mulf %236, %237 : vector<64x128xf32>
    %239 = vector.broadcast %218 : vector<1x128xf32> to vector<64x128xf32>
    %240 = arith.addf %238, %239 : vector<64x128xf32>
    %c1_109 = arith.constant 1 : index
    %c0_110 = arith.constant 0 : index
    %c0_111 = arith.constant 0 : index
    %241 = vector.load %arg12[%c1_109, %c0_110, %c0_111] : memref<2x128x128xf32, #tpu.memory_space<vmem>>, vector<1x128x128xf32>
    %242 = vector.shape_cast %241 : vector<1x128x128xf32> to vector<128x128xf32>
    %cst_112 = arith.constant dense<0.000000e+00> : vector<64x128xf32>
    %243 = tpu.matmul %240, %242, %cst_112 {dimension_numbers = #tpu.dot_dimension_numbers<[1], [0], [0], [1], [0, 0, 1, 1], [], []>} : vector<64x128xf32>, vector<128x128xf32>, vector<64x128xf32> -> vector<64x128xf32>
    %c1_113 = arith.constant 1 : index
    %c0_114 = arith.constant 0 : index
    %c0_115 = arith.constant 0 : index
    %244 = vector.load %arg13[%c1_113, %c0_114, %c0_115] : memref<2x1x128xf32, #tpu.memory_space<vmem>>, vector<1x1x128xf32>
    %245 = vector.shape_cast %244 : vector<1x1x128xf32> to vector<1x128xf32>
    %246 = vector.broadcast %245 : vector<1x128xf32> to vector<64x128xf32>
    %247 = arith.addf %243, %246 : vector<64x128xf32>
    %cst_116 = arith.constant 5.000000e-01 : f32
    %248 = vector.broadcast %cst_116 : f32 to vector<64x128xf32>
    %249 = arith.mulf %248, %247 : vector<64x128xf32>
    %cst_117 = arith.constant 4.471500e-02 : f32
    %250 = vector.broadcast %cst_117 : f32 to vector<64x128xf32>
    %251 = arith.mulf %250, %247 : vector<64x128xf32>
    %252 = arith.mulf %251, %247 : vector<64x128xf32>
    %253 = arith.mulf %252, %247 : vector<64x128xf32>
    %254 = arith.addf %247, %253 : vector<64x128xf32>
    %cst_118 = arith.constant 0.797884583 : f32
    %255 = vector.broadcast %cst_118 : f32 to vector<64x128xf32>
    %256 = arith.mulf %255, %254 : vector<64x128xf32>
    %257 = math.tanh %256 : vector<64x128xf32>
    %cst_119 = arith.constant 1.000000e+00 : f32
    %258 = vector.broadcast %cst_119 : f32 to vector<64x128xf32>
    %259 = arith.addf %258, %257 : vector<64x128xf32>
    %260 = arith.mulf %249, %259 : vector<64x128xf32>
    %c1_120 = arith.constant 1 : index
    %c0_121 = arith.constant 0 : index
    %c0_122 = arith.constant 0 : index
    %261 = vector.load %arg14[%c1_120, %c0_121, %c0_122] : memref<2x128x128xf32, #tpu.memory_space<vmem>>, vector<1x128x128xf32>
    %262 = vector.shape_cast %261 : vector<1x128x128xf32> to vector<128x128xf32>
    %cst_123 = arith.constant dense<0.000000e+00> : vector<64x128xf32>
    %263 = tpu.matmul %260, %262, %cst_123 {dimension_numbers = #tpu.dot_dimension_numbers<[1], [0], [0], [1], [0, 0, 1, 1], [], []>} : vector<64x128xf32>, vector<128x128xf32>, vector<64x128xf32> -> vector<64x128xf32>
    %c1_124 = arith.constant 1 : index
    %c0_125 = arith.constant 0 : index
    %c0_126 = arith.constant 0 : index
    %264 = vector.load %arg15[%c1_124, %c0_125, %c0_126] : memref<2x1x128xf32, #tpu.memory_space<vmem>>, vector<1x1x128xf32>
    %265 = vector.shape_cast %264 : vector<1x1x128xf32> to vector<1x128xf32>
    %266 = vector.broadcast %265 : vector<1x128xf32> to vector<64x128xf32>
    %267 = arith.addf %263, %266 : vector<64x128xf32>
    %268 = arith.addf %240, %267 : vector<64x128xf32>
    %c1_127 = arith.constant 1 : index
    %c0_128 = arith.constant 0 : index
    %c0_129 = arith.constant 0 : index
    %269 = vector.load %arg16[%c1_127, %c0_128, %c0_129] : memref<2x1x128xf32, #tpu.memory_space<vmem>>, vector<1x1x128xf32>
    %270 = vector.shape_cast %269 : vector<1x1x128xf32> to vector<1x128xf32>
    %c1_130 = arith.constant 1 : index
    %c0_131 = arith.constant 0 : index
    %c0_132 = arith.constant 0 : index
    %271 = vector.load %arg17[%c1_130, %c0_131, %c0_132] : memref<2x1x128xf32, #tpu.memory_space<vmem>>, vector<1x1x128xf32>
    %272 = vector.shape_cast %271 : vector<1x1x128xf32> to vector<1x128xf32>
    %cst_133 = arith.constant dense<0.000000e+00> : vector<64xf32>
    %273 = vector.multi_reduction <add>, %268, %cst_133 [1] : vector<64x128xf32> to vector<64xf32>
    %274 = vector.shape_cast %273 : vector<64xf32> to vector<64x1xf32>
    %cst_134 = arith.constant 3.125000e-02 : f32
    %275 = vector.broadcast %cst_134 : f32 to vector<64x1xf32>
    %276 = arith.mulf %274, %275 : vector<64x1xf32>
    %277 = vector.broadcast %276 : vector<64x1xf32> to vector<64x128xf32>
    %278 = arith.subf %268, %277 : vector<64x128xf32>
    %279 = vector.broadcast %4 : vector<1x128xf32> to vector<64x128xf32>
    %280 = arith.mulf %278, %279 : vector<64x128xf32>
    %281 = arith.mulf %280, %280 : vector<64x128xf32>
    %cst_135 = arith.constant dense<0.000000e+00> : vector<64xf32>
    %282 = vector.multi_reduction <add>, %281, %cst_135 [1] : vector<64x128xf32> to vector<64xf32>
    %283 = vector.shape_cast %282 : vector<64xf32> to vector<64x1xf32>
    %cst_136 = arith.constant 3.125000e-02 : f32
    %284 = vector.broadcast %cst_136 : f32 to vector<64x1xf32>
    %285 = arith.mulf %283, %284 : vector<64x1xf32>
    %cst_137 = arith.constant 9.99999996E-13 : f32
    %286 = vector.broadcast %cst_137 : f32 to vector<64x1xf32>
    %287 = arith.addf %285, %286 : vector<64x1xf32>
    %288 = math.rsqrt %287 : vector<64x1xf32>
    %289 = vector.broadcast %288 : vector<64x1xf32> to vector<64x128xf32>
    %290 = arith.mulf %280, %289 : vector<64x128xf32>
    %291 = vector.broadcast %270 : vector<1x128xf32> to vector<64x128xf32>
    %292 = arith.mulf %290, %291 : vector<64x128xf32>
    %293 = vector.broadcast %272 : vector<1x128xf32> to vector<64x128xf32>
    %294 = arith.addf %292, %293 : vector<64x128xf32>
    %c0_138 = arith.constant 0 : index
    %c0_139 = arith.constant 0 : index
    %295 = vector.load %arg3[%c0_138, %c0_139] : memref<16x64xf32, #tpu.memory_space<vmem>>, vector<16x64xf32>
    %cst_140 = arith.constant dense<0.000000e+00> : vector<16x128xf32>
    %296 = tpu.matmul %295, %294, %cst_140 {dimension_numbers = #tpu.dot_dimension_numbers<[1], [0], [0], [1], [0, 0, 1, 1], [], []>} : vector<16x64xf32>, vector<64x128xf32>, vector<16x128xf32> -> vector<16x128xf32>
    %c0_141 = arith.constant 0 : index
    %c0_142 = arith.constant 0 : index
    %297 = vector.load %arg18[%c0_141, %c0_142] : memref<16x128xf32, #tpu.memory_space<vmem>>, vector<16x128xf32>
    tpu.vector_store %arg18[%c0_141, %c0_142], %296 {strides = array<i32>} : memref<16x128xf32, #tpu.memory_space<vmem>>, vector<16x128xf32>,
    return
  }
  func.func @transform_0(%arg0: i32) -> (i32, i32) {
    %c0_i32 = arith.constant 0 : i32
    %c0_i32_0 = arith.constant 0 : i32
    %c0_i32_1 = arith.constant 0 : i32
    return %c0_i32, %c0_i32_0 : i32, i32
  }
  func.func @transform_1(%arg0: i32) -> (i32, i32) {
    %c0_i32 = arith.constant 0 : i32
    %c0_i32_0 = arith.constant 0 : i32
    %c0_i32_1 = arith.constant 0 : i32
    return %c0_i32, %c0_i32_0 : i32, i32
  }
  func.func @transform_2(%arg0: i32) -> (i32, i32) {
    %c0_i32 = arith.constant 0 : i32
    %c0_i32_0 = arith.constant 0 : i32
    %c0_i32_1 = arith.constant 0 : i32
    return %c0_i32, %c0_i32_0 : i32, i32
  }
  func.func @transform_3(%arg0: i32) -> (i32, i32) {
    %c0_i32 = arith.constant 0 : i32
    %c0_i32_0 = arith.constant 0 : i32
    %c0_i32_1 = arith.constant 0 : i32
    return %c0_i32, %c0_i32_0 : i32, i32
  }
  func.func @transform_4(%arg0: i32) -> (i32, i32) {
    %c0_i32 = arith.constant 0 : i32
    %c0_i32_0 = arith.constant 0 : i32
    %c0_i32_1 = arith.constant 0 : i32
    return %c0_i32, %c0_i32_0 : i32, i32
  }
  func.func @transform_5(%arg0: i32) -> (i32, i32, i32) {
    %c0_i32 = arith.constant 0 : i32
    %c0_i32_0 = arith.constant 0 : i32
    %c0_i32_1 = arith.constant 0 : i32
    %c0_i32_2 = arith.constant 0 : i32
    return %c0_i32, %c0_i32_0, %c0_i32_1 : i32, i32, i32
  }
  func.func @transform_6(%arg0: i32) -> (i32, i32, i32) {
    %c0_i32 = arith.constant 0 : i32
    %c0_i32_0 = arith.constant 0 : i32
    %c0_i32_1 = arith.constant 0 : i32
    %c0_i32_2 = arith.constant 0 : i32
    return %c0_i32, %c0_i32_0, %c0_i32_1 : i32, i32, i32
  }
  func.func @transform_7(%arg0: i32) -> (i32, i32, i32) {
    %c0_i32 = arith.constant 0 : i32
    %c0_i32_0 = arith.constant 0 : i32
    %c0_i32_1 = arith.constant 0 : i32
    %c0_i32_2 = arith.constant 0 : i32
    return %c0_i32, %c0_i32_0, %c0_i32_1 : i32, i32, i32
  }
  func.func @transform_8(%arg0: i32) -> (i32, i32, i32) {
    %c0_i32 = arith.constant 0 : i32
    %c0_i32_0 = arith.constant 0 : i32
    %c0_i32_1 = arith.constant 0 : i32
    %c0_i32_2 = arith.constant 0 : i32
    return %c0_i32, %c0_i32_0, %c0_i32_1 : i32, i32, i32
  }
  func.func @transform_9(%arg0: i32) -> (i32, i32, i32) {
    %c0_i32 = arith.constant 0 : i32
    %c0_i32_0 = arith.constant 0 : i32
    %c0_i32_1 = arith.constant 0 : i32
    %c0_i32_2 = arith.constant 0 : i32
    return %c0_i32, %c0_i32_0, %c0_i32_1 : i32, i32, i32
  }
  func.func @transform_10(%arg0: i32) -> (i32, i32, i32) {
    %c0_i32 = arith.constant 0 : i32
    %c0_i32_0 = arith.constant 0 : i32
    %c0_i32_1 = arith.constant 0 : i32
    %c0_i32_2 = arith.constant 0 : i32
    return %c0_i32, %c0_i32_0, %c0_i32_1 : i32, i32, i32
  }
  func.func @transform_11(%arg0: i32) -> (i32, i32, i32) {
    %c0_i32 = arith.constant 0 : i32
    %c0_i32_0 = arith.constant 0 : i32
    %c0_i32_1 = arith.constant 0 : i32
    %c0_i32_2 = arith.constant 0 : i32
    return %c0_i32, %c0_i32_0, %c0_i32_1 : i32, i32, i32
  }
  func.func @transform_12(%arg0: i32) -> (i32, i32, i32) {
    %c0_i32 = arith.constant 0 : i32
    %c0_i32_0 = arith.constant 0 : i32
    %c0_i32_1 = arith.constant 0 : i32
    %c0_i32_2 = arith.constant 0 : i32
    return %c0_i32, %c0_i32_0, %c0_i32_1 : i32, i32, i32
  }
  func.func @transform_13(%arg0: i32) -> (i32, i32, i32) {
    %c0_i32 = arith.constant 0 : i32
    %c0_i32_0 = arith.constant 0 : i32
    %c0_i32_1 = arith.constant 0 : i32
    %c0_i32_2 = arith.constant 0 : i32
    return %c0_i32, %c0_i32_0, %c0_i32_1 : i32, i32, i32
  }
  func.func @transform_14(%arg0: i32) -> (i32, i32, i32) {
    %c0_i32 = arith.constant 0 : i32
    %c0_i32_0 = arith.constant 0 : i32
    %c0_i32_1 = arith.constant 0 : i32
    %c0_i32_2 = arith.constant 0 : i32
    return %c0_i32, %c0_i32_0, %c0_i32_1 : i32, i32, i32
  }
  func.func @transform_15(%arg0: i32) -> (i32, i32, i32) {
    %c0_i32 = arith.constant 0 : i32
    %c0_i32_0 = arith.constant 0 : i32
    %c0_i32_1 = arith.constant 0 : i32
    %c0_i32_2 = arith.constant 0 : i32
    return %c0_i32, %c0_i32_0, %c0_i32_1 : i32, i32, i32
  }
  func.func @transform_16(%arg0: i32) -> (i32, i32, i32) {
    %c0_i32 = arith.constant 0 : i32
    %c0_i32_0 = arith.constant 0 : i32
    %c0_i32_1 = arith.constant 0 : i32
    %c0_i32_2 = arith.constant 0 : i32
    return %c0_i32, %c0_i32_0, %c0_i32_1 : i32, i32, i32
  }
  func.func @transform_17(%arg0: i32) -> (i32, i32) {
    %c0_i32 = arith.constant 0 : i32
    %c0_i32_0 = arith.constant 0 : i32
    %c0_i32_1 = arith.constant 0 : i32
    return %c0_i32, %c0_i32_0 : i32, i32
  }
}

</mosaic_0001>

<bundles_post_ra>
// kernel: tpu_custom_call.1
= control target key start
LH: loop header
LB: loop body
LE: loop exit
PB: predicated region body
PF: predicated region fallthrough
CT: control target
= control target key end

     0   :  { %s7967_s0 = inlined_call_operand.hbm [shape: f32[64,128], index: 0, kind: input, shape index: {}]   ;;  %s7968_s1 = inlined_call_operand.hbm [shape: f32[64,64], index: 1, kind: input, shape index: {}]   ;;  %s7969_s2 = inlined_call_operand.hbm [shape: f32[16,64], index: 2, kind: input, shape index: {}]   ;;  %s7970_s3 = inlined_call_operand.hbm [shape: f32[1,128], index: 3, kind: input, shape index: {}]   ;;  %s7971_s4 = inlined_call_operand.hbm [shape: f32[1,128], index: 4, kind: input, shape index: {}]   ;;  %s7972_s5 = inlined_call_operand.hbm [shape: f32[2,128,768], index: 5, kind: input, shape index: {}]   ;;  %s7973_s6 = inlined_call_operand.hbm [shape: f32[2,1,768], index: 6, kind: input, shape index: {}]   ;;  %s7974_s7 = inlined_call_operand.hbm [shape: f32[2,256,128], index: 7, kind: input, shape index: {}]   ;;  %s7975_s8 = inlined_call_operand.hbm [shape: f32[2,1,128], index: 8, kind: input, shape index: {}]   ;;  %s7976_s9 = inlined_call_operand.hbm [shape: f32[2,1,128], index: 9, kind: input, shape index: {}]   ;;  %s7977_s10 = inlined_call_operand.hbm [shape: f32[2,1,128], index: 10, kind: input, shape index: {}]   ;;  %s7978_s11 = inlined_call_operand.hbm [shape: f32[2,128,128], index: 11, kind: input, shape index: {}]   ;;  %s7979_s12 = inlined_call_operand.hbm [shape: f32[2,1,128], index: 12, kind: input, shape index: {}]   ;;  %s7980_s13 = inlined_call_operand.hbm [shape: f32[2,128,128], index: 13, kind: input, shape index: {}]   ;;  %s7981_s14 = inlined_call_operand.hbm [shape: f32[2,1,128], index: 14, kind: input, shape index: {}]   ;;  %s7982_s15 = inlined_call_operand.hbm [shape: f32[2,1,128], index: 15, kind: input, shape index: {}]   ;;  %s7983_s16 = inlined_call_operand.hbm [shape: f32[2,1,128], index: 16, kind: input, shape index: {}]   ;;  %s7984_s17 = inlined_call_operand.hbm [shape: f32[16,128], index: 17, kind: output, shape index: {}]  }
   0x1   :  { %7989 = sst [smem:[#allocation40_spill]] %s7967_s0 }
   0x2   :  { %7990 = sst [smem:[#allocation41_spill]] %s7968_s1 }
   0x3   :  { %22 = vsyncpa [#allocation3], 0 }
   0x4   :  { %23 = vsyncpa [#allocation6], 0 }
   0x5   :  { %24 = vsyncpa [#allocation9], 0 }
   0x6   :  { %25 = vsyncpa [#allocation12], 0 }
   0x7   :  { %26 = vsyncpa [#allocation15], 0 }
   0x8   :  { %27 = vsyncpa [#allocation18], 0 }
   0x9   :  { %28 = vsyncpa [#allocation21], 0 }
   0xa   :  { %29 = vsyncpa [#allocation24], 0 }
   0xb   :  { %30 = vsyncpa [#allocation27], 0 }
   0xc   :  { %31 = vsyncpa [#allocation4], 0  ;;  %s6354_s24 = smov [#allocation5]   ;;  %s6355_s26 = smov [#allocation8]  }
   0xd   :  { %s49_s25 = sshll.u32 %s6354_s24, 4  ;;  %s74_s27 = sshll.u32 %s6355_s26, 4  ;;  %s50_s25 = int_to_ptr.vmem [resolvable:$true] %s49_s25  ;;  %s6471_s27 = int_to_ptr.vmem [resolvable:$true] %s74_s27 }
   0xe   :  { %s7991_s0 = sld [smem:[#allocation41_spill]] }
  0x14   :  { %s5938_s30 = scalar_lea.hbm %s7991_s0, 1024 }
  0x15   :  { %p5939_p0 = scmp.ne.s32.totalorder %s7991_s0, %s5938_s30  ;;  %p5942_p1 = scmp.lt.u32.totalorder %s5938_s30, %s7991_s0 }
  0x17   :  { %p5944_p2 = pnand %p5942_p1, %p5939_p0 }
  0x19   :  { %5947 = shalt.err (!%p5944_p2)
}
  0x1a   :  { %s5948_s21 = scalar_lea.vmem %s50_s25, 1024  ;;  %p5953_p4 = scmp.lt.s32.totalorder %s50_s25, %s50_s25 }
  0x1b   :  { %p5949_p3 = scmp.ne.s32.totalorder %s50_s25, %s5948_s21  ;;  %p5954_p5 = scmp.lt.s32.totalorder %s5948_s21, %s5948_s21 }
  0x1d   :  { %p5955_p6 = por %p5954_p5, %p5953_p4 }
  0x1f   :  { %p5956_p7 = pnand %p5955_p6, %p5949_p3 }
  0x21   :  { %5959 = shalt.err (!%p5956_p7)
}
  0x22   :  { %s7987_s22 = smov 128   ;;  %s6357_s23 = smov 8  }
  0x23   :  { %55 = dma.hbm_to_vmem [thread:$0]  %s7991_s0, 1024, %s50_s25, [#allocation6], %s7987_s22, %s7987_s22, %s6357_s23  }
  0x24   :  { %s5960_s30 = scalar_lea.hbm %s7970_s3, 16 }
  0x25   :  { %p5961_p8 = scmp.ne.s32.totalorder %s7970_s3, %s5960_s30  ;;  %p5964_p9 = scmp.lt.u32.totalorder %s5960_s30, %s7970_s3 }
  0x27   :  { %p5966_p10 = pnand %p5964_p9, %p5961_p8 }
  0x29   :  { %5969 = shalt.err (!%p5966_p10)
}
  0x2a   :  { %s5970_s21 = scalar_lea.vmem %s6471_s27, 16  ;;  %s5974_s25 = scalar_lea.vmem %s6471_s27, 32 }
  0x2b   :  { %p5971_p11 = scmp.ne.s32.totalorder %s6471_s27, %s5970_s21  ;;  %p5975_p12 = scmp.lt.s32.totalorder %s6471_s27, %s6471_s27 }
  0x2c   :  { %p5976_p13 = scmp.lt.s32.totalorder %s5974_s25, %s5970_s21 }
  0x2e   :  { %p5977_p0 = por %p5976_p13, %p5975_p12 }
  0x30   :  { %p5978_p1 = pnand %p5977_p0, %p5971_p11 }
  0x32   :  { %5981 = shalt.err (!%p5978_p1)
}
  0x33   :  { %77 = dma.hbm_to_vmem [thread:$0]  %s7970_s3, 16, %s6471_s27, [#allocation9]  }
  0x34   :  { %s6358_s26 = smov [#allocation11]   ;;  %s5982_s18 = scalar_lea.hbm %s7972_s5, 24576 }
  0x35   :  { %s93_s28 = sshll.u32 %s6358_s26, 4  ;;  %p5983_p2 = scmp.ne.s32.totalorder %s7972_s5, %s5982_s18  ;;  %s94_s28 = int_to_ptr.vmem [resolvable:$true] %s93_s28 }
  0x36   :  { %p5986_p3 = scmp.lt.u32.totalorder %s5982_s18, %s7972_s5 }
  0x38   :  { %p5988_p4 = pnand %p5986_p3, %p5983_p2 }
  0x3a   :  { %5991 = shalt.err (!%p5988_p4)
}
  0x3b   :  { %s5992_s25 = scalar_lea.vmem %s94_s28, 24576  ;;  %p5997_p6 = scmp.lt.s32.totalorder %s94_s28, %s94_s28 }
  0x3c   :  { %p5993_p5 = scmp.ne.s32.totalorder %s94_s28, %s5992_s25  ;;  %p5998_p7 = scmp.lt.s32.totalorder %s5992_s25, %s5992_s25 }
  0x3e   :  { %p5999_p8 = por %p5998_p7, %p5997_p6 }
  0x40   :  { %p6000_p9 = pnand %p5999_p8, %p5993_p5 }
  0x42   :  { %6003 = shalt.err (!%p6000_p9)
}
  0x43   :  { %s6359_s3 = smov 768   ;;  %s6360_s27 = smov 48  }
  0x44   :  { %99 = dma.hbm_to_vmem [thread:$0]  %s7972_s5, 24576, %s94_s28, [#allocation12], %s6359_s3, %s6359_s3, %s6360_s27  }
  0x45   :  { %s6361_s26 = smov [#allocation14]   ;;  %s6004_s19 = scalar_lea.hbm %s7974_s7, 8192 }
  0x46   :  { %s117_s29 = sshll.u32 %s6361_s26, 4  ;;  %p6005_p10 = scmp.ne.s32.totalorder %s7974_s7, %s6004_s19  ;;  %s118_s29 = int_to_ptr.vmem [resolvable:$true] %s117_s29 }
  0x47   :  { %p6008_p11 = scmp.lt.u32.totalorder %s6004_s19, %s7974_s7 }
  0x49   :  { %p6010_p12 = pnand %p6008_p11, %p6005_p10 }
  0x4b   :  { %6013 = shalt.err (!%p6010_p12)
}
  0x4c   :  { %s6014_s22 = scalar_lea.vmem %s118_s29, 8192  ;;  %p6019_p0 = scmp.lt.s32.totalorder %s118_s29, %s118_s29 }
  0x4d   :  { %p6015_p13 = scmp.ne.s32.totalorder %s118_s29, %s6014_s22  ;;  %p6020_p1 = scmp.lt.s32.totalorder %s6014_s22, %s6014_s22 }
  0x4f   :  { %p6021_p2 = por %p6020_p1, %p6019_p0 }
  0x51   :  { %p6022_p3 = pnand %p6021_p2, %p6015_p13 }
  0x53   :  { %6025 = shalt.err (!%p6022_p3)
}
  0x54   :  { %s7992_s5 = smov 128   ;;  %s6362_s27 = smov [#allocation17]  }
  0x55   :  { %123 = dma.hbm_to_vmem [thread:$0]  %s7974_s7, 8192, %s118_s29, [#allocation15], %s7992_s5, %s7992_s5, %s6357_s23  }
  0x56   :  { %s141_s0 = sshll.u32 %s6362_s27, 4  ;;  %s6363_s24 = smov [#allocation20]   ;;  %s142_s0 = int_to_ptr.vmem [resolvable:$true] %s141_s0 }
  0x57   :  { %s165_s26 = sshll.u32 %s6363_s24, 4  ;;  %s6026_s22 = scalar_lea.hbm %s7976_s9, 32  ;;  %s6533_s26 = int_to_ptr.vmem [resolvable:$true] %s165_s26 }
  0x58   :  { %p6027_p4 = scmp.ne.s32.totalorder %s7976_s9, %s6026_s22  ;;  %p6030_p5 = scmp.lt.u32.totalorder %s6026_s22, %s7976_s9 }
  0x5a   :  { %p6032_p6 = pnand %p6030_p5, %p6027_p4 }
  0x5c   :  { %6035 = shalt.err (!%p6032_p6)
}
  0x5d   :  { %s6036_s7 = scalar_lea.vmem %s142_s0, 32  ;;  %p6041_p8 = scmp.lt.s32.totalorder %s142_s0, %s142_s0 }
  0x5e   :  { %p6037_p7 = scmp.ne.s32.totalorder %s142_s0, %s6036_s7  ;;  %p6042_p9 = scmp.lt.s32.totalorder %s6036_s7, %s6036_s7 }
  0x60   :  { %p6043_p10 = por %p6042_p9, %p6041_p8 }
  0x62   :  { %p6044_p11 = pnand %p6043_p10, %p6037_p7 }
  0x64   :  { %6047 = shalt.err (!%p6044_p11)
}
  0x65   :  { %s6364_s29 = smov 16   ;;  %s6365_s25 = smov 1  }
  0x66   :  { %147 = dma.hbm_to_vmem [thread:$0]  %s7976_s9, 32, %s142_s0, [#allocation18], %s6364_s29, %s6364_s29, %s6365_s25  }
  0x67   :  { %s6048_s30 = scalar_lea.hbm %s7978_s11, 4096 }
  0x68   :  { %p6049_p12 = scmp.ne.s32.totalorder %s7978_s11, %s6048_s30  ;;  %p6052_p13 = scmp.lt.u32.totalorder %s6048_s30, %s7978_s11 }
  0x6a   :  { %p6054_p0 = pnand %p6052_p13, %p6049_p12 }
  0x6c   :  { %6057 = shalt.err (!%p6054_p0)
}
  0x6d   :  { %s6058_s20 = scalar_lea.vmem %s6533_s26, 4096  ;;  %p6063_p2 = scmp.lt.s32.totalorder %s6533_s26, %s6533_s26 }
  0x6e   :  { %p6059_p1 = scmp.ne.s32.totalorder %s6533_s26, %s6058_s20  ;;  %p6064_p3 = scmp.lt.s32.totalorder %s6058_s20, %s6058_s20 }
  0x70   :  { %p6065_p4 = por %p6064_p3, %p6063_p2 }
  0x72   :  { %p6066_p5 = pnand %p6065_p4, %p6059_p1 }
  0x74   :  { %6069 = shalt.err (!%p6066_p5)
}
  0x75   :  { %171 = dma.hbm_to_vmem [thread:$0]  %s7978_s11, 4096, %s6533_s26, [#allocation21], %s7992_s5, %s7992_s5, %s6357_s23  }
  0x76   :  { %s6366_s21 = smov [#allocation23]   ;;  %s6367_s28 = smov [#allocation26]  }
  0x77   :  { %s189_s7 = sshll.u32 %s6366_s21, 4  ;;  %s213_s3 = sshll.u32 %s6367_s28, 4  ;;  %s190_s7 = int_to_ptr.vmem [resolvable:$true] %s189_s7  ;;  %s6570_s3 = int_to_ptr.vmem [resolvable:$true] %s213_s3 }
  0x78   :  { %s6070_s30 = scalar_lea.hbm %s7980_s13, 4096 }
  0x79   :  { %p6071_p6 = scmp.ne.s32.totalorder %s7980_s13, %s6070_s30  ;;  %p6074_p7 = scmp.lt.u32.totalorder %s6070_s30, %s7980_s13 }
  0x7b   :  { %p6076_p8 = pnand %p6074_p7, %p6071_p6 }
  0x7d   :  { %6079 = shalt.err (!%p6076_p8)
}
  0x7e   :  { %s6080_s11 = scalar_lea.vmem %s190_s7, 4096  ;;  %p6085_p10 = scmp.lt.s32.totalorder %s190_s7, %s190_s7 }
  0x7f   :  { %p6081_p9 = scmp.ne.s32.totalorder %s190_s7, %s6080_s11  ;;  %p6086_p11 = scmp.lt.s32.totalorder %s6080_s11, %s6080_s11 }
  0x81   :  { %p6087_p12 = por %p6086_p11, %p6085_p10 }
  0x83   :  { %p6088_p13 = pnand %p6087_p12, %p6081_p9 }
  0x85   :  { %6091 = shalt.err (!%p6088_p13)
}
  0x86   :  { %195 = dma.hbm_to_vmem [thread:$0]  %s7980_s13, 4096, %s190_s7, [#allocation24], %s7992_s5, %s7992_s5, %s6357_s23  }
  0x87   :  { %s6092_s21 = scalar_lea.hbm %s7982_s15, 32 }
  0x88   :  { %p6093_p0 = scmp.ne.s32.totalorder %s7982_s15, %s6092_s21  ;;  %p6096_p1 = scmp.lt.u32.totalorder %s6092_s21, %s7982_s15 }
  0x8a   :  { %p6098_p2 = pnand %p6096_p1, %p6093_p0 }
  0x8c   :  { %6101 = shalt.err (!%p6098_p2)
}
  0x8d   :  { %s6102_s18 = scalar_lea.vmem %s6570_s3, 32  ;;  %p6107_p4 = scmp.lt.s32.totalorder %s6570_s3, %s6570_s3 }
  0x8e   :  { %p6103_p3 = scmp.ne.s32.totalorder %s6570_s3, %s6102_s18  ;;  %p6108_p5 = scmp.lt.s32.totalorder %s6102_s18, %s6102_s18 }
  0x90   :  { %p6109_p6 = por %p6108_p5, %p6107_p4 }
  0x92   :  { %p6110_p7 = pnand %p6109_p6, %p6103_p3 }
  0x94   :  { %6113 = shalt.err (!%p6110_p7)
}
  0x95   :  { %219 = dma.hbm_to_vmem [thread:$0]  %s7982_s15, 32, %s6570_s3, [#allocation27], %s6364_s29, %s6364_s29, %s6365_s25  }
  0x96   :  { %s6368_s22 = smov [#allocation2]   ;;  %s6369_s1 = smov [#allocation7]  }
  0x97   :  { %s37_s19 = sshll.u32 %s6368_s22, 4  ;;  %s61_s11 = sshll.u32 %s6369_s1, 4  ;;  %s38_s19 = int_to_ptr.vmem [resolvable:$true] %s37_s19  ;;  %s6607_s11 = int_to_ptr.vmem [resolvable:$true] %s61_s11 }
  0x98   :  { %s7993_s9 = sld [smem:[#allocation40_spill]] }
  0x9e   :  { %s6114_s0 = scalar_lea.hbm %s7993_s9, 1024 }
  0x9f   :  { %p6115_p8 = scmp.ne.s32.totalorder %s7993_s9, %s6114_s0  ;;  %p6118_p9 = scmp.lt.u32.totalorder %s6114_s0, %s7993_s9 }
  0xa1   :  { %p6120_p10 = pnand %p6118_p9, %p6115_p8 }
  0xa3   :  { %6123 = shalt.err (!%p6120_p10)
}
  0xa4   :  { %s6124_s15 = scalar_lea.vmem %s38_s19, 1024  ;;  %p6129_p12 = scmp.lt.s32.totalorder %s38_s19, %s38_s19 }
  0xa5   :  { %p6125_p11 = scmp.ne.s32.totalorder %s38_s19, %s6124_s15  ;;  %p6130_p13 = scmp.lt.s32.totalorder %s6124_s15, %s6124_s15 }
  0xa7   :  { %p6131_p0 = por %p6130_p13, %p6129_p12 }
  0xa9   :  { %p6132_p1 = pnand %p6131_p0, %p6125_p11 }
  0xab   :  { %6135 = shalt.err (!%p6132_p1)
}
  0xac   :  { %43 = dma.hbm_to_vmem [thread:$0]  %s7993_s9, 1024, %s38_s19, [#allocation3], %s7992_s5, %s7992_s5, %s6357_s23  }
  0xad   :  { %s6136_s7 = scalar_lea.hbm %s7969_s2, 256 }
  0xae   :  { %p6137_p2 = scmp.ne.s32.totalorder %s7969_s2, %s6136_s7  ;;  %p6140_p3 = scmp.lt.u32.totalorder %s6136_s7, %s7969_s2 }
  0xb0   :  { %p6142_p4 = pnand %p6140_p3, %p6137_p2 }
  0xb2   :  { %6145 = shalt.err (!%p6142_p4)
}
  0xb3   :  { %s6146_s0 = scalar_lea.vmem %s6607_s11, 256  ;;  %p6151_p6 = scmp.lt.s32.totalorder %s6607_s11, %s6607_s11 }
  0xb4   :  { %p6147_p5 = scmp.ne.s32.totalorder %s6607_s11, %s6146_s0  ;;  %p6152_p7 = scmp.lt.s32.totalorder %s6146_s0, %s6146_s0 }
  0xb6   :  { %p6153_p8 = por %p6152_p7, %p6151_p6 }
  0xb8   :  { %p6154_p9 = pnand %p6153_p8, %p6147_p5 }
  0xba   :  { %6157 = shalt.err (!%p6154_p9)
}
  0xbb   :  { %67 = dma.hbm_to_vmem [thread:$0]  %s7969_s2, 256, %s6607_s11, [#allocation6], %s7992_s5, %s7992_s5, %s6357_s23  }
  0xbc   :  { %s6370_s21 = smov [#allocation10]   ;;  %s6371_s27 = smov [#allocation13]  }
  0xbd   :  { %s84_s28 = sshll.u32 %s6370_s21, 4  ;;  %s105_s24 = sshll.u32 %s6371_s27, 4  ;;  %s85_s28 = int_to_ptr.vmem [resolvable:$true] %s84_s28  ;;  %s6644_s24 = int_to_ptr.vmem [resolvable:$true] %s105_s24 }
  0xbe   :  { %s6158_s30 = scalar_lea.hbm %s7971_s4, 16 }
  0xbf   :  { %p6159_p10 = scmp.ne.s32.totalorder %s7971_s4, %s6158_s30  ;;  %p6162_p11 = scmp.lt.u32.totalorder %s6158_s30, %s7971_s4 }
  0xc1   :  { %p6164_p12 = pnand %p6162_p11, %p6159_p10 }
  0xc3   :  { %6167 = shalt.err (!%p6164_p12)
}
  0xc4   :  { %s6168_s2 = scalar_lea.vmem %s85_s28, 16  ;;  %s6172_s11 = scalar_lea.vmem %s85_s28, 32 }
  0xc5   :  { %p6169_p13 = scmp.ne.s32.totalorder %s85_s28, %s6168_s2  ;;  %p6173_p0 = scmp.lt.s32.totalorder %s85_s28, %s85_s28 }
  0xc6   :  { %p6174_p1 = scmp.lt.s32.totalorder %s6172_s11, %s6168_s2 }
  0xc8   :  { %p6175_p2 = por %p6174_p1, %p6173_p0 }
  0xca   :  { %p6176_p3 = pnand %p6175_p2, %p6169_p13 }
  0xcc   :  { %6179 = shalt.err (!%p6176_p3)
}
  0xcd   :  { %87 = dma.hbm_to_vmem [thread:$0]  %s7971_s4, 16, %s85_s28, [#allocation9]  }
  0xce   :  { %s6180_s19 = scalar_lea.hbm %s7973_s6, 192 }
  0xcf   :  { %p6181_p4 = scmp.ne.s32.totalorder %s7973_s6, %s6180_s19  ;;  %p6184_p5 = scmp.lt.u32.totalorder %s6180_s19, %s7973_s6 }
  0xd1   :  { %p6186_p6 = pnand %p6184_p5, %p6181_p4 }
  0xd3   :  { %6189 = shalt.err (!%p6186_p6)
}
  0xd4   :  { %s6190_s3 = scalar_lea.vmem %s6644_s24, 192  ;;  %p6195_p8 = scmp.lt.s32.totalorder %s6644_s24, %s6644_s24 }
  0xd5   :  { %p6191_p7 = scmp.ne.s32.totalorder %s6644_s24, %s6190_s3  ;;  %p6196_p9 = scmp.lt.s32.totalorder %s6190_s3, %s6190_s3 }
  0xd7   :  { %p6197_p10 = por %p6196_p9, %p6195_p8 }
  0xd9   :  { %p6198_p11 = pnand %p6197_p10, %p6191_p7 }
  0xdb   :  { %6201 = shalt.err (!%p6198_p11)
}
  0xdc   :  { %s6372_s4 = smov 96   ;;  %s6373_s28 = smov 6  }
  0xdd   :  { %111 = dma.hbm_to_vmem [thread:$0]  %s7973_s6, 192, %s6644_s24, [#allocation12], %s6372_s4, %s6372_s4, %s6373_s28  }
  0xde   :  { %s6374_s13 = smov [#allocation16]   ;;  %s6375_s22 = smov [#allocation19]  }
  0xdf   :  { %s129_s7 = sshll.u32 %s6374_s13, 4  ;;  %s153_s2 = sshll.u32 %s6375_s22, 4  ;;  %s130_s7 = int_to_ptr.vmem [resolvable:$true] %s129_s7  ;;  %s6675_s2 = int_to_ptr.vmem [resolvable:$true] %s153_s2 }
  0xe0   :  { %s6202_s26 = scalar_lea.hbm %s7975_s8, 32 }
  0xe1   :  { %p6203_p12 = scmp.ne.s32.totalorder %s7975_s8, %s6202_s26  ;;  %p6206_p13 = scmp.lt.u32.totalorder %s6202_s26, %s7975_s8 }
  0xe3   :  { %p6208_p0 = pnand %p6206_p13, %p6203_p12 }
  0xe5   :  { %6211 = shalt.err (!%p6208_p0)
}
  0xe6   :  { %s6212_s6 = scalar_lea.vmem %s130_s7, 32  ;;  %p6217_p2 = scmp.lt.s32.totalorder %s130_s7, %s130_s7 }
  0xe7   :  { %p6213_p1 = scmp.ne.s32.totalorder %s130_s7, %s6212_s6  ;;  %p6218_p3 = scmp.lt.s32.totalorder %s6212_s6, %s6212_s6 }
  0xe9   :  { %p6219_p4 = por %p6218_p3, %p6217_p2 }
  0xeb   :  { %p6220_p5 = pnand %p6219_p4, %p6213_p1 }
  0xed   :  { %6223 = shalt.err (!%p6220_p5)
}
  0xee   :  { %135 = dma.hbm_to_vmem [thread:$0]  %s7975_s8, 32, %s130_s7, [#allocation15], %s6364_s29, %s6364_s29, %s6365_s25  }
  0xef   :  { %s6224_s3 = scalar_lea.hbm %s7977_s10, 32 }
  0xf0   :  { %p6225_p6 = scmp.ne.s32.totalorder %s7977_s10, %s6224_s3  ;;  %p6228_p7 = scmp.lt.u32.totalorder %s6224_s3, %s7977_s10 }
  0xf2   :  { %p6230_p8 = pnand %p6228_p7, %p6225_p6 }
  0xf4   :  { %6233 = shalt.err (!%p6230_p8)
}
  0xf5   :  { %s6234_s13 = scalar_lea.vmem %s6675_s2, 32  ;;  %p6239_p10 = scmp.lt.s32.totalorder %s6675_s2, %s6675_s2 }
  0xf6   :  { %p6235_p9 = scmp.ne.s32.totalorder %s6675_s2, %s6234_s13  ;;  %p6240_p11 = scmp.lt.s32.totalorder %s6234_s13, %s6234_s13 }
  0xf8   :  { %p6241_p12 = por %p6240_p11, %p6239_p10 }
  0xfa   :  { %p6242_p13 = pnand %p6241_p12, %p6235_p9 }
  0xfc   :  { %6245 = shalt.err (!%p6242_p13)
}
  0xfd   :  { %159 = dma.hbm_to_vmem [thread:$0]  %s7977_s10, 32, %s6675_s2, [#allocation18], %s6364_s29, %s6364_s29, %s6365_s25  }
  0xfe   :  { %s6376_s22 = smov [#allocation22]   ;;  %s6377_s1 = smov [#allocation25]  }
  0xff   :  { %s177_s11 = sshll.u32 %s6376_s22, 4  ;;  %s201_s26 = sshll.u32 %s6377_s1, 4  ;;  %s178_s11 = int_to_ptr.vmem [resolvable:$true] %s177_s11  ;;  %s6712_s26 = int_to_ptr.vmem [resolvable:$true] %s201_s26 }
 0x100   :  { %s6246_s19 = scalar_lea.hbm %s7979_s12, 32 }
 0x101   :  { %p6247_p0 = scmp.ne.s32.totalorder %s7979_s12, %s6246_s19  ;;  %p6250_p1 = scmp.lt.u32.totalorder %s6246_s19, %s7979_s12 }
 0x103   :  { %p6252_p2 = pnand %p6250_p1, %p6247_p0 }
 0x105   :  { %6255 = shalt.err (!%p6252_p2)
}
 0x106   :  { %s6256_s10 = scalar_lea.vmem %s178_s11, 32  ;;  %p6261_p4 = scmp.lt.s32.totalorder %s178_s11, %s178_s11 }
 0x107   :  { %p6257_p3 = scmp.ne.s32.totalorder %s178_s11, %s6256_s10  ;;  %p6262_p5 = scmp.lt.s32.totalorder %s6256_s10, %s6256_s10 }
 0x109   :  { %p6263_p6 = por %p6262_p5, %p6261_p4 }
 0x10b   :  { %p6264_p7 = pnand %p6263_p6, %p6257_p3 }
 0x10d   :  { %6267 = shalt.err (!%p6264_p7)
}
 0x10e   :  { %183 = dma.hbm_to_vmem [thread:$0]  %s7979_s12, 32, %s178_s11, [#allocation21], %s6364_s29, %s6364_s29, %s6365_s25  }
 0x10f   :  { %s6268_s4 = scalar_lea.hbm %s7981_s14, 32 }
 0x110   :  { %p6269_p8 = scmp.ne.s32.totalorder %s7981_s14, %s6268_s4  ;;  %p6272_p9 = scmp.lt.u32.totalorder %s6268_s4, %s7981_s14 }
 0x112   :  { %p6274_p10 = pnand %p6272_p9, %p6269_p8 }
 0x114   :  { %6277 = shalt.err (!%p6274_p10)
}
 0x115   :  { %s6278_s8 = scalar_lea.vmem %s6712_s26, 32  ;;  %p6283_p12 = scmp.lt.s32.totalorder %s6712_s26, %s6712_s26 }
 0x116   :  { %p6279_p11 = scmp.ne.s32.totalorder %s6712_s26, %s6278_s8  ;;  %p6284_p13 = scmp.lt.s32.totalorder %s6278_s8, %s6278_s8 }
 0x118   :  { %p6285_p0 = por %p6284_p13, %p6283_p12 }
 0x11a   :  { %p6286_p1 = pnand %p6285_p0, %p6279_p11 }
 0x11c   :  { %6289 = shalt.err (!%p6286_p1)
}
 0x11d   :  { %207 = dma.hbm_to_vmem [thread:$0]  %s7981_s14, 32, %s6712_s26, [#allocation24], %s6364_s29, %s6364_s29, %s6365_s25  }
 0x11e   :  { %s6378_s22 = smov [#allocation28]   ;;  %s6290_s0 = scalar_lea.hbm %s7983_s16, 32 }
 0x11f   :  { %s225_s11 = sshll.u32 %s6378_s22, 4  ;;  %p6291_p2 = scmp.ne.s32.totalorder %s7983_s16, %s6290_s0  ;;  %s226_s11 = int_to_ptr.vmem [resolvable:$true] %s225_s11 }
 0x120   :  { %p6294_p3 = scmp.lt.u32.totalorder %s6290_s0, %s7983_s16 }
 0x122   :  { %p6296_p4 = pnand %p6294_p3, %p6291_p2 }
 0x124   :  { %6299 = shalt.err (!%p6296_p4)
}
 0x125   :  { %s6300_s21 = scalar_lea.vmem %s226_s11, 32  ;;  %p6305_p6 = scmp.lt.s32.totalorder %s226_s11, %s226_s11 }
 0x126   :  { %p6301_p5 = scmp.ne.s32.totalorder %s226_s11, %s6300_s21  ;;  %p6306_p7 = scmp.lt.s32.totalorder %s6300_s21, %s6300_s21 }
 0x128   :  { %p6307_p8 = por %p6306_p7, %p6305_p6 }
 0x12a   :  { %p6308_p9 = pnand %p6307_p8, %p6301_p5 }
 0x12c   :  { %6311 = shalt.err (!%p6308_p9)
}
 0x12d   :  { %231 = dma.hbm_to_vmem [thread:$0]  %s7983_s16, 32, %s226_s11, [#allocation27], %s6364_s29, %s6364_s29, %s6365_s25  }
 0x12e   :  { %6334 = dma.done.wait [#allocation3], 1024  }
 0x12f   :  { %6335 = vsyncadd [#allocation3], 4294966272 }
 0x130   :  { %6336 = dma.done.wait [#allocation6], 1280  }
 0x131   :  { %6337 = vsyncadd [#allocation6], 4294966016 }
 0x132   :  { %6338 = dma.done.wait [#allocation9], 32  }
 0x133   :  { %6339 = vsyncadd [#allocation9], 4294967264 }
 0x134   :  { %6340 = dma.done.wait [#allocation12], 24768  }
 0x135   :  { %6341 = vsyncadd [#allocation12], 4294942528 }
 0x136   :  { %6342 = dma.done.wait [#allocation15], 8224  }
 0x137   :  { %6343 = vsyncadd [#allocation15], 4294959072 }
 0x138   :  { %6344 = dma.done.wait [#allocation18], 64  }
 0x139   :  { %6345 = vsyncadd [#allocation18], 4294967232 }
 0x13a   :  { %6346 = dma.done.wait [#allocation21], 4128  }
 0x13b   :  { %6347 = vsyncadd [#allocation21], 4294963168 }
 0x13c   :  { %6348 = dma.done.wait [#allocation24], 4128  }
 0x13d   :  { %6349 = vsyncadd [#allocation24], 4294963168 }
 0x13e   :  { %6350 = dma.done.wait [#allocation27], 64  }
 0x13f   :  { %6351 = vsyncadd [#allocation27], 4294967232  ;;  %v6764_v0 = vld [vmem:[#allocation2] sm:$0xff]  ;;  %v6766_v1 = vld [vmem:[#allocation2 + $0x10] sm:$0xff]  ;;  %v6379_v8 = vmov 0.0   ;;  %v283_v45 = vlaneseq  ;;  %vm1018_vm1 = vcmask 523264  }
 0x140   :  { %306 = vadd.xlane.f32.xlu0 %v6764_v0  ;;  %310 = vadd.xlane.f32.xlu1 %v6766_v1  ;;  %v6770_v2 = vld [vmem:[#allocation2 + $0x8] sm:$0xff]  ;;  %v6772_v3 = vld [vmem:[#allocation2 + $0x18] sm:$0xff]  ;;  %v6776_v4 = vld [vmem:[#allocation2 + $0x20] sm:$0xff]  ;;  %s6380_s16 = smov [#allocation29]  }
 0x141   :  { %v6778_v5 = vld [vmem:[#allocation2 + $0x28] sm:$0xff]  ;;  %v6782_v6 = vld [vmem:[#allocation2 + $0x30] sm:$0xff]  ;;  %v6784_v7 = vld [vmem:[#allocation2 + $0x38] sm:$0xff]  ;;  %622 = vmatprep.mubr.f32.mxu0 %v6379_v8  ;;  %735 = vmatprep.mubr.f32.mxu1 %v6379_v8  ;;  %v284_v46 = vand.u32 127, %v283_v45  ;;  %s4299_s29 = sshll.u32 %s6380_s16, 4  ;;  %s4300_s29 = int_to_ptr.vmem [resolvable:$true] %s4299_s29 }
 0x142   :  { %v431_v9 = vld [vmem:[#allocation11 + $0x8] sm:$0xff]  ;;  %v437_v10 = vld [vmem:[#allocation11 + $0x38] sm:$0xff]  ;;  %v430_v14 = vld [vmem:[#allocation11] sm:$0xff]  ;;  %s6312_s25 = scalar_lea.vmem %s4300_s29, 256  ;;  %p6317_p11 = scmp.lt.s32.totalorder %s4300_s29, %s4300_s29 }
 0x143   :  { %v433_v11 = vld [vmem:[#allocation11 + $0x18] sm:$0xff]  ;;  %v5135_v12 = vpack.c.bf16 %v437_v10, %v431_v9  ;;  %v439_v13 = vld [vmem:[#allocation11 + $0x48] sm:$0xff]  ;;  %v436_v15 = vld [vmem:[#allocation11 + $0x30] sm:$0xff]  ;;  %vm285_vm0 = vcmp.lt.s32.totalorder %v284_v46, 32  ;;  %p6313_p10 = scmp.ne.s32.totalorder %s4300_s29, %s6312_s25  ;;  %p6318_p12 = scmp.lt.s32.totalorder %s6312_s25, %s6312_s25 }
 0x144   :  { %308 = vadd.xlane.f32.xlu0 %v6770_v2  ;;  %312 = vadd.xlane.f32.xlu1 %v6772_v3  ;;  %v5167_v16 = vpack.c.bf16 %v439_v13, %v433_v11  ;;  %v5137_v17 = vpack.c.bf16 %v436_v15, %v430_v14  ;;  %v432_v18 = vld [vmem:[#allocation11 + $0x10] sm:$0xff]  ;;  %v438_v19 = vld [vmem:[#allocation11 + $0x40] sm:$0xff]  ;;  %v443_v20 = vld [vmem:[#allocation11 + $0x68] sm:$0xff]  ;;  %v6792_v51 = vsel %vm285_vm0, 1.0, %v6379_v8 }
 0x145   :  { %5136 = vmatprep.subr.bf16.mxu0 %v5135_v12  ;;  %v5169_v21 = vpack.c.bf16 %v438_v19, %v432_v18  ;;  %v449_v22 = vld [vmem:[#allocation11 + $0x98] sm:$0xff]  ;;  %v451_v24 = vld [vmem:[#allocation11 + $0xa8] sm:$0xff]  ;;  %v442_v27 = vld [vmem:[#allocation11 + $0x60] sm:$0xff]  ;;  %p6319_p13 = por %p6318_p12, %p6317_p11 }
 0x146   :  { %v445_v23 = vld [vmem:[#allocation11 + $0x78] sm:$0xff]  ;;  %5168 = vmatprep.subr.bf16.mxu1 %v5167_v16  ;;  %5138 = vmatpush1.bf16.msra.mxu0 %v5137_v17  ;;  %v5139_v25 = vpack.c.bf16 %v449_v22, %v443_v20  ;;  %v448_v28 = vld [vmem:[#allocation11 + $0x90] sm:$0xff]  ;;  %v450_v31 = vld [vmem:[#allocation11 + $0xa0] sm:$0xff] }
 0x147   :  { %v5171_v26 = vpack.c.bf16 %v451_v24, %v445_v23  ;;  %v444_v29 = vld [vmem:[#allocation11 + $0x70] sm:$0xff]  ;;  %5170 = vmatpush1.bf16.msra.mxu1 %v5169_v21  ;;  %v5141_v30 = vpack.c.bf16 %v448_v28, %v442_v27  ;;  %v455_v32 = vld [vmem:[#allocation11 + $0xc8] sm:$0xff]  ;;  %v461_v33 = vld [vmem:[#allocation11 + $0xf8] sm:$0xff]  ;;  %p6320_p0 = pnand %p6319_p13, %p6313_p10 }
 0x148   :  { %314 = vadd.xlane.f32.xlu0 %v6776_v4  ;;  %316 = vadd.xlane.f32.xlu1 %v6778_v5  ;;  %v5173_v34 = vpack.c.bf16 %v450_v31, %v444_v29  ;;  %v5143_v35 = vpack.c.bf16 %v461_v33, %v455_v32  ;;  %v457_v36 = vld [vmem:[#allocation11 + $0xd8] sm:$0xff]  ;;  %v463_v37 = vld [vmem:[#allocation11 + $0x108] sm:$0xff]  ;;  %v454_v38 = vld [vmem:[#allocation11 + $0xc0] sm:$0xff] }
 0x149   :  { %5140 = vmatprep.subr.bf16.mxu0 %v5139_v25  ;;  %5172 = vmatprep.subr.bf16.mxu1 %v5171_v26  ;;  %v5175_v39 = vpack.c.bf16 %v463_v37, %v457_v36  ;;  %v460_v40 = vld [vmem:[#allocation11 + $0xf0] sm:$0xff]  ;;  %v462_v42 = vld [vmem:[#allocation11 + $0x100] sm:$0xff]  ;;  %v473_v26 = vld [vmem:[#allocation11 + $0x158] sm:$0xff] }
 0x14a   :  { %v456_v41 = vld [vmem:[#allocation11 + $0xd0] sm:$0xff]  ;;  %5142 = vmatpush1.bf16.msra.mxu0 %v5141_v30  ;;  %v5145_v43 = vpack.c.bf16 %v460_v40, %v454_v38  ;;  %v469_v27 = vld [vmem:[#allocation11 + $0x138] sm:$0xff]  ;;  %v475_v29 = vld [vmem:[#allocation11 + $0x168] sm:$0xff] }
 0x14b   :  { %5174 = vmatpush1.bf16.msra.mxu1 %v5173_v34  ;;  %5144 = vmatprep.subr.bf16.mxu0 %v5143_v35  ;;  %v5177_v44 = vpack.c.bf16 %v462_v42, %v456_v41  ;;  %v466_v30 = vld [vmem:[#allocation11 + $0x120] sm:$0xff]  ;;  %v472_v31 = vld [vmem:[#allocation11 + $0x150] sm:$0xff]  ;;  %v5179_v32 = vpack.c.bf16 %v475_v29, %v469_v27  ;;  %v479_v37 = vld [vmem:[#allocation11 + $0x188] sm:$0xff] }
 0x14c   :  { %318 = vadd.xlane.f32.xlu0 %v6782_v6  ;;  %320 = vadd.xlane.f32.xlu1 %v6784_v7  ;;  %v5149_v33 = vpack.c.bf16 %v472_v31, %v466_v30  ;;  %v468_v34 = vld [vmem:[#allocation11 + $0x130] sm:$0xff]  ;;  %v474_v35 = vld [vmem:[#allocation11 + $0x160] sm:$0xff]  ;;  %v485_v38 = vld [vmem:[#allocation11 + $0x1b8] sm:$0xff] }
 0x14d   :  { %5176 = vmatprep.subr.bf16.mxu1 %v5175_v39  ;;  %v5181_v36 = vpack.c.bf16 %v474_v35, %v468_v34  ;;  %v481_v39 = vld [vmem:[#allocation11 + $0x198] sm:$0xff]  ;;  %v5151_v40 = vpack.c.bf16 %v485_v38, %v479_v37  ;;  %v487_v41 = vld [vmem:[#allocation11 + $0x1c8] sm:$0xff]  ;;  %v478_v42 = vld [vmem:[#allocation11 + $0x180] sm:$0xff] }
 0x14e   :  { %5146 = vmatpush1.bf16.msra.mxu0 %v5145_v43  ;;  %v484_v43 = vld [vmem:[#allocation11 + $0x1b0] sm:$0xff]  ;;  %v522_v30 = vld [vmem:[#allocation11 + $0x2e0] sm:$0xff] }
 0x14f   :  { %5178 = vmatpush1.bf16.msra.mxu1 %v5177_v44  ;;  %v5183_v44 = vpack.c.bf16 %v487_v41, %v481_v39  ;;  %v5153_v46 = vpack.c.bf16 %v484_v43, %v478_v42  ;;  %v516_v29 = vld [vmem:[#allocation11 + $0x2b0] sm:$0xff] }
 0x150   :  { %5180 = vmatprep.subr.bf16.mxu1 %v5179_v32  ;;  %v5197_v31 = vpack.c.bf16 %v522_v30, %v516_v29  ;;  %v435_v32 = vld [vmem:[#allocation11 + $0x28] sm:$0xff]  ;;  %v464_v30 = vld [vmem:[#allocation11 + $0x110] sm:$0xff] }
 0x153   :  { %5182 = vmatpush1.bf16.msra.mxu1 %v5181_v36 }
 0x154   :  { %5184 = vmatprep.subr.bf16.mxu1 %v5183_v44 }
 0x1cd   :  { %v307_v47 = vpop.xlane.xlu0 %306  ;;  %v311_v48 = vpop.xlane.xlu1 %310 }
 0x1ce   :  { %v322_v49 = vmul.f32 0.03125, %v307_v47  ;;  %v324_v50 = vmul.f32 0.03125, %v311_v48  ;;  %v480_v47 = vld [vmem:[#allocation11 + $0x190] sm:$0xff]  ;;  %v486_v48 = vld [vmem:[#allocation11 + $0x1c0] sm:$0xff] }
 0x1d0   :  { %v330_v52 = vsub.f32 %v6764_v0, %v322_v49  ;;  %v332_v53 = vsub.f32 %v6766_v1, %v324_v50  ;;  %v5185_v49 = vpack.c.bf16 %v486_v48, %v480_v47  ;;  %v491_v50 = vld [vmem:[#allocation11 + $0x1e8] sm:$0xff] }
 0x1d1   :  { %v309_v54 = vpop.xlane.xlu0 %308  ;;  %v313_v55 = vpop.xlane.xlu1 %312 }
 0x1d2   :  { %v323_v56 = vmul.f32 0.03125, %v309_v54  ;;  %v325_v57 = vmul.f32 0.03125, %v313_v55  ;;  %v6797_v58 = vmul.f32 %v6792_v51, %v330_v52  ;;  %v6800_v59 = vmul.f32 %v6792_v51, %v332_v53  ;;  %v497_v52 = vld [vmem:[#allocation11 + $0x218] sm:$0xff]  ;;  %5186 = vmatpush1.bf16.msra.mxu1 %v5185_v49  ;;  %v499_v55 = vld [vmem:[#allocation11 + $0x228] sm:$0xff] }
 0x1d3   :  { %v493_v53 = vld [vmem:[#allocation11 + $0x1f8] sm:$0xff]  ;;  %v5155_v54 = vpack.c.bf16 %v497_v52, %v491_v50 }
 0x1d4   :  { %v331_v60 = vsub.f32 %v6770_v2, %v323_v56  ;;  %v333_v61 = vsub.f32 %v6772_v3, %v325_v57  ;;  %v346_v62 = vmul.f32 %v6797_v58, %v6797_v58  ;;  %v348_v1 = vmul.f32 %v6800_v59, %v6800_v59  ;;  %v490_v56 = vld [vmem:[#allocation11 + $0x1e0] sm:$0xff]  ;;  %v496_v57 = vld [vmem:[#allocation11 + $0x210] sm:$0xff] }
 0x1d5   :  { %v315_v63 = vpop.xlane.xlu0 %314  ;;  %v317_v0 = vpop.xlane.xlu1 %316 }
 0x1d6   :  { %v326_v9 = vmul.f32 0.03125, %v315_v63  ;;  %354 = vadd.xlane.f32.xlu0 %v346_v62  ;;  %v327_v10 = vmul.f32 0.03125, %v317_v0  ;;  %v6809_v11 = vmul.f32 %v6792_v51, %v331_v60  ;;  %v6812_v12 = vmul.f32 %v6792_v51, %v333_v61  ;;  %v492_v62 = vld [vmem:[#allocation11 + $0x1f0] sm:$0xff]  ;;  %v498_v63 = vld [vmem:[#allocation11 + $0x220] sm:$0xff] }
 0x1d7   :  { %v5187_v60 = vpack.c.bf16 %v499_v55, %v493_v53  ;;  %v5157_v61 = vpack.c.bf16 %v496_v57, %v490_v56  ;;  %v5189_v0 = vpack.c.bf16 %v498_v63, %v492_v62  ;;  %v434_v63 = vld [vmem:[#allocation11 + $0x20] sm:$0xff] }
 0x1d8   :  { %v334_v2 = vsub.f32 %v6776_v4, %v326_v9  ;;  %v335_v3 = vsub.f32 %v6778_v5, %v327_v10  ;;  %v347_v13 = vmul.f32 %v6809_v11, %v6809_v11  ;;  %v349_v16 = vmul.f32 %v6812_v12, %v6812_v12  ;;  %v509_v9 = vld [vmem:[#allocation11 + $0x278] sm:$0xff] }
 0x1d9   :  { %v319_v14 = vpop.xlane.xlu0 %318  ;;  %v321_v15 = vpop.xlane.xlu1 %320  ;;  %5188 = vmatprep.subr.bf16.mxu1 %v5187_v60  ;;  %v505_v10 = vld [vmem:[#allocation11 + $0x258] sm:$0xff] }
 0x1da   :  { %v328_v17 = vmul.f32 0.03125, %v319_v14  ;;  %358 = vadd.xlane.f32.xlu0 %v348_v1  ;;  %356 = vadd.xlane.f32.xlu1 %v347_v13  ;;  %v329_v18 = vmul.f32 0.03125, %v321_v15  ;;  %v6821_v19 = vmul.f32 %v6792_v51, %v334_v2  ;;  %v6824_v20 = vmul.f32 %v6792_v51, %v335_v3  ;;  %v503_v1 = vld [vmem:[#allocation11 + $0x248] sm:$0xff]  ;;  %v502_v13 = vld [vmem:[#allocation11 + $0x240] sm:$0xff]  ;;  %v508_v14 = vld [vmem:[#allocation11 + $0x270] sm:$0xff] }
 0x1db   :  { %5190 = vmatpush1.bf16.msra.mxu1 %v5189_v0  ;;  %v5159_v2 = vpack.c.bf16 %v509_v9, %v503_v1  ;;  %v511_v3 = vld [vmem:[#allocation11 + $0x288] sm:$0xff]  ;;  %v6842_v60 = vld [vmem:[#allocation8] ss:$0 sm:$0xff]  ;;  %v440_v0 = vld [vmem:[#allocation11 + $0x50] sm:$0xff] }
 0x1dc   :  { %v336_v4 = vsub.f32 %v6782_v6, %v328_v17  ;;  %v337_v5 = vsub.f32 %v6784_v7, %v329_v18  ;;  %v350_v21 = vmul.f32 %v6821_v19, %v6821_v19  ;;  %v351_v22 = vmul.f32 %v6824_v20, %v6824_v20  ;;  %v467_v7 = vld [vmem:[#allocation11 + $0x128] sm:$0xff]  ;;  %v504_v17 = vld [vmem:[#allocation11 + $0x250] sm:$0xff]  ;;  %v510_v18 = vld [vmem:[#allocation11 + $0x280] sm:$0xff] }
 0x1dd   :  { %v5147_v28 = vpack.c.bf16 %v473_v26, %v467_v7  ;;  %v5191_v15 = vpack.c.bf16 %v511_v3, %v505_v10  ;;  %v514_v7 = vld [vmem:[#allocation11 + $0x2a0] sm:$0xff]  ;;  %v520_v26 = vld [vmem:[#allocation11 + $0x2d0] sm:$0xff]  ;;  %v6845_v1 = vld [vmem:[#allocation10] ss:$0 sm:$0xff] }
 0x1de   :  { %360 = vadd.xlane.f32.xlu1 %v349_v16  ;;  %362 = vadd.xlane.f32.xlu0 %v350_v21  ;;  %v6833_v23 = vmul.f32 %v6792_v51, %v336_v4  ;;  %v6836_v24 = vmul.f32 %v6792_v51, %v337_v5  ;;  %v5161_v16 = vpack.c.bf16 %v508_v14, %v502_v13  ;;  %v515_v5 = vld [vmem:[#allocation11 + $0x2a8] sm:$0xff]  ;;  %v521_v21 = vld [vmem:[#allocation11 + $0x2d8] sm:$0xff] }
 0x1df   :  { %5148 = vmatprep.subr.bf16.mxu0 %v5147_v28  ;;  %v5193_v4 = vpack.c.bf16 %v510_v18, %v504_v17  ;;  %5192 = vmatprep.subr.bf16.mxu1 %v5191_v15  ;;  %v5165_v28 = vpack.c.bf16 %v520_v26, %v514_v7  ;;  %v447_v9 = vld [vmem:[#allocation11 + $0x88] sm:$0xff]  ;;  %v453_v10 = vld [vmem:[#allocation11 + $0xb8] sm:$0xff]  ;;  %v5201_v15 = vpack.c.bf16 %v440_v0, %v434_v63 }
 0x1e0   :  { %v352_v25 = vmul.f32 %v6833_v23, %v6833_v23  ;;  %v353_v6 = vmul.f32 %v6836_v24, %v6836_v24  ;;  %5150 = vmatpush1.bf16.msra.mxu0 %v5149_v33  ;;  %v441_v33 = vld [vmem:[#allocation11 + $0x58] sm:$0xff]  ;;  %v507_v0 = vld [vmem:[#allocation11 + $0x268] sm:$0xff] }
 0x1e1   :  { %5152 = vmatprep.subr.bf16.mxu0 %v5151_v40  ;;  %5194 = vmatpush1.bf16.msra.mxu1 %v5193_v4  ;;  %v5199_v34 = vpack.c.bf16 %v441_v33, %v435_v32  ;;  %v5203_v4 = vpack.c.bf16 %v453_v10, %v447_v9  ;;  %v471_v32 = vld [vmem:[#allocation11 + $0x148] sm:$0xff]  ;;  %v477_v33 = vld [vmem:[#allocation11 + $0x178] sm:$0xff] }
 0x1e2   :  { %364 = vadd.xlane.f32.xlu1 %v351_v22  ;;  %366 = vadd.xlane.f32.xlu0 %v352_v25  ;;  %v517_v22 = vld [vmem:[#allocation11 + $0x2b8] sm:$0xff]  ;;  %v5163_v25 = vpack.c.bf16 %v521_v21, %v515_v5  ;;  %v452_v5 = vld [vmem:[#allocation11 + $0xb0] sm:$0xff]  ;;  %v459_v21 = vld [vmem:[#allocation11 + $0xe8] sm:$0xff] }
 0x1e3   :  { %v513_v9 = vld [vmem:[#allocation11 + $0x298] sm:$0xff] }
 0x1e4   :  { %5154 = vmatpush1.bf16.msra.mxu0 %v5153_v46 }
 0x1e5   :  { %5156 = vmatprep.subr.bf16.mxu0 %v5155_v54 }
 0x1e6   :  { %368 = vadd.xlane.f32.xlu1 %v353_v6  ;;  %v523_v6 = vld [vmem:[#allocation11 + $0x2e8] sm:$0xff] }
 0x1e7   :  { %v5195_v27 = vpack.c.bf16 %v523_v6, %v517_v22  ;;  %v465_v22 = vld [vmem:[#allocation11 + $0x118] sm:$0xff] }
 0x1e8   :  { %5158 = vmatpush1.bf16.msra.mxu0 %v5157_v61 }
 0x1e9   :  { %5160 = vmatprep.subr.bf16.mxu0 %v5159_v2  ;;  %5196 = vmatprep.subr.bf16.mxu1 %v5195_v27 }
 0x1ea   :  { %5198 = vmatpush1.bf16.msra.mxu1 %v5197_v31 }
 0x1ec   :  { %5162 = vmatpush1.bf16.msra.mxu0 %v5161_v16  ;;  %v446_v16 = vld [vmem:[#allocation11 + $0x80] sm:$0xff] }
 0x1ed   :  { %5164 = vmatprep.subr.bf16.mxu0 %v5163_v25  ;;  %v5205_v27 = vpack.c.bf16 %v452_v5, %v446_v16 }
 0x1f0   :  { %5166 = vmatpush1.bf16.msra.mxu0 %v5165_v28  ;;  %v458_v28 = vld [vmem:[#allocation11 + $0xe0] sm:$0xff] }
 0x1f1   :  { %5200 = vmatprep.subr.bf16.mxu0 %v5199_v34 }
 0x263   :  { %v355_v35 = vpop.xlane.xlu0 %354 }
 0x264   :  { %v370_v36 = vmul.f32 0.03125, %v355_v35  ;;  %v5209_v35 = vpack.c.bf16 %v464_v30, %v458_v28 }
 0x266   :  { %v378_v37 = vadd.f32 1e-12, %v370_v36  ;;  %v5211_v36 = vpack.c.bf16 %v477_v33, %v471_v32 }
 0x267   :  { %v357_v38 = vpop.xlane.xlu1 %356  ;;  %v359_v39 = vpop.xlane.xlu0 %358 }
 0x268   :  { %5690 = vrsqrt.f32 %v378_v37  ;;  %v371_v40 = vmul.f32 0.03125, %v357_v38  ;;  %v372_v41 = vmul.f32 0.03125, %v359_v39  ;;  %v470_v37 = vld [vmem:[#allocation11 + $0x140] sm:$0xff]  ;;  %v476_v39 = vld [vmem:[#allocation11 + $0x170] sm:$0xff] }
 0x26a   :  { %v379_v42 = vadd.f32 1e-12, %v371_v40  ;;  %v380_v43 = vadd.f32 1e-12, %v372_v41  ;;  %v483_v41 = vld [vmem:[#allocation11 + $0x1a8] sm:$0xff] }
 0x26b   :  { %v361_v44 = vpop.xlane.xlu1 %360  ;;  %v363_v46 = vpop.xlane.xlu0 %362 }
 0x26c   :  { %5692 = vrsqrt.f32 %v379_v42  ;;  %v373_v47 = vmul.f32 0.03125, %v361_v44  ;;  %v374_v48 = vmul.f32 0.03125, %v363_v46  ;;  %v489_v42 = vld [vmem:[#allocation11 + $0x1d8] sm:$0xff]  ;;  %v5213_v44 = vpack.c.bf16 %v476_v39, %v470_v37 }
 0x26d   :  { %5694 = vrsqrt.f32 %v380_v43  ;;  %v5215_v46 = vpack.c.bf16 %v489_v42, %v483_v41 }
 0x26e   :  { %v381_v49 = vadd.f32 1e-12, %v373_v47  ;;  %v382_v50 = vadd.f32 1e-12, %v374_v48  ;;  %v482_v47 = vld [vmem:[#allocation11 + $0x1a0] sm:$0xff] }
 0x26f   :  { %v365_v52 = vpop.xlane.xlu1 %364  ;;  %v367_v53 = vpop.xlane.xlu0 %366 }
 0x270   :  { %5696 = vrsqrt.f32 %v381_v49  ;;  %v375_v54 = vmul.f32 0.03125, %v365_v52  ;;  %v376_v57 = vmul.f32 0.03125, %v367_v53  ;;  %v488_v49 = vld [vmem:[#allocation11 + $0x1d0] sm:$0xff]  ;;  %v495_v52 = vld [vmem:[#allocation11 + $0x208] sm:$0xff]  ;;  %v501_v53 = vld [vmem:[#allocation11 + $0x238] sm:$0xff] }
 0x271   :  { %5698 = vrsqrt.f32 %v382_v50 }
 0x272   :  { %v5691_v55 = vpop.eup %5690  ;;  %v383_v56 = vadd.f32 1e-12, %v375_v54  ;;  %v384_v13 = vadd.f32 1e-12, %v376_v57  ;;  %v494_v57 = vld [vmem:[#allocation11 + $0x200] sm:$0xff] }
 0x273   :  { %v369_v61 = vpop.xlane.xlu1 %368  ;;  %v394_v62 = vmul.f32 %v5691_v55, %v6797_v58  ;;  %v5217_v55 = vpack.c.bf16 %v488_v49, %v482_v47 }
 0x274   :  { %5700 = vrsqrt.f32 %v383_v56  ;;  %v377_v14 = vmul.f32 0.03125, %v369_v61  ;;  %v5219_v56 = vpack.c.bf16 %v501_v53, %v495_v52 }
 0x275   :  { %v408_v2 = vmul.f32 %v6842_v60, %v394_v62  ;;  %5702 = vrsqrt.f32 %v384_v13  ;;  %v500_v62 = vld [vmem:[#allocation11 + $0x230] sm:$0xff] }
 0x276   :  { %v5693_v3 = vpop.eup %5692  ;;  %v385_v26 = vadd.f32 1e-12, %v377_v14  ;;  %v506_v14 = vld [vmem:[#allocation11 + $0x260] sm:$0xff] }
 0x277   :  { %v5695_v17 = vpop.eup %5694  ;;  %v6849_v18 = vadd.f32 %v6845_v1, %v408_v2  ;;  %v395_v58 = vmul.f32 %v5693_v3, %v6809_v11  ;;  %v5207_v11 = vpack.c.bf16 %v465_v22, %v459_v21  ;;  %v5221_v2 = vpack.c.bf16 %v500_v62, %v494_v57 }
 0x278   :  { %v396_v25 = vmul.f32 %v5695_v17, %v6800_v59  ;;  %5704 = vrsqrt.f32 %v385_v26  ;;  %v5223_v3 = vpack.c.bf16 %v513_v9, %v507_v0  ;;  %v519_v17 = vld [vmem:[#allocation11 + $0x2c8] sm:$0xff]  ;;  %v6936_v26 = vld [vmem:[#allocation13] sm:$0x3f] }
 0x279   :  { %623 = vmatmul.mubr.f32.vlgmr.msra.gmra.mrb[0].mxu0 %v6849_v18  ;;  %736 = vmatmul.mubr.f32.vlgmr.msra.gmra.mrb[0].mxu1 %v6849_v18  ;;  %v409_v6 = vmul.f32 %v6842_v60, %v395_v58  ;;  %v525_v58 = vld [vmem:[#allocation11 + $0x2f8] sm:$0xff] }
 0x27a   :  { %v5697_v7 = vpop.eup %5696  ;;  %5202 = vmatpush1.bf16.msra.mxu0 %v5201_v15  ;;  %628 = vmatprep.mubr.f32.mxu0 %v6379_v8  ;;  %v410_v59 = vmul.f32 %v6842_v60, %v396_v25  ;;  %v512_v15 = vld [vmem:[#allocation11 + $0x290] sm:$0xff]  ;;  %v5227_v22 = vpack.c.bf16 %v525_v58, %v519_v17 }
 0x27b   :  { %741 = vmatprep.mubr.f32.mxu1 %v6379_v8  ;;  %v6859_v29 = vadd.f32 %v6845_v1, %v409_v6  ;;  %5204 = vmatprep.subr.bf16.mxu0 %v5203_v4  ;;  %v397_v31 = vmul.f32 %v5697_v7, %v6812_v12  ;;  %v5699_v34 = vpop.eup %5698  ;;  %v5225_v4 = vpack.c.bf16 %v512_v15, %v506_v14  ;;  %v524_v25 = vld [vmem:[#allocation11 + $0x2f0] sm:$0xff] }
 0x27c   :  { %v6868_v38 = vadd.f32 %v6845_v1, %v410_v59  ;;  %v398_v40 = vmul.f32 %v5699_v34, %v6821_v19 }
 0x27d   :  { %629 = vmatmul.mubr.f32.gmra.mrb[2].mxu0 %v6859_v29  ;;  %742 = vmatmul.mubr.f32.gmra.mrb[2].mxu1 %v6859_v29  ;;  %v411_v12 = vmul.f32 %v6842_v60, %v397_v31 }
 0x27e   :  { %5206 = vmatpush1.bf16.msra.mxu0 %v5205_v27  ;;  %634 = vmatprep.mubr.f32.mxu0 %v6379_v8  ;;  %v5701_v43 = vpop.eup %5700  ;;  %v412_v19 = vmul.f32 %v6842_v60, %v398_v40 }
 0x27f   :  { %747 = vmatprep.mubr.f32.mxu1 %v6379_v8  ;;  %5208 = vmatprep.subr.bf16.mxu0 %v5207_v11  ;;  %v6877_v48 = vadd.f32 %v6845_v1, %v411_v12  ;;  %v399_v50 = vmul.f32 %v5701_v43, %v6824_v20  ;;  %v5703_v54 = vpop.eup %5702 }
 0x280   :  { %v6886_v61 = vadd.f32 %v6845_v1, %v412_v19  ;;  %v400_v63 = vmul.f32 %v5703_v54, %v6833_v23 }
 0x281   :  { %635 = vmatmul.mubr.f32.gmra.mrb[4].mxu0 %v6868_v38  ;;  %748 = vmatmul.mubr.f32.gmra.mrb[4].mxu1 %v6868_v38  ;;  %v413_v20 = vmul.f32 %v6842_v60, %v399_v50 }
 0x282   :  { %5210 = vmatpush1.bf16.msra.mxu0 %v5209_v35  ;;  %640 = vmatprep.mubr.f32.mxu0 %v6379_v8  ;;  %v5705_v10 = vpop.eup %5704  ;;  %v414_v23 = vmul.f32 %v6842_v60, %v400_v63 }
 0x283   :  { %753 = vmatprep.mubr.f32.mxu1 %v6379_v8  ;;  %5212 = vmatprep.subr.bf16.mxu0 %v5211_v36  ;;  %v6895_v13 = vadd.f32 %v6845_v1, %v413_v20  ;;  %v401_v16 = vmul.f32 %v5705_v10, %v6836_v24  ;;  %v518_v24 = vld [vmem:[#allocation11 + $0x2c0] sm:$0xff] }
 0x284   :  { %v6904_v5 = vadd.f32 %v6845_v1, %v414_v23  ;;  %v5229_v6 = vpack.c.bf16 %v524_v25, %v518_v24 }
 0x285   :  { %641 = vmatmul.mubr.f32.gmra.mrb[6].mxu0 %v6877_v48  ;;  %754 = vmatmul.mubr.f32.gmra.mrb[6].mxu1 %v6877_v48  ;;  %v415_v21 = vmul.f32 %v6842_v60, %v401_v16  ;;  %v6933_v60 = vshrl.u32 %v283_v45, 7 }
 0x286   :  { %5214 = vmatpush1.bf16.msra.mxu0 %v5213_v44  ;;  %646 = vmatprep.mubr.f32.mxu0 %v6379_v8 }
 0x287   :  { %759 = vmatprep.mubr.f32.mxu1 %v6379_v8  ;;  %5216 = vmatprep.subr.bf16.mxu0 %v5215_v46  ;;  %v6912_v7 = vadd.f32 %v6845_v1, %v415_v21  ;;  %v530_v1 = vsub.s32 0, %v6933_v60  ;;  %v534_v27 = vsub.s32 1, %v6933_v60  ;;  %v538_v28 = vsub.s32 2, %v6933_v60 }
 0x288   :  { %v542_v45 = vsub.s32 3, %v6933_v60 }
 0x289   :  { %647 = vmatmul.mubr.f32.gmra.mrb[8].mxu0 %v6886_v61  ;;  %760 = vmatmul.mubr.f32.gmra.mrb[8].mxu1 %v6886_v61  ;;  %v6942_v11 = vrot.slane %v6936_v26, %v530_v1  ;;  %v6948_v59 = vrot.slane %v6936_v26, %v534_v27  ;;  %v6955_v33 = vrot.slane %v6936_v26, %v538_v28 }
 0x28a   :  { %5218 = vmatpush1.bf16.msra.mxu0 %v5217_v55  ;;  %652 = vmatprep.mubr.f32.mxu0 %v6379_v8  ;;  %v6961_v37 = vrot.slane %v6936_v26, %v542_v45 }
 0x28b   :  { %765 = vmatprep.mubr.f32.mxu1 %v6379_v8  ;;  %5220 = vmatprep.subr.bf16.mxu0 %v5219_v56 }
 0x28d   :  { %653 = vmatmul.mubr.f32.gmra.mrb[10].mxu0 %v6895_v13  ;;  %766 = vmatmul.mubr.f32.gmra.mrb[10].mxu1 %v6895_v13 }
 0x28e   :  { %5222 = vmatpush1.bf16.msra.mxu0 %v5221_v2  ;;  %658 = vmatprep.mubr.f32.mxu0 %v6379_v8 }
 0x28f   :  { %771 = vmatprep.mubr.f32.mxu1 %v6379_v8  ;;  %5224 = vmatprep.subr.bf16.mxu0 %v5223_v3 }
 0x291   :  { %659 = vmatmul.mubr.f32.gmra.mrb[12].mxu0 %v6904_v5  ;;  %772 = vmatmul.mubr.f32.gmra.mrb[12].mxu1 %v6904_v5 }
 0x292   :  { %5226 = vmatpush1.bf16.msra.mxu0 %v5225_v4  ;;  %664 = vmatprep.mubr.f32.mxu0 %v6379_v8 }
 0x293   :  { %777 = vmatprep.mubr.f32.mxu1 %v6379_v8  ;;  %5228 = vmatprep.subr.bf16.mxu0 %v5227_v22 }
 0x295   :  { %665 = vmatmul.mubr.f32.gmra.mrb[14].mxu0 %v6912_v7  ;;  %778 = vmatmul.mubr.f32.gmra.mrb[14].mxu1 %v6912_v7 }
 0x296   :  { %5230 = vmatpush1.bf16.msra.mxu0 %v5229_v6  ;;  %848 = vmatprep.mubr.f32.mxu0 %v6379_v8 }
 0x299   :  { %849 = vmatmul.mubr.f32.vlgmr.msra.gmra.mrb[16].mxu0 %v6849_v18 }
 0x29a   :  { %854 = vmatprep.mubr.f32.mxu0 %v6379_v8 }
 0x29d   :  { %855 = vmatmul.mubr.f32.gmra.mrb[18].mxu0 %v6859_v29 }
 0x29e   :  { %860 = vmatprep.mubr.f32.mxu0 %v6379_v8 }
 0x2a1   :  { %861 = vmatmul.mubr.f32.gmra.mrb[20].mxu0 %v6868_v38 }
 0x2a2   :  { %866 = vmatprep.mubr.f32.mxu0 %v6379_v8 }
 0x2a5   :  { %867 = vmatmul.mubr.f32.gmra.mrb[22].mxu0 %v6877_v48 }
 0x2a6   :  { %872 = vmatprep.mubr.f32.mxu0 %v6379_v8 }
 0x2a9   :  { %873 = vmatmul.mubr.f32.gmra.mrb[24].mxu0 %v6886_v61 }
 0x2aa   :  { %878 = vmatprep.mubr.f32.mxu0 %v6379_v8 }
 0x2ad   :  { %879 = vmatmul.mubr.f32.gmra.mrb[26].mxu0 %v6895_v13 }
 0x2ae   :  { %884 = vmatprep.mubr.f32.mxu0 %v6379_v8 }
 0x2b1   :  { %885 = vmatmul.mubr.f32.gmra.mrb[28].mxu0 %v6904_v5 }
 0x2b2   :  { %890 = vmatprep.mubr.f32.mxu0 %v6379_v8 }
 0x2b5   :  { %891 = vmatmul.mubr.f32.gmra.mrb[30].mxu0 %v6912_v7 }
 0x34c   :  { %v624_v30 = vpop.f32.mrb[0].mxu0  ;;  %v737_v31 = vpop.f32.mrb[0].mxu1 }
 0x34d   :  { %v625_v32 = vadd.f32 %v624_v30, %v6942_v11  ;;  %v626_v34 = vpop.f32.mrb[1].mxu0  ;;  %v739_v35 = vpop.f32.mrb[1].mxu1  ;;  %v738_v40 = vadd.f32 %v737_v31, %v6955_v33 }
 0x34e   :  { %v627_v36 = vadd.f32 %v626_v34, %v6948_v59  ;;  %v740_v44 = vadd.f32 %v739_v35, %v6961_v37 }
 0x34f   :  { %4732 = vmatprep.mubr.f32.mxu1 %v625_v32 }
 0x350   :  { %v6963_v12 = vpop.f32.mrb[2].mxu0  ;;  %v743_v39 = vpop.f32.mrb[2].mxu1  ;;  %4788 = vmatprep.mubr.f32.mxu0 %v627_v36 }
 0x351   :  { %v744_v41 = vadd.f32 %v743_v39, %v6955_v33  ;;  %v6967_v42 = vpop.f32.mrb[3].mxu0  ;;  %v745_v43 = vpop.f32.mrb[3].mxu1 }
 0x352   :  { %v746_v46 = vadd.f32 %v745_v43, %v6961_v37 }
 0x353   :  { %v5231_v47 = vpack.c.bf16 %v744_v41, %v738_v40 }
 0x354   :  { %v5263_v19 = vpack.c.bf16 %v746_v46, %v740_v44  ;;  %v6971_v49 = vpop.f32.mrb[4].mxu0  ;;  %v749_v50 = vpop.f32.mrb[4].mxu1  ;;  %v546_v44 = vsub.s32 4, %v6933_v60 }
 0x355   :  { %v6973_v52 = vpop.f32.mrb[5].mxu0  ;;  %v751_v53 = vpop.f32.mrb[5].mxu1  ;;  %5232 = vmatprep.subr.bf16.mxu1 %v5231_v47  ;;  %v750_v56 = vadd.f32 %v749_v50, %v6955_v33 }
 0x356   :  { %5234 = vmatpush3.bf16.xpose.msra.mxu1 %v5231_v47  ;;  %5264 = vmatprep.subr.bf16.mxu0 %v5263_v19  ;;  %v752_v63 = vadd.f32 %v751_v53, %v6961_v37 }
 0x357   :  { %5266 = vmatpush3.bf16.xpose.msra.mxu0 %v5263_v19  ;;  %v550_v19 = vsub.s32 5, %v6933_v60 }
 0x358   :  { %v6975_v54 = vpop.f32.mrb[6].mxu0  ;;  %v755_v55 = vpop.f32.mrb[6].mxu1 }
 0x359   :  { %v756_v57 = vadd.f32 %v755_v55, %v6955_v33  ;;  %v6979_v20 = vpop.f32.mrb[7].mxu0  ;;  %v757_v62 = vpop.f32.mrb[7].mxu1 }
 0x35a   :  { %v758_v0 = vadd.f32 %v757_v62, %v6961_v37 }
 0x35b   :  { %v5235_v9 = vpack.c.bf16 %v756_v57, %v750_v56  ;;  %v7012_v56 = vrot.slane %v6936_v26, %v546_v44  ;;  %v7017_v57 = vrot.slane %v6936_v26, %v550_v19  ;;  %v637_v26 = vadd.f32 %v6971_v49, %v6942_v11 }
 0x35c   :  { %v5267_v10 = vpack.c.bf16 %v758_v0, %v752_v63  ;;  %v6983_v2 = vpop.f32.mrb[8].mxu0  ;;  %v761_v3 = vpop.f32.mrb[8].mxu1 }
 0x35d   :  { %v6985_v23 = vpop.f32.mrb[9].mxu0  ;;  %v763_v14 = vpop.f32.mrb[9].mxu1  ;;  %5236 = vmatprep.subr.bf16.mxu1 %v5235_v9  ;;  %v762_v17 = vadd.f32 %v761_v3, %v6955_v33  ;;  %v631_v3 = vadd.f32 %v6963_v12, %v6942_v11  ;;  %v643_v12 = vadd.f32 %v6975_v54, %v6942_v11  ;;  %v649_v49 = vadd.f32 %v6983_v2, %v6942_v11 }
 0x35e   :  { %5238 = vmatpush3.bf16.xpose.msra.mxu1 %v5235_v9  ;;  %5268 = vmatprep.subr.bf16.mxu0 %v5267_v10  ;;  %v764_v22 = vadd.f32 %v763_v14, %v6961_v37 }
 0x35f   :  { %5270 = vmatpush3.bf16.xpose.msra.mxu0 %v5267_v10 }
 0x360   :  { %v6987_v15 = vpop.f32.mrb[10].mxu0  ;;  %v767_v16 = vpop.f32.mrb[10].mxu1 }
 0x361   :  { %v768_v58 = vadd.f32 %v767_v16, %v6955_v33  ;;  %v6991_v4 = vpop.f32.mrb[11].mxu0  ;;  %v769_v21 = vpop.f32.mrb[11].mxu1  ;;  %v655_v2 = vadd.f32 %v6987_v15, %v6942_v11 }
 0x362   :  { %v770_v24 = vadd.f32 %v769_v21, %v6961_v37 }
 0x363   :  { %v5239_v25 = vpack.c.bf16 %v768_v58, %v762_v17  ;;  %v633_v58 = vadd.f32 %v6967_v42, %v6948_v59  ;;  %v645_v42 = vadd.f32 %v6979_v20, %v6948_v59 }
 0x364   :  { %v5271_v6 = vpack.c.bf16 %v770_v24, %v764_v22  ;;  %v6995_v30 = vpop.f32.mrb[12].mxu0  ;;  %v773_v31 = vpop.f32.mrb[12].mxu1  ;;  %v639_v22 = vadd.f32 %v6973_v52, %v6948_v59 }
 0x365   :  { %v6997_v32 = vpop.f32.mrb[13].mxu0  ;;  %v775_v34 = vpop.f32.mrb[13].mxu1  ;;  %5240 = vmatprep.subr.bf16.mxu1 %v5239_v25  ;;  %v774_v39 = vadd.f32 %v773_v31, %v6955_v33  ;;  %v661_v20 = vadd.f32 %v6995_v30, %v6942_v11 }
 0x366   :  { %5242 = vmatpush3.bf16.xpose.msra.mxu1 %v5239_v25  ;;  %5272 = vmatprep.subr.bf16.mxu0 %v5271_v6  ;;  %v776_v46 = vadd.f32 %v775_v34, %v6961_v37  ;;  %v651_v34 = vadd.f32 %v6985_v23, %v6948_v59  ;;  %v663_v23 = vadd.f32 %v6997_v32, %v6948_v59 }
 0x367   :  { %5274 = vmatpush3.bf16.xpose.msra.mxu0 %v5271_v6 }
 0x368   :  { %v6999_v35 = vpop.f32.mrb[14].mxu0  ;;  %v779_v36 = vpop.f32.mrb[14].mxu1 }
 0x369   :  { %v780_v40 = vadd.f32 %v779_v36, %v6955_v33  ;;  %v7003_v41 = vpop.f32.mrb[15].mxu0  ;;  %v781_v43 = vpop.f32.mrb[15].mxu1  ;;  %v667_v30 = vadd.f32 %v6999_v35, %v6942_v11 }
 0x36a   :  { %v782_v47 = vadd.f32 %v781_v43, %v6961_v37  ;;  %v657_v43 = vadd.f32 %v6991_v4, %v6948_v59 }
 0x36b   :  { %v5243_v50 = vpack.c.bf16 %v780_v40, %v774_v39 }
 0x36c   :  { %v5275_v53 = vpack.c.bf16 %v782_v47, %v776_v46  ;;  %v850_v55 = vpop.f32.mrb[16].mxu0 }
 0x36d   :  { %v852_v33 = vpop.f32.mrb[17].mxu0  ;;  %5244 = vmatprep.subr.bf16.mxu1 %v5243_v50  ;;  %v851_v62 = vadd.f32 %v850_v55, %v7012_v56 }
 0x36e   :  { %5246 = vmatpush3.bf16.xpose.msra.mxu1 %v5243_v50  ;;  %5276 = vmatprep.subr.bf16.mxu0 %v5275_v53  ;;  %v853_v9 = vadd.f32 %v852_v33, %v7017_v57  ;;  %v669_v50 = vadd.f32 %v7003_v41, %v6948_v59 }
 0x36f   :  { %5278 = vmatpush3.bf16.xpose.msra.mxu0 %v5275_v53 }
 0x370   :  { %v856_v37 = vpop.f32.mrb[18].mxu0 }
 0x371   :  { %v857_v63 = vadd.f32 %v856_v37, %v7012_v56  ;;  %v858_v0 = vpop.f32.mrb[19].mxu0 }
 0x372   :  { %v859_v10 = vadd.f32 %v858_v0, %v7017_v57 }
 0x373   :  { %v5247_v14 = vpack.c.bf16 %v857_v63, %v851_v62 }
 0x374   :  { %v7027_v16 = vpack.c.bf16 %v859_v10, %v853_v9  ;;  %v862_v17 = vpop.f32.mrb[20].mxu0 }
 0x375   :  { %v864_v21 = vpop.f32.mrb[21].mxu0  ;;  %4733 = vmatmul.mubr.f32.vlgmr.msra.gmra.mrb[16].mxu1 %v631_v3  ;;  %5248 = vmatprep.subr.bf16.mxu1 %v5247_v14  ;;  %v863_v6 = vadd.f32 %v862_v17, %v7012_v56 }
 0x376   :  { %v865_v24 = vadd.f32 %v864_v21, %v7017_v57  ;;  %4735 = vmatprep.mubr.f32.mxu1 %v637_v26  ;;  %5250 = vmatpush3.bf16.msra.mxu1 %v5247_v14  ;;  %v289_v26 = vld [vmem:[#allocation5 + $0x8] sm:$0xff]  ;;  %v288_v21 = vld [vmem:[#allocation5] sm:$0xff] }
 0x377   :  { %4789 = vmatmul.mubr.f32.vlgmr.msra.gmra.mrb[32].mxu0 %v633_v58 }
 0x378   :  { %4791 = vmatprep.mubr.f32.mxu0 %v639_v22  ;;  %v868_v25 = vpop.f32.mrb[22].mxu0 }
 0x379   :  { %v869_v52 = vadd.f32 %v868_v25, %v7012_v56  ;;  %v870_v31 = vpop.f32.mrb[23].mxu0  ;;  %4736 = vmatmul.mubr.f32.gmra.mrb[18].mxu1 %v643_v12  ;;  %v291_v25 = vld [vmem:[#allocation5 + $0x18] sm:$0xff] }
 0x37a   :  { %v871_v54 = vadd.f32 %v870_v31, %v7017_v57  ;;  %4738 = vmatprep.mubr.f32.mxu1 %v649_v49  ;;  %v290_v31 = vld [vmem:[#allocation5 + $0x10] sm:$0xff] }
 0x37b   :  { %v5251_v36 = vpack.c.bf16 %v869_v52, %v863_v6  ;;  %4792 = vmatmul.mubr.f32.gmra.mrb[34].mxu0 %v645_v42 }
 0x37c   :  { %v7049_v39 = vpack.c.bf16 %v871_v54, %v865_v24  ;;  %4794 = vmatprep.mubr.f32.mxu0 %v651_v34  ;;  %v874_v40 = vpop.f32.mrb[24].mxu0 }
 0x37d   :  { %v876_v46 = vpop.f32.mrb[25].mxu0  ;;  %4739 = vmatmul.mubr.f32.gmra.mrb[20].mxu1 %v655_v2  ;;  %5252 = vmatprep.subr.bf16.mxu1 %v5251_v36  ;;  %v875_v4 = vadd.f32 %v874_v40, %v7012_v56 }
 0x37e   :  { %v877_v15 = vadd.f32 %v876_v46, %v7017_v57  ;;  %4741 = vmatprep.mubr.f32.mxu1 %v661_v20  ;;  %5254 = vmatpush3.bf16.msra.mxu1 %v5251_v36  ;;  %v293_v46 = vld [vmem:[#allocation5 + $0x28] sm:$0xff] }
 0x37f   :  { %4795 = vmatmul.mubr.f32.gmra.mrb[36].mxu0 %v657_v43 }
 0x380   :  { %4797 = vmatprep.mubr.f32.mxu0 %v663_v23  ;;  %v880_v47 = vpop.f32.mrb[26].mxu0 }
 0x381   :  { %v881_v53 = vadd.f32 %v880_v47, %v7012_v56  ;;  %v882_v55 = vpop.f32.mrb[27].mxu0  ;;  %4742 = vmatmul.mubr.f32.gmra.mrb[22].mxu1 %v667_v30  ;;  %v292_v47 = vld [vmem:[#allocation5 + $0x20] sm:$0xff] }
 0x382   :  { %v883_v32 = vadd.f32 %v882_v55, %v7017_v57 }
 0x383   :  { %v5255_v33 = vpack.c.bf16 %v881_v53, %v875_v4  ;;  %4798 = vmatmul.mubr.f32.gmra.mrb[38].mxu0 %v669_v50 }
 0x384   :  { %v7063_v37 = vpack.c.bf16 %v883_v32, %v877_v15  ;;  %v886_v62 = vpop.f32.mrb[28].mxu0 }
 0x385   :  { %v888_v11 = vpop.f32.mrb[29].mxu0  ;;  %5256 = vmatprep.subr.bf16.mxu1 %v5255_v33  ;;  %v887_v59 = vadd.f32 %v886_v62, %v7012_v56 }
 0x386   :  { %v889_v35 = vadd.f32 %v888_v11, %v7017_v57  ;;  %5258 = vmatpush3.bf16.msra.mxu1 %v5255_v33  ;;  %v295_v11 = vld [vmem:[#allocation5 + $0x38] sm:$0xff] }
 0x388   :  { %v892_v63 = vpop.f32.mrb[30].mxu0 }
 0x389   :  { %v893_v41 = vadd.f32 %v892_v63, %v7012_v56  ;;  %v894_v0 = vpop.f32.mrb[31].mxu0 }
 0x38a   :  { %v895_v9 = vadd.f32 %v894_v0, %v7017_v57  ;;  %v294_v0 = vld [vmem:[#allocation5 + $0x30] sm:$0xff] }
 0x38b   :  { %v5259_v10 = vpack.c.bf16 %v893_v41, %v887_v59 }
 0x38c   :  { %v7069_v3 = vpack.c.bf16 %v895_v9, %v889_v35 }
 0x38d   :  { %5260 = vmatprep.subr.bf16.mxu1 %v5259_v10 }
 0x38e   :  { %5262 = vmatpush3.bf16.msra.mxu1 %v5259_v10 }
 0x38f   :  { %5280 = vmatprep.subr.bf16.mxu1 %v7027_v16 }
 0x448   :  { %v4734_v14 = vpop.f32.mrb[16].mxu1 }
 0x449   :  { %v1003_v17 = vmul.f32 0.25, %v4734_v14  ;;  %v963_v58 = vpop.f32.mrb[17].mxu1 }
 0x44a   :  { %v1002_v22 = vmul.f32 0.25, %v963_v58  ;;  %v4790_v24 = vpop.f32.mrb[32].mxu0 }
 0x44b   :  { %v1302_v12 = vpop.f32.mrb[33].mxu0  ;;  %v7072_v56 = vadd.f32 %v1003_v17, %v289_v26  ;;  %v1342_v35 = vmul.f32 0.25, %v4790_v24 }
 0x44c   :  { %v4737_v49 = vpop.f32.mrb[18].mxu1  ;;  %v7074_v57 = vadd.f32 %v1002_v22, %v288_v21  ;;  %v1341_v9 = vmul.f32 0.25, %v1302_v12 }
 0x44d   :  { %v1005_v42 = vmul.f32 0.25, %v4737_v49  ;;  %v973_v6 = vpop.f32.mrb[19].mxu1  ;;  %v1022_v52 = vsel %vm1018_vm1, %v7072_v56, -inf }
 0x44e   :  { %v1004_v34 = vmul.f32 0.25, %v973_v6  ;;  %v4793_v54 = vpop.f32.mrb[34].mxu0  ;;  %1023 = vmax.xlane.f32.xlu1 %v1022_v52  ;;  %v1019_v2 = vsel %vm1018_vm1, %v7074_v57, -inf  ;;  %v7102_v6 = vadd.f32 %v1342_v35, %v289_v26 }
 0x44f   :  { %v1312_v36 = vpop.f32.mrb[35].mxu0  ;;  %1020 = vmax.xlane.f32.xlu0 %v1019_v2  ;;  %v7080_v20 = vadd.f32 %v1005_v42, %v291_v25  ;;  %v1344_v24 = vmul.f32 0.25, %v4793_v54 }
 0x450   :  { %v4740_v40 = vpop.f32.mrb[20].mxu1  ;;  %v7082_v43 = vadd.f32 %v1004_v34, %v290_v31  ;;  %v1343_v52 = vmul.f32 0.25, %v1312_v36  ;;  %v7106_v34 = vadd.f32 %v1341_v9, %v288_v21 }
 0x451   :  { %v1007_v23 = vmul.f32 0.25, %v4740_v40  ;;  %v983_v15 = vpop.f32.mrb[21].mxu1  ;;  %v1028_v30 = vsel %vm1018_vm1, %v7080_v20, -inf  ;;  %v1360_v40 = vsel %vm1018_vm1, %v7102_v6, -inf }
 0x452   :  { %v1006_v50 = vmul.f32 0.25, %v983_v15  ;;  %v4796_v4 = vpop.f32.mrb[36].mxu0  ;;  %1029 = vmax.xlane.f32.xlu1 %v1028_v30  ;;  %v1025_v53 = vsel %vm1018_vm1, %v7082_v43, -inf  ;;  %v1357_v26 = vsel %vm1018_vm1, %v7106_v34, -inf  ;;  %v7114_v15 = vadd.f32 %v1343_v52, %v290_v31 }
 0x453   :  { %v1322_v55 = vpop.f32.mrb[37].mxu0  ;;  %1026 = vmax.xlane.f32.xlu0 %v1025_v53  ;;  %v7088_v32 = vadd.f32 %v1007_v23, %v293_v46  ;;  %v1346_v2 = vmul.f32 0.25, %v4796_v4  ;;  %v7110_v23 = vadd.f32 %v1344_v24, %v291_v25 }
 0x454   :  { %v4743_v33 = vpop.f32.mrb[22].mxu1  ;;  %v7090_v62 = vadd.f32 %v1006_v50, %v292_v47  ;;  %v1345_v54 = vmul.f32 0.25, %v1322_v55  ;;  %v1363_v25 = vsel %vm1018_vm1, %v7114_v15, -inf }
 0x455   :  { %v1009_v63 = vmul.f32 0.25, %v4743_v33  ;;  %v993_v59 = vpop.f32.mrb[23].mxu1  ;;  %v1034_v41 = vsel %vm1018_vm1, %v7088_v32, -inf  ;;  %v1366_v21 = vsel %vm1018_vm1, %v7110_v23, -inf  ;;  %v7118_v30 = vadd.f32 %v1346_v2, %v293_v46 }
 0x456   :  { %v1008_v10 = vmul.f32 0.25, %v993_v59  ;;  %v4799_v14 = vpop.f32.mrb[38].mxu0  ;;  %1035 = vmax.xlane.f32.xlu1 %v1034_v41  ;;  %v1031_v17 = vsel %vm1018_vm1, %v7090_v62, -inf  ;;  %v7122_v4 = vadd.f32 %v1345_v54, %v292_v47 }
 0x457   :  { %v1332_v58 = vpop.f32.mrb[39].mxu0  ;;  %1032 = vmax.xlane.f32.xlu0 %v1031_v17  ;;  %v7096_v22 = vadd.f32 %v1009_v63, %v295_v11  ;;  %v1348_v36 = vmul.f32 0.25, %v4799_v14  ;;  %v1372_v53 = vsel %vm1018_vm1, %v7118_v30, -inf }
 0x458   :  { %v7098_v49 = vadd.f32 %v1008_v10, %v294_v0  ;;  %v1347_v50 = vmul.f32 0.25, %v1332_v58  ;;  %v1369_v55 = vsel %vm1018_vm1, %v7122_v4, -inf }
 0x459   :  { %v1040_v42 = vsel %vm1018_vm1, %v7096_v22, -inf  ;;  %v7126_v31 = vadd.f32 %v1348_v36, %v295_v11 }
 0x45a   :  { %1041 = vmax.xlane.f32.xlu1 %v1040_v42  ;;  %v1037_v12 = vsel %vm1018_vm1, %v7098_v49, -inf  ;;  %v7130_v33 = vadd.f32 %v1347_v50, %v294_v0 }
 0x45b   :  { %1038 = vmax.xlane.f32.xlu0 %v1037_v12  ;;  %v1378_v46 = vsel %vm1018_vm1, %v7126_v31, -inf }
 0x45c   :  { %v1375_v47 = vsel %vm1018_vm1, %v7130_v33, -inf }
 0x45e   :  { %1361 = vmax.xlane.f32.xlu1 %v1360_v40 }
 0x45f   :  { %1358 = vmax.xlane.f32.xlu0 %v1357_v26 }
 0x462   :  { %1367 = vmax.xlane.f32.xlu1 %v1366_v21 }
 0x463   :  { %1364 = vmax.xlane.f32.xlu0 %v1363_v25 }
 0x466   :  { %1373 = vmax.xlane.f32.xlu1 %v1372_v53 }
 0x467   :  { %1370 = vmax.xlane.f32.xlu0 %v1369_v55 }
 0x46a   :  { %1379 = vmax.xlane.f32.xlu1 %v1378_v46 }
 0x46b   :  { %1376 = vmax.xlane.f32.xlu0 %v1375_v47 }
 0x4db   :  { %v1024_v35 = vpop.xlane.xlu1 %1023 }
 0x4dc   :  { %v1044_v63 = vsub.f32 %v7072_v56, %v1024_v35  ;;  %v1021_v11 = vpop.xlane.xlu0 %1020 }
 0x4dd   :  { %v1043_v59 = vsub.f32 %v7074_v57, %v1021_v11 }
 0x4de   :  { %v1053_v41 = vmul.f32 1.442695, %v1044_v63 }
 0x4df   :  { %v1051_v9 = vmul.f32 1.442695, %v1043_v59  ;;  %v1030_v10 = vpop.xlane.xlu1 %1029 }
 0x4e0   :  { %5706 = vpow2.f32 %v1053_v41  ;;  %v1046_v0 = vsub.f32 %v7080_v20, %v1030_v10  ;;  %v1027_v14 = vpop.xlane.xlu0 %1026 }
 0x4e1   :  { %5708 = vpow2.f32 %v1051_v9  ;;  %v1045_v17 = vsub.f32 %v7082_v43, %v1027_v14 }
 0x4e2   :  { %v1057_v58 = vmul.f32 1.442695, %v1046_v0 }
 0x4e3   :  { %v1055_v24 = vmul.f32 1.442695, %v1045_v17  ;;  %v1036_v42 = vpop.xlane.xlu1 %1035 }
 0x4e4   :  { %5710 = vpow2.f32 %v1057_v58  ;;  %v1048_v52 = vsub.f32 %v7088_v32, %v1036_v42  ;;  %v1033_v56 = vpop.xlane.xlu0 %1032 }
 0x4e5   :  { %5712 = vpow2.f32 %v1055_v24  ;;  %v1047_v57 = vsub.f32 %v7090_v62, %v1033_v56 }
 0x4e6   :  { %v1061_v12 = vmul.f32 1.442695, %v1048_v52 }
 0x4e7   :  { %v1059_v2 = vmul.f32 1.442695, %v1047_v57  ;;  %v1042_v40 = vpop.xlane.xlu1 %1041 }
 0x4e8   :  { %5714 = vpow2.f32 %v1061_v12  ;;  %v1050_v20 = vsub.f32 %v7096_v22, %v1042_v40  ;;  %v1039_v54 = vpop.xlane.xlu0 %1038 }
 0x4e9   :  { %5716 = vpow2.f32 %v1059_v2  ;;  %v1049_v43 = vsub.f32 %v7098_v49, %v1039_v54 }
 0x4ea   :  { %v7144_v26 = vpop.eup %5706  ;;  %v1065_v36 = vmul.f32 1.442695, %v1050_v20 }
 0x4eb   :  { %v7146_v21 = vpop.eup %5708  ;;  %v1063_v32 = vmul.f32 1.442695, %v1049_v43  ;;  %v1362_v50 = vpop.xlane.xlu1 %1361  ;;  %v1070_v62 = vsel %vm1018_vm1, %v7144_v26, 0.0 }
 0x4ec   :  { %5718 = vpow2.f32 %v1065_v36  ;;  %v1382_v25 = vsub.f32 %v7102_v6, %v1362_v50  ;;  %1071 = vadd.xlane.f32.xlu1 %v1070_v62  ;;  %v1359_v53 = vpop.xlane.xlu0 %1358  ;;  %v1067_v22 = vsel %vm1018_vm1, %v7146_v21, 0.0 }
 0x4ed   :  { %5720 = vpow2.f32 %v1063_v32  ;;  %v1381_v49 = vsub.f32 %v7106_v34, %v1359_v53  ;;  %1068 = vadd.xlane.f32.xlu0 %v1067_v22 }
 0x4ee   :  { %v7154_v55 = vpop.eup %5710  ;;  %v1391_v46 = vmul.f32 1.442695, %v1382_v25 }
 0x4ef   :  { %v7156_v47 = vpop.eup %5712  ;;  %v1389_v35 = vmul.f32 1.442695, %v1381_v49  ;;  %v1368_v63 = vpop.xlane.xlu1 %1367  ;;  %v1076_v11 = vsel %vm1018_vm1, %v7154_v55, 0.0 }
 0x4f0   :  { %5722 = vpow2.f32 %v1391_v46  ;;  %v1384_v6 = vsub.f32 %v7110_v23, %v1368_v63  ;;  %1077 = vadd.xlane.f32.xlu1 %v1076_v11  ;;  %v1365_v59 = vpop.xlane.xlu0 %1364  ;;  %v1073_v41 = vsel %vm1018_vm1, %v7156_v47, 0.0 }
 0x4f1   :  { %5724 = vpow2.f32 %v1389_v35  ;;  %v1383_v34 = vsub.f32 %v7114_v15, %v1365_v59  ;;  %1074 = vadd.xlane.f32.xlu0 %v1073_v41 }
 0x4f2   :  { %v7164_v9 = vpop.eup %5714  ;;  %v1395_v10 = vmul.f32 1.442695, %v1384_v6 }
 0x4f3   :  { %v7166_v0 = vpop.eup %5716  ;;  %v1393_v14 = vmul.f32 1.442695, %v1383_v34  ;;  %v1374_v17 = vpop.xlane.xlu1 %1373  ;;  %v1082_v58 = vsel %vm1018_vm1, %v7164_v9, 0.0  ;;  %v1590_v34 = vld [vmem:[#allocation14 + $0x80] sm:$0xff] }
 0x4f4   :  { %5726 = vpow2.f32 %v1395_v10  ;;  %v1386_v23 = vsub.f32 %v7118_v30, %v1374_v17  ;;  %1083 = vadd.xlane.f32.xlu1 %v1082_v58  ;;  %v1371_v24 = vpop.xlane.xlu0 %1370  ;;  %v1079_v42 = vsel %vm1018_vm1, %v7166_v0, 0.0  ;;  %v1591_v10 = vld [vmem:[#allocation14 + $0x88] sm:$0xff] }
 0x4f5   :  { %5728 = vpow2.f32 %v1393_v14  ;;  %v1385_v15 = vsub.f32 %v7122_v4, %v1371_v24  ;;  %1080 = vadd.xlane.f32.xlu0 %v1079_v42  ;;  %v1574_v14 = vld [vmem:[#allocation14] sm:$0xff]  ;;  %v5295_v17 = vpack.c.bf16 %v1591_v10, %v1590_v34  ;;  %v1575_v58 = vld [vmem:[#allocation14 + $0x8] sm:$0xff]  ;;  %v1593_v24 = vld [vmem:[#allocation14 + $0x98] sm:$0xff] }
 0x4f6   :  { %v7174_v52 = vpop.eup %5718  ;;  %v1399_v56 = vmul.f32 1.442695, %v1386_v23  ;;  %v1592_v23 = vld [vmem:[#allocation14 + $0x90] sm:$0xff]  ;;  %v5297_v42 = vpack.c.bf16 %v1575_v58, %v1574_v14 }
 0x4f7   :  { %v7176_v57 = vpop.eup %5720  ;;  %v1397_v12 = vmul.f32 1.442695, %v1385_v15  ;;  %v1380_v2 = vpop.xlane.xlu1 %1379  ;;  %v1088_v40 = vsel %vm1018_vm1, %v7174_v52, 0.0  ;;  %v5299_v15 = vpack.c.bf16 %v1593_v24, %v1592_v23  ;;  %5296 = vmatprep.subr.bf16.mxu0 %v5295_v17 }
 0x4f8   :  { %5730 = vpow2.f32 %v1399_v56  ;;  %v1388_v30 = vsub.f32 %v7126_v31, %v1380_v2  ;;  %1089 = vadd.xlane.f32.xlu1 %v1088_v40  ;;  %v1377_v20 = vpop.xlane.xlu0 %1376  ;;  %v1085_v54 = vsel %vm1018_vm1, %v7176_v57, 0.0  ;;  %v1576_v56 = vld [vmem:[#allocation14 + $0x10] sm:$0xff]  ;;  %v1594_v2 = vld [vmem:[#allocation14 + $0xa0] sm:$0xff]  ;;  %v1595_v40 = vld [vmem:[#allocation14 + $0xa8] sm:$0xff]  ;;  %5298 = vmatpush3.bf16.msra.mxu0 %v5297_v42 }
 0x4f9   :  { %5732 = vpow2.f32 %v1397_v12  ;;  %v1387_v4 = vsub.f32 %v7130_v33, %v1377_v20  ;;  %1086 = vadd.xlane.f32.xlu0 %v1085_v54  ;;  %v1577_v12 = vld [vmem:[#allocation14 + $0x18] sm:$0xff]  ;;  %5300 = vmatprep.subr.bf16.mxu0 %v5299_v15  ;;  %v5303_v20 = vpack.c.bf16 %v1595_v40, %v1594_v2  ;;  %v1578_v54 = vld [vmem:[#allocation14 + $0x20] sm:$0xff] }
 0x4fa   :  { %v7184_v43 = vpop.eup %5722  ;;  %v1403_v36 = vmul.f32 1.442695, %v1388_v30  ;;  %v5301_v30 = vpack.c.bf16 %v1577_v12, %v1576_v56 }
 0x4fb   :  { %v7186_v32 = vpop.eup %5724  ;;  %v1401_v50 = vmul.f32 1.442695, %v1387_v4  ;;  %v1408_v62 = vsel %vm1018_vm1, %v7184_v43, 0.0  ;;  %v1579_v4 = vld [vmem:[#allocation14 + $0x28] sm:$0xff] }
 0x4fc   :  { %5734 = vpow2.f32 %v1403_v36  ;;  %1409 = vadd.xlane.f32.xlu1 %v1408_v62  ;;  %v1405_v31 = vsel %vm1018_vm1, %v7186_v32, 0.0  ;;  %v1596_v36 = vld [vmem:[#allocation14 + $0xb0] sm:$0xff]  ;;  %5302 = vmatpush3.bf16.msra.mxu0 %v5301_v30  ;;  %v5305_v62 = vpack.c.bf16 %v1579_v4, %v1578_v54 }
 0x4fd   :  { %5736 = vpow2.f32 %v1401_v50  ;;  %1406 = vadd.xlane.f32.xlu0 %v1405_v31  ;;  %v1597_v50 = vld [vmem:[#allocation14 + $0xb8] sm:$0xff]  ;;  %5304 = vmatprep.subr.bf16.mxu0 %v5303_v20 }
 0x4fe   :  { %v7192_v25 = vpop.eup %5726  ;;  %v5307_v31 = vpack.c.bf16 %v1597_v50, %v1596_v36 }
 0x4ff   :  { %v7194_v33 = vpop.eup %5728  ;;  %v1414_v53 = vsel %vm1018_vm1, %v7192_v25, 0.0 }
 0x500   :  { %1415 = vadd.xlane.f32.xlu1 %v1414_v53  ;;  %v1411_v22 = vsel %vm1018_vm1, %v7194_v33, 0.0  ;;  %5306 = vmatpush3.bf16.msra.mxu0 %v5305_v62 }
 0x501   :  { %1412 = vadd.xlane.f32.xlu0 %v1411_v22  ;;  %5308 = vmatprep.subr.bf16.mxu0 %v5307_v31 }
 0x502   :  { %v7200_v49 = vpop.eup %5730 }
 0x503   :  { %v7202_v46 = vpop.eup %5732  ;;  %v1420_v35 = vsel %vm1018_vm1, %v7200_v49, 0.0 }
 0x504   :  { %1421 = vadd.xlane.f32.xlu1 %v1420_v35  ;;  %v1417_v63 = vsel %vm1018_vm1, %v7202_v46, 0.0 }
 0x505   :  { %1418 = vadd.xlane.f32.xlu0 %v1417_v63 }
 0x506   :  { %v7208_v11 = vpop.eup %5734 }
 0x507   :  { %v7210_v6 = vpop.eup %5736  ;;  %v1426_v59 = vsel %vm1018_vm1, %v7208_v11, 0.0 }
 0x508   :  { %1427 = vadd.xlane.f32.xlu1 %v1426_v59  ;;  %v1423_v41 = vsel %vm1018_vm1, %v7210_v6, 0.0 }
 0x509   :  { %1424 = vadd.xlane.f32.xlu0 %v1423_v41 }
 0x579   :  { %v1072_v53 = vpop.xlane.xlu1 %1071 }
 0x57a   :  { %5738 = vrcp.f32 %v1072_v53  ;;  %v1069_v22 = vpop.xlane.xlu0 %1068 }
 0x57b   :  { %5740 = vrcp.f32 %v1069_v22 }
 0x57d   :  { %v1078_v35 = vpop.xlane.xlu1 %1077 }
 0x57e   :  { %5742 = vrcp.f32 %v1078_v35  ;;  %v1075_v63 = vpop.xlane.xlu0 %1074 }
 0x57f   :  { %5744 = vrcp.f32 %v1075_v63 }
 0x581   :  { %v1084_v59 = vpop.xlane.xlu1 %1083 }
 0x582   :  { %5746 = vrcp.f32 %v1084_v59  ;;  %v1081_v41 = vpop.xlane.xlu0 %1080 }
 0x583   :  { %5748 = vrcp.f32 %v1081_v41  ;;  %v1580_v41 = vld [vmem:[#allocation14 + $0x30] sm:$0xff] }
 0x584   :  { %v5739_v34 = vpop.eup %5738 }
 0x585   :  { %v5741_v10 = vpop.eup %5740  ;;  %v1090_v14 = vpop.xlane.xlu1 %1089  ;;  %v1100_v23 = vmul.f32 %v5739_v34, %v7144_v26  ;;  %v1581_v34 = vld [vmem:[#allocation14 + $0x38] sm:$0xff] }
 0x586   :  { %5750 = vrcp.f32 %v1090_v14  ;;  %v1087_v17 = vpop.xlane.xlu0 %1086  ;;  %v1099_v58 = vmul.f32 %v5741_v10, %v7146_v21  ;;  %v5309_v10 = vpack.c.bf16 %v1581_v34, %v1580_v41 }
 0x587   :  { %5752 = vrcp.f32 %v1087_v17  ;;  %v1582_v17 = vld [vmem:[#allocation14 + $0x40] sm:$0xff] }
 0x588   :  { %v5743_v24 = vpop.eup %5742  ;;  %4760 = vmatprep.mubr.msk.f32.mxu1 %vm1018_vm1, %v1099_v58  ;;  %5310 = vmatpush3.bf16.msra.mxu0 %v5309_v10  ;;  %v1583_v58 = vld [vmem:[#allocation14 + $0x48] sm:$0xff] }
 0x589   :  { %v5745_v42 = vpop.eup %5744  ;;  %v1410_v15 = vpop.xlane.xlu1 %1409  ;;  %4761 = vmatmul.mubr.msk.f32.vlgmr.msra.gmra.mrb[24].mxu1 %vm1018_vm1, %v1100_v23  ;;  %v1102_v21 = vmul.f32 %v5743_v24, %v7154_v55  ;;  %v5313_v23 = vpack.c.bf16 %v1583_v58, %v1582_v17  ;;  %v1600_v24 = vld [vmem:[#allocation14 + $0xd0] sm:$0xff] }
 0x58a   :  { %5754 = vrcp.f32 %v1410_v15  ;;  %5282 = vmatpush3.bf16.msra.mxu1 %v7027_v16  ;;  %v1407_v56 = vpop.xlane.xlu0 %1406  ;;  %v1101_v12 = vmul.f32 %v5745_v42, %v7156_v47  ;;  %v1585_v15 = vld [vmem:[#allocation14 + $0x58] sm:$0xff] }
 0x58b   :  { %5284 = vmatprep.subr.bf16.mxu1 %v7049_v39  ;;  %5756 = vrcp.f32 %v1407_v56 }
 0x58c   :  { %v5747_v26 = vpop.eup %5746  ;;  %4763 = vmatprep.mubr.msk.f32.mxu1 %vm1018_vm1, %v1101_v12  ;;  %v1602_v12 = vld [vmem:[#allocation14 + $0xe0] sm:$0xff] }
 0x58d   :  { %v5749_v2 = vpop.eup %5748  ;;  %v1416_v40 = vpop.xlane.xlu1 %1415  ;;  %4764 = vmatmul.mubr.msk.f32.gmra.mrb[26].mxu1 %vm1018_vm1, %v1102_v21  ;;  %v1104_v47 = vmul.f32 %v5747_v26, %v7164_v9  ;;  %v1603_v21 = vld [vmem:[#allocation14 + $0xe8] sm:$0xff] }
 0x58e   :  { %5758 = vrcp.f32 %v1416_v40  ;;  %5286 = vmatpush3.bf16.msra.mxu1 %v7049_v39  ;;  %v1413_v30 = vpop.xlane.xlu0 %1412  ;;  %v1103_v16 = vmul.f32 %v5749_v2, %v7166_v0  ;;  %v5319_v26 = vpack.c.bf16 %v1603_v21, %v1602_v12  ;;  %v1586_v2 = vld [vmem:[#allocation14 + $0x60] sm:$0xff]  ;;  %v1587_v40 = vld [vmem:[#allocation14 + $0x68] sm:$0xff] }
 0x58f   :  { %5288 = vmatprep.subr.bf16.mxu1 %v7063_v37  ;;  %5760 = vrcp.f32 %v1413_v30  ;;  %v5321_v30 = vpack.c.bf16 %v1587_v40, %v1586_v2 }
 0x590   :  { %v5751_v20 = vpop.eup %5750  ;;  %4766 = vmatprep.mubr.msk.f32.mxu1 %vm1018_vm1, %v1103_v16  ;;  %v1604_v16 = vld [vmem:[#allocation14 + $0xf0] sm:$0xff] }
 0x591   :  { %v5753_v55 = vpop.eup %5752  ;;  %v1422_v54 = vpop.xlane.xlu1 %1421  ;;  %4767 = vmatmul.mubr.msk.f32.gmra.mrb[28].mxu1 %vm1018_vm1, %v1104_v47  ;;  %v1106_v0 = vmul.f32 %v5751_v20, %v7174_v52  ;;  %v1605_v47 = vld [vmem:[#allocation14 + $0xf8] sm:$0xff] }
 0x592   :  { %5762 = vrcp.f32 %v1422_v54  ;;  %5290 = vmatpush3.bf16.msra.mxu1 %v7063_v37  ;;  %v1419_v4 = vpop.xlane.xlu0 %1418  ;;  %v1105_v39 = vmul.f32 %v5753_v55, %v7176_v57  ;;  %v5323_v20 = vpack.c.bf16 %v1605_v47, %v1604_v16  ;;  %v1588_v55 = vld [vmem:[#allocation14 + $0x70] sm:$0xff]  ;;  %v1589_v54 = vld [vmem:[#allocation14 + $0x78] sm:$0xff] }
 0x593   :  { %5292 = vmatprep.subr.bf16.mxu1 %v7069_v3  ;;  %5764 = vrcp.f32 %v1419_v4  ;;  %v5325_v4 = vpack.c.bf16 %v1589_v54, %v1588_v55 }
 0x594   :  { %v5755_v36 = vpop.eup %5754  ;;  %4769 = vmatprep.mubr.msk.f32.mxu1 %vm1018_vm1, %v1105_v39 }
 0x595   :  { %v5757_v9 = vpop.eup %5756  ;;  %v1428_v50 = vpop.xlane.xlu1 %1427  ;;  %4770 = vmatmul.mubr.msk.f32.gmra.mrb[30].mxu1 %vm1018_vm1, %v1106_v0  ;;  %v1438_v57 = vmul.f32 %v5755_v36, %v7184_v43 }
 0x596   :  { %5766 = vrcp.f32 %v1428_v50  ;;  %5294 = vmatpush3.bf16.msra.mxu1 %v7069_v3  ;;  %v1425_v62 = vpop.xlane.xlu0 %1424  ;;  %v1437_v37 = vmul.f32 %v5757_v9, %v7186_v32 }
 0x597   :  { %5768 = vrcp.f32 %v1425_v62 }
 0x598   :  { %v5759_v31 = vpop.eup %5758  ;;  %4816 = vmatprep.mubr.msk.f32.mxu1 %vm1018_vm1, %v1437_v37 }
 0x599   :  { %v5761_v52 = vpop.eup %5760  ;;  %4817 = vmatmul.mubr.msk.f32.vlgmr.msra.gmra.mrb[32].mxu1 %vm1018_vm1, %v1438_v57  ;;  %v1440_v22 = vmul.f32 %v5759_v31, %v7192_v25 }
 0x59a   :  { %v1439_v53 = vmul.f32 %v5761_v52, %v7194_v33 }
 0x59c   :  { %v5763_v35 = vpop.eup %5762  ;;  %4819 = vmatprep.mubr.msk.f32.mxu1 %vm1018_vm1, %v1439_v53 }
 0x59d   :  { %v5765_v3 = vpop.eup %5764  ;;  %4820 = vmatmul.mubr.msk.f32.gmra.mrb[34].mxu1 %vm1018_vm1, %v1440_v22  ;;  %v1442_v43 = vmul.f32 %v5763_v35, %v7200_v49  ;;  %v1599_v49 = vld [vmem:[#allocation14 + $0xc8] sm:$0xff] }
 0x59e   :  { %v1441_v32 = vmul.f32 %v5765_v3, %v7202_v46  ;;  %v1598_v46 = vld [vmem:[#allocation14 + $0xc0] sm:$0xff] }
 0x59f   :  { %v5311_v14 = vpack.c.bf16 %v1599_v49, %v1598_v46 }
 0x5a0   :  { %v5767_v63 = vpop.eup %5766  ;;  %4822 = vmatprep.mubr.msk.f32.mxu1 %vm1018_vm1, %v1441_v32 }
 0x5a1   :  { %v5769_v59 = vpop.eup %5768  ;;  %4823 = vmatmul.mubr.msk.f32.gmra.mrb[36].mxu1 %vm1018_vm1, %v1442_v43  ;;  %v1444_v25 = vmul.f32 %v5767_v63, %v7208_v11  ;;  %5312 = vmatprep.subr.bf16.mxu0 %v5311_v14  ;;  %v1584_v11 = vld [vmem:[#allocation14 + $0x50] sm:$0xff] }
 0x5a2   :  { %v1443_v33 = vmul.f32 %v5769_v59, %v7210_v6  ;;  %5314 = vmatpush3.bf16.msra.mxu0 %v5313_v23  ;;  %v1601_v6 = vld [vmem:[#allocation14 + $0xd8] sm:$0xff]  ;;  %v5317_v56 = vpack.c.bf16 %v1585_v15, %v1584_v11  ;;  %v4338_v59 = vld [vmem:[#allocation16] ss:$0 sm:$0xff] }
 0x5a3   :  { %v5315_v42 = vpack.c.bf16 %v1601_v6, %v1600_v24 }
 0x5a4   :  { %4825 = vmatprep.mubr.msk.f32.mxu1 %vm1018_vm1, %v1443_v33 }
 0x5a5   :  { %4826 = vmatmul.mubr.msk.f32.gmra.mrb[38].mxu1 %vm1018_vm1, %v1444_v25  ;;  %5316 = vmatprep.subr.bf16.mxu0 %v5315_v42 }
 0x5a6   :  { %5318 = vmatpush3.bf16.msra.mxu0 %v5317_v56 }
 0x5a7   :  { %5320 = vmatprep.subr.bf16.mxu0 %v5319_v26 }
 0x5aa   :  { %5322 = vmatpush3.bf16.msra.mxu0 %v5321_v30 }
 0x5ab   :  { %5324 = vmatprep.subr.bf16.mxu0 %v5323_v20 }
 0x5ae   :  { %5326 = vmatpush3.bf16.msra.mxu0 %v5325_v4 }
 0x65c   :  { %v4762_v39 = vpop.f32.mrb[24].mxu1 }
 0x65d   :  { %v1197_v0 = vpop.f32.mrb[25].mxu1 }
 0x660   :  { %v4765_v36 = vpop.f32.mrb[26].mxu1 }
 0x661   :  { %v1207_v9 = vpop.f32.mrb[27].mxu1 }
 0x664   :  { %v4768_v50 = vpop.f32.mrb[28].mxu1 }
 0x665   :  { %v1217_v62 = vpop.f32.mrb[29].mxu1 }
 0x668   :  { %v4771_v37 = vpop.f32.mrb[30].mxu1 }
 0x669   :  { %v1227_v57 = vpop.f32.mrb[31].mxu1 }
 0x66c   :  { %v4818_v31 = vpop.f32.mrb[32].mxu1 }
 0x66d   :  { %v1535_v52 = vpop.f32.mrb[33].mxu1 }
 0x66e   :  { %1677 = vmatprep.mubr.f32.mxu0 %v1535_v52 }
 0x66f   :  { %1678 = vmatmul.mubr.f32.vlgmr.msra.gmra.mrb[40].mxu0 %v1197_v0 }
 0x670   :  { %v4821_v53 = vpop.f32.mrb[34].mxu1  ;;  %1682 = vmatprep.mubr.f32.mxu0 %v4818_v31  ;;  %v1855_v31 = vld [vmem:[#allocation20 + $0x18] sm:$0xff] }
 0x671   :  { %v1545_v22 = vpop.f32.mrb[35].mxu1 }
 0x673   :  { %1683 = vmatmul.mubr.f32.gmra.mrb[42].mxu0 %v4762_v39 }
 0x674   :  { %v4824_v35 = vpop.f32.mrb[36].mxu1  ;;  %1687 = vmatprep.mubr.f32.mxu0 %v1545_v22 }
 0x675   :  { %v1555_v3 = vpop.f32.mrb[37].mxu1 }
 0x677   :  { %1688 = vmatmul.mubr.f32.gmra.mrb[44].mxu0 %v1207_v9 }
 0x678   :  { %v4827_v32 = vpop.f32.mrb[38].mxu1  ;;  %1692 = vmatprep.mubr.f32.mxu0 %v4821_v53 }
 0x679   :  { %v1565_v43 = vpop.f32.mrb[39].mxu1 }
 0x67b   :  { %1693 = vmatmul.mubr.f32.gmra.mrb[46].mxu0 %v4765_v36 }
 0x67c   :  { %1697 = vmatprep.mubr.f32.mxu0 %v1555_v3 }
 0x67f   :  { %1698 = vmatmul.mubr.f32.gmra.mrb[48].mxu0 %v1217_v62  ;;  %v1852_v62 = vld [vmem:[#allocation20] sm:$0xff] }
 0x680   :  { %1702 = vmatprep.mubr.f32.mxu0 %v4824_v35 }
 0x683   :  { %1703 = vmatmul.mubr.f32.gmra.mrb[50].mxu0 %v4768_v50 }
 0x684   :  { %1707 = vmatprep.mubr.f32.mxu0 %v1565_v43 }
 0x687   :  { %1708 = vmatmul.mubr.f32.gmra.mrb[52].mxu0 %v1227_v57  ;;  %v1854_v57 = vld [vmem:[#allocation20 + $0x10] sm:$0xff] }
 0x688   :  { %1712 = vmatprep.mubr.f32.mxu0 %v4827_v32  ;;  %v5331_v52 = vpack.c.bf16 %v1855_v31, %v1854_v57  ;;  %v1865_v31 = vld [vmem:[#allocation20 + $0x68] sm:$0xff] }
 0x68b   :  { %1713 = vmatmul.mubr.f32.gmra.mrb[54].mxu0 %v4771_v37  ;;  %v1853_v37 = vld [vmem:[#allocation20 + $0x8] sm:$0xff] }
 0x742   :  { %v4466_v63 = vpop.f32.mrb[40].mxu0 }
 0x743   :  { %v4467_v33 = vpop.f32.mrb[41].mxu0 }
 0x744   :  { %v4468_v25 = vadd.f32 %v4467_v33, %v4466_v63 }
 0x746   :  { %v1680_v41 = vadd.f32 %v4468_v25, %v4338_v59  ;;  %v4469_v34 = vpop.f32.mrb[42].mxu0 }
 0x747   :  { %v4470_v10 = vpop.f32.mrb[43].mxu0 }
 0x748   :  { %v4471_v46 = vadd.f32 %v4470_v10, %v4469_v34  ;;  %v1718_v49 = vadd.f32 %v1680_v41, %v6849_v18 }
 0x74a   :  { %v1685_v14 = vadd.f32 %v4471_v46, %v4338_v59  ;;  %1728 = vadd.xlane.f32.xlu0 %v1718_v49  ;;  %v4472_v17 = vpop.f32.mrb[44].mxu0 }
 0x74b   :  { %v4473_v58 = vpop.f32.mrb[45].mxu0 }
 0x74c   :  { %v4474_v23 = vadd.f32 %v4473_v58, %v4472_v17  ;;  %v1719_v24 = vadd.f32 %v1685_v14, %v6859_v29 }
 0x74e   :  { %v1690_v6 = vadd.f32 %v4474_v23, %v4338_v59  ;;  %1730 = vadd.xlane.f32.xlu1 %v1719_v24  ;;  %v4475_v42 = vpop.f32.mrb[46].mxu0 }
 0x74f   :  { %v4476_v11 = vpop.f32.mrb[47].mxu0 }
 0x750   :  { %v4477_v15 = vadd.f32 %v4476_v11, %v4475_v42  ;;  %v1720_v56 = vadd.f32 %v1690_v6, %v6868_v38 }
 0x752   :  { %v1695_v12 = vadd.f32 %v4477_v15, %v4338_v59  ;;  %1732 = vadd.xlane.f32.xlu0 %v1720_v56  ;;  %v4478_v21 = vpop.f32.mrb[48].mxu0 }
 0x753   :  { %v4479_v26 = vpop.f32.mrb[49].mxu0 }
 0x754   :  { %v4480_v2 = vadd.f32 %v4479_v26, %v4478_v21  ;;  %v1721_v18 = vadd.f32 %v1695_v12, %v6877_v48  ;;  %v1857_v12 = vld [vmem:[#allocation20 + $0x28] sm:$0xff] }
 0x756   :  { %v1700_v40 = vadd.f32 %v4480_v2, %v4338_v59  ;;  %1734 = vadd.xlane.f32.xlu1 %v1721_v18  ;;  %v4481_v30 = vpop.f32.mrb[50].mxu0 }
 0x757   :  { %v4482_v16 = vpop.f32.mrb[51].mxu0 }
 0x758   :  { %v4483_v47 = vadd.f32 %v4482_v16, %v4481_v30  ;;  %v1722_v29 = vadd.f32 %v1700_v40, %v6886_v61  ;;  %v1858_v16 = vld [vmem:[#allocation20 + $0x30] sm:$0xff] }
 0x75a   :  { %v1705_v20 = vadd.f32 %v4483_v47, %v4338_v59  ;;  %1736 = vadd.xlane.f32.xlu0 %v1722_v29  ;;  %v4484_v55 = vpop.f32.mrb[52].mxu0  ;;  %v1859_v47 = vld [vmem:[#allocation20 + $0x38] sm:$0xff] }
 0x75b   :  { %v4485_v54 = vpop.f32.mrb[53].mxu0 }
 0x75c   :  { %v4486_v4 = vadd.f32 %v4485_v54, %v4484_v55  ;;  %v1723_v38 = vadd.f32 %v1705_v20, %v6895_v13  ;;  %v5327_v13 = vpack.c.bf16 %v1853_v37, %v1852_v62  ;;  %v5339_v55 = vpack.c.bf16 %v1859_v47, %v1858_v16  ;;  %v1862_v62 = vld [vmem:[#allocation20 + $0x50] sm:$0xff]  ;;  %v1863_v37 = vld [vmem:[#allocation20 + $0x58] sm:$0xff] }
 0x75e   :  { %v1710_v39 = vadd.f32 %v4486_v4, %v4338_v59  ;;  %1738 = vadd.xlane.f32.xlu1 %v1723_v38  ;;  %v4487_v0 = vpop.f32.mrb[54].mxu0  ;;  %5328 = vmatprep.subr.bf16.mxu1 %v5327_v13 }
 0x75f   :  { %v4488_v36 = vpop.f32.mrb[55].mxu0  ;;  %5330 = vmatpush3.bf16.msra.mxu1 %v5327_v13  ;;  %v5347_v13 = vpack.c.bf16 %v1863_v37, %v1862_v62 }
 0x760   :  { %v4489_v9 = vadd.f32 %v4488_v36, %v4487_v0  ;;  %v7262_v48 = vadd.f32 %v1710_v39, %v6904_v5  ;;  %5332 = vmatprep.subr.bf16.mxu1 %v5331_v52  ;;  %v1860_v39 = vld [vmem:[#allocation20 + $0x40] sm:$0xff]  ;;  %v1861_v0 = vld [vmem:[#allocation20 + $0x48] sm:$0xff] }
 0x762   :  { %v1715_v50 = vadd.f32 %v4489_v9, %v4338_v59  ;;  %1740 = vadd.xlane.f32.xlu0 %v7262_v48 }
 0x763   :  { %5334 = vmatpush3.bf16.msra.mxu1 %v5331_v52 }
 0x764   :  { %v7266_v61 = vadd.f32 %v1715_v50, %v6912_v7 }
 0x766   :  { %1742 = vadd.xlane.f32.xlu1 %v7266_v61 }
 0x7d7   :  { %v1729_v5 = vpop.xlane.xlu0 %1728 }
 0x7d8   :  { %v1744_v53 = vmul.f32 0.03125, %v1729_v5  ;;  %v1866_v5 = vld [vmem:[#allocation20 + $0x70] sm:$0xff] }
 0x7da   :  { %v1752_v22 = vsub.f32 %v1718_v49, %v1744_v53  ;;  %v1867_v53 = vld [vmem:[#allocation20 + $0x78] sm:$0xff] }
 0x7db   :  { %v1731_v35 = vpop.xlane.xlu1 %1730 }
 0x7dc   :  { %v1745_v3 = vmul.f32 0.03125, %v1731_v35  ;;  %v7270_v7 = vmul.f32 %v6792_v51, %v1752_v22  ;;  %v5355_v22 = vpack.c.bf16 %v1867_v53, %v1866_v5  ;;  %v2052_v35 = vld [vmem:[#allocation23] sm:$0xff] }
 0x7de   :  { %v1753_v32 = vsub.f32 %v1719_v24, %v1745_v3  ;;  %v1768_v43 = vmul.f32 %v7270_v7, %v7270_v7  ;;  %v2053_v3 = vld [vmem:[#allocation23 + $0x8] sm:$0xff] }
 0x7df   :  { %v1733_v63 = vpop.xlane.xlu0 %1732 }
 0x7e0   :  { %v1746_v59 = vmul.f32 0.03125, %v1733_v63  ;;  %1776 = vadd.xlane.f32.xlu0 %v1768_v43  ;;  %v7275_v33 = vmul.f32 %v6792_v51, %v1753_v32  ;;  %v5359_v32 = vpack.c.bf16 %v2053_v3, %v2052_v35 }
 0x7e2   :  { %v1754_v25 = vsub.f32 %v1720_v56, %v1746_v59  ;;  %v1769_v41 = vmul.f32 %v7275_v33, %v7275_v33  ;;  %v1856_v56 = vld [vmem:[#allocation20 + $0x20] sm:$0xff]  ;;  %5360 = vmatprep.subr.bf16.mxu0 %v5359_v32 }
 0x7e3   :  { %v1735_v34 = vpop.xlane.xlu1 %1734  ;;  %v5335_v2 = vpack.c.bf16 %v1857_v12, %v1856_v56  ;;  %5362 = vmatpush3.bf16.msra.mxu0 %v5359_v32 }
 0x7e4   :  { %v1747_v10 = vmul.f32 0.03125, %v1735_v34  ;;  %1778 = vadd.xlane.f32.xlu1 %v1769_v41  ;;  %v7280_v46 = vmul.f32 %v6792_v51, %v1754_v25 }
 0x7e5   :  { %5336 = vmatprep.subr.bf16.mxu1 %v5335_v2 }
 0x7e6   :  { %v1755_v49 = vsub.f32 %v1721_v18, %v1747_v10  ;;  %v1770_v14 = vmul.f32 %v7280_v46, %v7280_v46  ;;  %5338 = vmatpush3.bf16.msra.mxu1 %v5335_v2 }
 0x7e7   :  { %v1737_v17 = vpop.xlane.xlu0 %1736  ;;  %5340 = vmatprep.subr.bf16.mxu1 %v5339_v55 }
 0x7e8   :  { %v1748_v58 = vmul.f32 0.03125, %v1737_v17  ;;  %1780 = vadd.xlane.f32.xlu0 %v1770_v14  ;;  %v7285_v23 = vmul.f32 %v6792_v51, %v1755_v49 }
 0x7ea   :  { %v1756_v24 = vsub.f32 %v1722_v29, %v1748_v58  ;;  %v1771_v6 = vmul.f32 %v7285_v23, %v7285_v23  ;;  %5342 = vmatpush3.bf16.msra.mxu1 %v5339_v55 }
 0x7eb   :  { %v1739_v42 = vpop.xlane.xlu1 %1738 }
 0x7ec   :  { %v1749_v11 = vmul.f32 0.03125, %v1739_v42  ;;  %1782 = vadd.xlane.f32.xlu1 %v1771_v6  ;;  %v7290_v15 = vmul.f32 %v6792_v51, %v1756_v24  ;;  %v4339_v42 = vld [vmem:[#allocation17] ss:$0 sm:$0xff] }
 0x7ee   :  { %v1757_v21 = vsub.f32 %v1723_v38, %v1749_v11  ;;  %v1772_v26 = vmul.f32 %v7290_v15, %v7290_v15 }
 0x7ef   :  { %v1741_v18 = vpop.xlane.xlu0 %1740 }
 0x7f0   :  { %v1750_v40 = vmul.f32 0.03125, %v1741_v18  ;;  %1784 = vadd.xlane.f32.xlu0 %v1772_v26  ;;  %v7295_v30 = vmul.f32 %v6792_v51, %v1757_v21  ;;  %v4340_v21 = vld [vmem:[#allocation19] ss:$0 sm:$0xff] }
 0x7f2   :  { %v1758_v29 = vsub.f32 %v7262_v48, %v1750_v40  ;;  %v1773_v20 = vmul.f32 %v7295_v30, %v7295_v30  ;;  %v5343_v48 = vpack.c.bf16 %v1861_v0, %v1860_v39 }
 0x7f3   :  { %v1743_v54 = vpop.xlane.xlu1 %1742 }
 0x7f4   :  { %v1751_v4 = vmul.f32 0.03125, %v1743_v54  ;;  %1786 = vadd.xlane.f32.xlu1 %v1773_v20  ;;  %v7301_v38 = vmul.f32 %v6792_v51, %v1758_v29  ;;  %5344 = vmatprep.subr.bf16.mxu1 %v5343_v48 }
 0x7f5   :  { %5346 = vmatpush3.bf16.msra.mxu1 %v5343_v48 }
 0x7f6   :  { %v1759_v36 = vsub.f32 %v7266_v61, %v1751_v4  ;;  %v1774_v9 = vmul.f32 %v7301_v38, %v7301_v38  ;;  %5348 = vmatprep.subr.bf16.mxu1 %v5347_v13  ;;  %v1864_v61 = vld [vmem:[#allocation20 + $0x60] sm:$0xff] }
 0x7f7   :  { %v5351_v52 = vpack.c.bf16 %v1865_v31, %v1864_v61 }
 0x7f8   :  { %1788 = vadd.xlane.f32.xlu0 %v1774_v9  ;;  %v7307_v50 = vmul.f32 %v6792_v51, %v1759_v36 }
 0x7f9   :  { %5350 = vmatpush3.bf16.msra.mxu1 %v5347_v13 }
 0x7fa   :  { %v1775_v57 = vmul.f32 %v7307_v50, %v7307_v50  ;;  %5352 = vmatprep.subr.bf16.mxu1 %v5351_v52 }
 0x7fc   :  { %1790 = vadd.xlane.f32.xlu1 %v1775_v57 }
 0x7fd   :  { %5354 = vmatpush3.bf16.msra.mxu1 %v5351_v52 }
 0x7fe   :  { %5356 = vmatprep.subr.bf16.mxu1 %v5355_v22 }
 0x801   :  { %5358 = vmatpush3.bf16.msra.mxu1 %v5355_v22 }
 0x86d   :  { %v1777_v43 = vpop.xlane.xlu0 %1776 }
 0x86e   :  { %v1792_v63 = vmul.f32 0.03125, %v1777_v43 }
 0x870   :  { %v1800_v59 = vadd.f32 1e-12, %v1792_v63 }
 0x871   :  { %v1779_v25 = vpop.xlane.xlu1 %1778 }
 0x872   :  { %5770 = vrsqrt.f32 %v1800_v59  ;;  %v1793_v41 = vmul.f32 0.03125, %v1779_v25 }
 0x874   :  { %v1801_v34 = vadd.f32 1e-12, %v1793_v41 }
 0x875   :  { %v1781_v10 = vpop.xlane.xlu0 %1780 }
 0x876   :  { %5772 = vrsqrt.f32 %v1801_v34  ;;  %v1794_v49 = vmul.f32 0.03125, %v1781_v10  ;;  %v2054_v34 = vld [vmem:[#allocation23 + $0x10] sm:$0xff]  ;;  %v2055_v10 = vld [vmem:[#allocation23 + $0x18] sm:$0xff] }
 0x878   :  { %v1802_v14 = vadd.f32 1e-12, %v1794_v49  ;;  %v2056_v49 = vld [vmem:[#allocation23 + $0x20] sm:$0xff] }
 0x879   :  { %v1783_v17 = vpop.xlane.xlu1 %1782 }
 0x87a   :  { %5774 = vrsqrt.f32 %v1802_v14  ;;  %v1795_v58 = vmul.f32 0.03125, %v1783_v17  ;;  %v2057_v14 = vld [vmem:[#allocation23 + $0x28] sm:$0xff] }
 0x87b   :  { %v5367_v17 = vpack.c.bf16 %v2057_v14, %v2056_v49 }
 0x87c   :  { %v5771_v24 = vpop.eup %5770  ;;  %v1803_v6 = vadd.f32 1e-12, %v1795_v58  ;;  %v2059_v58 = vld [vmem:[#allocation23 + $0x38] sm:$0xff] }
 0x87d   :  { %v1785_v11 = vpop.xlane.xlu0 %1784  ;;  %v1816_v56 = vmul.f32 %v5771_v24, %v7270_v7 }
 0x87e   :  { %5776 = vrsqrt.f32 %v1803_v6  ;;  %v1796_v12 = vmul.f32 0.03125, %v1785_v11  ;;  %v2060_v6 = vld [vmem:[#allocation23 + $0x40] sm:$0xff] }
 0x87f   :  { %v1830_v26 = vmul.f32 %v4339_v42, %v1816_v56  ;;  %v2062_v56 = vld [vmem:[#allocation23 + $0x50] sm:$0xff] }
 0x880   :  { %v5773_v2 = vpop.eup %5772  ;;  %v1804_v18 = vadd.f32 1e-12, %v1796_v12  ;;  %v2063_v12 = vld [vmem:[#allocation23 + $0x58] sm:$0xff] }
 0x881   :  { %v1817_v40 = vmul.f32 %v5773_v2, %v7275_v33  ;;  %v1787_v16 = vpop.xlane.xlu1 %1786  ;;  %v7313_v47 = vadd.f32 %v4340_v21, %v1830_v26  ;;  %v2064_v26 = vld [vmem:[#allocation23 + $0x60] sm:$0xff]  ;;  %v2065_v2 = vld [vmem:[#allocation23 + $0x68] sm:$0xff] }
 0x882   :  { %5778 = vrsqrt.f32 %v1804_v18  ;;  %v1797_v29 = vmul.f32 0.03125, %v1787_v16  ;;  %v5383_v18 = vpack.c.bf16 %v2065_v2, %v2064_v26  ;;  %v2067_v16 = vld [vmem:[#allocation23 + $0x78] sm:$0xff] }
 0x883   :  { %4860 = vmatprep.mubr.f32.mxu1 %v7313_v47  ;;  %v1831_v20 = vmul.f32 %v4339_v42, %v1817_v40  ;;  %v2066_v40 = vld [vmem:[#allocation23 + $0x70] sm:$0xff] }
 0x884   :  { %v5775_v55 = vpop.eup %5774  ;;  %v1805_v54 = vadd.f32 1e-12, %v1797_v29  ;;  %v5387_v29 = vpack.c.bf16 %v2067_v16, %v2066_v40 }
 0x885   :  { %v1789_v4 = vpop.xlane.xlu0 %1788  ;;  %v7316_v7 = vadd.f32 %v4340_v21, %v1831_v20  ;;  %v1818_v39 = vmul.f32 %v5775_v55, %v7280_v46  ;;  %v4341_v20 = vld [vmem:[#allocation22] ss:$0 sm:$0xff] }
 0x886   :  { %5780 = vrsqrt.f32 %v1805_v54  ;;  %v1798_v0 = vmul.f32 0.03125, %v1789_v4 }
 0x887   :  { %4861 = vmatmul.mubr.f32.vlgmr.msra.gmra.mrb[40].mxu1 %v7316_v7  ;;  %v1832_v33 = vmul.f32 %v4339_v42, %v1818_v39 }
 0x888   :  { %v5777_v36 = vpop.eup %5776  ;;  %v1806_v9 = vadd.f32 1e-12, %v1798_v0 }
 0x889   :  { %v1791_v48 = vpop.xlane.xlu1 %1790  ;;  %v7320_v62 = vadd.f32 %v4340_v21, %v1832_v33  ;;  %v1819_v37 = vmul.f32 %v5777_v36, %v7285_v23 }
 0x88a   :  { %5782 = vrsqrt.f32 %v1806_v9  ;;  %v1799_v57 = vmul.f32 0.03125, %v1791_v48 }
 0x88b   :  { %4863 = vmatprep.mubr.f32.mxu1 %v7320_v62  ;;  %v1833_v13 = vmul.f32 %v4339_v42, %v1819_v37 }
 0x88c   :  { %v5779_v61 = vpop.eup %5778  ;;  %v1807_v31 = vadd.f32 1e-12, %v1799_v57 }
 0x88d   :  { %v7324_v46 = vadd.f32 %v4340_v21, %v1833_v13  ;;  %v1820_v52 = vmul.f32 %v5779_v61, %v7290_v15 }
 0x88e   :  { %5784 = vrsqrt.f32 %v1807_v31 }
 0x88f   :  { %4864 = vmatmul.mubr.f32.gmra.mrb[42].mxu1 %v7324_v46  ;;  %v1834_v5 = vmul.f32 %v4339_v42, %v1820_v52 }
 0x890   :  { %v5781_v53 = vpop.eup %5780 }
 0x891   :  { %v7328_v22 = vadd.f32 %v4340_v21, %v1834_v5  ;;  %v1821_v23 = vmul.f32 %v5781_v53, %v7295_v30 }
 0x893   :  { %4866 = vmatprep.mubr.f32.mxu1 %v7328_v22  ;;  %v1835_v35 = vmul.f32 %v4339_v42, %v1821_v23 }
 0x894   :  { %v5783_v3 = vpop.eup %5782 }
 0x895   :  { %v7332_v32 = vadd.f32 %v4340_v21, %v1835_v35  ;;  %v1822_v43 = vmul.f32 %v5783_v3, %v7301_v38  ;;  %v5363_v38 = vpack.c.bf16 %v2055_v10, %v2054_v34 }
 0x897   :  { %4867 = vmatmul.mubr.f32.gmra.mrb[44].mxu1 %v7332_v32  ;;  %v1836_v15 = vmul.f32 %v4339_v42, %v1822_v43  ;;  %5364 = vmatprep.subr.bf16.mxu0 %v5363_v38 }
 0x898   :  { %v5785_v63 = vpop.eup %5784  ;;  %5366 = vmatpush3.bf16.msra.mxu0 %v5363_v38 }
 0x899   :  { %v7336_v59 = vadd.f32 %v4340_v21, %v1836_v15  ;;  %v1823_v25 = vmul.f32 %v5785_v63, %v7307_v50  ;;  %5368 = vmatprep.subr.bf16.mxu0 %v5367_v17  ;;  %v2058_v50 = vld [vmem:[#allocation23 + $0x30] sm:$0xff] }
 0x89a   :  { %v5371_v24 = vpack.c.bf16 %v2059_v58, %v2058_v50 }
 0x89b   :  { %4869 = vmatprep.mubr.f32.mxu1 %v7336_v59  ;;  %v1837_v41 = vmul.f32 %v4339_v42, %v1823_v25  ;;  %v2061_v42 = vld [vmem:[#allocation23 + $0x48] sm:$0xff] }
 0x89c   :  { %5370 = vmatpush3.bf16.msra.mxu0 %v5367_v17  ;;  %v5375_v11 = vpack.c.bf16 %v2061_v42, %v2060_v6 }
 0x89d   :  { %v7340_v30 = vadd.f32 %v4340_v21, %v1837_v41  ;;  %5372 = vmatprep.subr.bf16.mxu0 %v5371_v24  ;;  %v5379_v21 = vpack.c.bf16 %v2063_v12, %v2062_v56 }
 0x89f   :  { %4870 = vmatmul.mubr.f32.gmra.mrb[46].mxu1 %v7340_v30 }
 0x8a0   :  { %2508 = vmatprep.mubr.f32.mxu1 %v6379_v8  ;;  %5374 = vmatpush3.bf16.msra.mxu0 %v5371_v24 }
 0x8a1   :  { %5376 = vmatprep.subr.bf16.mxu0 %v5375_v11 }
 0x8a4   :  { %5378 = vmatpush3.bf16.msra.mxu0 %v5375_v11 }
 0x8a5   :  { %5380 = vmatprep.subr.bf16.mxu0 %v5379_v21 }
 0x8a8   :  { %5382 = vmatpush3.bf16.msra.mxu0 %v5379_v21 }
 0x8a9   :  { %5384 = vmatprep.subr.bf16.mxu0 %v5383_v18 }
 0x8ac   :  { %5386 = vmatpush3.bf16.msra.mxu0 %v5383_v18 }
 0x8ad   :  { %5388 = vmatprep.subr.bf16.mxu0 %v5387_v29 }
 0x8b0   :  { %5390 = vmatpush3.bf16.msra.mxu0 %v5387_v29 }
 0x95a   :  { %v4862_v55 = vpop.f32.mrb[40].mxu1 }
 0x95b   :  { %v1947_v54 = vadd.f32 %v4862_v55, %v4341_v20  ;;  %v1941_v4 = vpop.f32.mrb[41].mxu1 }
 0x95c   :  { %v1942_v39 = vadd.f32 %v4341_v20, %v1941_v4 }
 0x95d   :  { %v1989_v0 = vmul.f32 0.044715, %v1947_v54  ;;  %v1981_v4 = vmul.f32 0.5, %v1947_v54 }
 0x95e   :  { %v1988_v33 = vmul.f32 0.044715, %v1942_v39  ;;  %v1980_v16 = vmul.f32 0.5, %v1942_v39 }
 0x95f   :  { %v1997_v36 = vmul.f32 %v1989_v0, %v1947_v54 }
 0x960   :  { %v1996_v9 = vmul.f32 %v1988_v33, %v1942_v39 }
 0x961   :  { %v2005_v48 = vmul.f32 %v1997_v36, %v1947_v54 }
 0x962   :  { %v4865_v37 = vpop.f32.mrb[42].mxu1  ;;  %v2004_v57 = vmul.f32 %v1996_v9, %v1942_v39 }
 0x963   :  { %v2013_v13 = vadd.f32 %v2005_v48, %v1947_v54  ;;  %v1957_v61 = vadd.f32 %v4865_v37, %v4341_v20  ;;  %v1951_v31 = vpop.f32.mrb[43].mxu1 }
 0x964   :  { %v1952_v52 = vadd.f32 %v4341_v20, %v1951_v31  ;;  %v2012_v5 = vadd.f32 %v2004_v57, %v1942_v39 }
 0x965   :  { %v2021_v53 = vmul.f32 0.7978846, %v2013_v13  ;;  %v1991_v23 = vmul.f32 0.044715, %v1957_v61 }
 0x966   :  { %v1990_v35 = vmul.f32 0.044715, %v1952_v52  ;;  %v2020_v3 = vmul.f32 0.7978846, %v2012_v5  ;;  %v1982_v54 = vmul.f32 0.5, %v1952_v52 }
 0x967   :  { %5786 = vtanh.f32 %v2021_v53  ;;  %v1999_v43 = vmul.f32 %v1991_v23, %v1957_v61 }
 0x968   :  { %v1998_v15 = vmul.f32 %v1990_v35, %v1952_v52  ;;  %5788 = vtanh.f32 %v2020_v3 }
 0x969   :  { %v2007_v63 = vmul.f32 %v1999_v43, %v1957_v61 }
 0x96a   :  { %v4868_v25 = vpop.f32.mrb[44].mxu1  ;;  %v2006_v41 = vmul.f32 %v1998_v15, %v1952_v52  ;;  %v1983_v15 = vmul.f32 0.5, %v1957_v61 }
 0x96b   :  { %v1967_v34 = vadd.f32 %v4868_v25, %v4341_v20  ;;  %v1961_v10 = vpop.f32.mrb[45].mxu1  ;;  %v2015_v38 = vadd.f32 %v2007_v63, %v1957_v61 }
 0x96c   :  { %v1962_v49 = vadd.f32 %v4341_v20, %v1961_v10  ;;  %v2014_v14 = vadd.f32 %v2006_v41, %v1952_v52 }
 0x96d   :  { %v1993_v17 = vmul.f32 0.044715, %v1967_v34  ;;  %v2023_v50 = vmul.f32 0.7978846, %v2015_v38 }
 0x96e   :  { %v1992_v58 = vmul.f32 0.044715, %v1962_v49  ;;  %v2022_v24 = vmul.f32 0.7978846, %v2014_v14 }
 0x96f   :  { %v2001_v6 = vmul.f32 %v1993_v17, %v1967_v34  ;;  %5790 = vtanh.f32 %v2023_v50 }
 0x970   :  { %v2000_v42 = vmul.f32 %v1992_v58, %v1962_v49  ;;  %5792 = vtanh.f32 %v2022_v24  ;;  %v1984_v58 = vmul.f32 0.5, %v1962_v49 }
 0x971   :  { %v5787_v11 = vpop.eup %5786  ;;  %v2009_v56 = vmul.f32 %v2001_v6, %v1967_v34  ;;  %v1985_v6 = vmul.f32 0.5, %v1967_v34 }
 0x972   :  { %v5789_v12 = vpop.eup %5788  ;;  %v4871_v21 = vpop.f32.mrb[46].mxu1  ;;  %v2037_v26 = vadd.f32 1.0, %v5787_v11  ;;  %v2008_v2 = vmul.f32 %v2000_v42, %v1962_v49 }
 0x973   :  { %v1977_v18 = vadd.f32 %v4871_v21, %v4341_v20  ;;  %v1971_v40 = vpop.f32.mrb[47].mxu1  ;;  %v2036_v29 = vadd.f32 1.0, %v5789_v12  ;;  %v2017_v55 = vadd.f32 %v2009_v56, %v1967_v34 }
 0x974   :  { %v1972_v0 = vadd.f32 %v4341_v20, %v1971_v40  ;;  %v2016_v33 = vadd.f32 %v2008_v2, %v1962_v49  ;;  %v2045_v57 = vmul.f32 %v2037_v26, %v1981_v4 }
 0x975   :  { %v1995_v36 = vmul.f32 0.044715, %v1977_v18  ;;  %v2044_v9 = vmul.f32 %v2036_v29, %v1980_v16  ;;  %v2025_v48 = vmul.f32 0.7978846, %v2017_v55  ;;  %v1987_v26 = vmul.f32 0.5, %v1977_v18 }
 0x976   :  { %v1994_v37 = vmul.f32 0.044715, %v1972_v0  ;;  %v2024_v13 = vmul.f32 0.7978846, %v2016_v33  ;;  %v1986_v12 = vmul.f32 0.5, %v1972_v0 }
 0x977   :  { %v2003_v31 = vmul.f32 %v1995_v36, %v1977_v18  ;;  %4904 = vmatprep.mubr.f32.mxu0 %v2044_v9  ;;  %5794 = vtanh.f32 %v2025_v48  ;;  %v4342_v16 = vld [vmem:[#allocation25] ss:$0 sm:$0xff] }
 0x978   :  { %v2002_v5 = vmul.f32 %v1994_v37, %v1972_v0  ;;  %4905 = vmatmul.mubr.f32.vlgmr.msra.gmra.mrb[56].mxu0 %v2045_v57  ;;  %5796 = vtanh.f32 %v2024_v13 }
 0x979   :  { %v5791_v53 = vpop.eup %5790  ;;  %v2011_v23 = vmul.f32 %v2003_v31, %v1977_v18 }
 0x97a   :  { %v5793_v39 = vpop.eup %5792  ;;  %v2039_v35 = vadd.f32 1.0, %v5791_v53  ;;  %v2010_v3 = vmul.f32 %v2002_v5, %v1972_v0 }
 0x97b   :  { %v2038_v20 = vadd.f32 1.0, %v5793_v39  ;;  %v2019_v43 = vadd.f32 %v2011_v23, %v1977_v18 }
 0x97c   :  { %v2018_v63 = vadd.f32 %v2010_v3, %v1972_v0  ;;  %v2047_v10 = vmul.f32 %v2039_v35, %v1983_v15  ;;  %v2318_v3 = vld [vmem:[#allocation11 + $0x318] sm:$0xff]  ;;  %v2321_v15 = vld [vmem:[#allocation11 + $0x330] sm:$0xff] }
 0x97d   :  { %v2046_v25 = vmul.f32 %v2038_v20, %v1982_v54  ;;  %v2027_v41 = vmul.f32 0.7978846, %v2019_v43  ;;  %v2324_v20 = vld [vmem:[#allocation11 + $0x348] sm:$0xff]  ;;  %v2315_v43 = vld [vmem:[#allocation11 + $0x300] sm:$0xff] }
 0x97e   :  { %v2026_v38 = vmul.f32 0.7978846, %v2018_v63  ;;  %v5423_v63 = vpack.c.bf16 %v2324_v20, %v2318_v3 }
 0x97f   :  { %4907 = vmatprep.mubr.f32.mxu0 %v2046_v25  ;;  %5798 = vtanh.f32 %v2027_v41  ;;  %v5393_v25 = vpack.c.bf16 %v2321_v15, %v2315_v43  ;;  %v2317_v41 = vld [vmem:[#allocation11 + $0x310] sm:$0xff] }
 0x980   :  { %4908 = vmatmul.mubr.f32.gmra.mrb[58].mxu0 %v2047_v10  ;;  %5800 = vtanh.f32 %v2026_v38  ;;  %v2323_v10 = vld [vmem:[#allocation11 + $0x340] sm:$0xff]  ;;  %5424 = vmatprep.subr.bf16.mxu0 %v5423_v63 }
 0x981   :  { %v5795_v14 = vpop.eup %5794  ;;  %v5425_v38 = vpack.c.bf16 %v2323_v10, %v2317_v41 }
 0x982   :  { %v5797_v17 = vpop.eup %5796  ;;  %v2041_v50 = vadd.f32 1.0, %v5795_v14  ;;  %v2330_v14 = vld [vmem:[#allocation11 + $0x378] sm:$0xff] }
 0x983   :  { %v2040_v24 = vadd.f32 1.0, %v5797_v17  ;;  %v2336_v17 = vld [vmem:[#allocation11 + $0x3a8] sm:$0xff]  ;;  %5426 = vmatpush1.bf16.msra.mxu0 %v5425_v38 }
 0x984   :  { %v2049_v52 = vmul.f32 %v2041_v50, %v1985_v6  ;;  %v2333_v6 = vld [vmem:[#allocation11 + $0x390] sm:$0xff] }
 0x985   :  { %v2048_v42 = vmul.f32 %v2040_v24, %v1984_v58  ;;  %v5427_v58 = vpack.c.bf16 %v2336_v17, %v2330_v14  ;;  %v2327_v24 = vld [vmem:[#allocation11 + $0x360] sm:$0xff]  ;;  %v2352_v14 = vld [vmem:[#allocation11 + $0x428] sm:$0xff]  ;;  %v2358_v17 = vld [vmem:[#allocation11 + $0x458] sm:$0xff] }
 0x987   :  { %4910 = vmatprep.mubr.f32.mxu0 %v2048_v42  ;;  %v2329_v42 = vld [vmem:[#allocation11 + $0x370] sm:$0xff]  ;;  %5428 = vmatprep.subr.bf16.mxu0 %v5427_v58 }
 0x988   :  { %4911 = vmatmul.mubr.f32.gmra.mrb[60].mxu0 %v2049_v52  ;;  %v5397_v52 = vpack.c.bf16 %v2333_v6, %v2327_v24  ;;  %v5403_v6 = vpack.c.bf16 %v2358_v17, %v2352_v14  ;;  %v2390_v14 = vld [vmem:[#allocation11 + $0x558] sm:$0xff] }
 0x989   :  { %v5799_v61 = vpop.eup %5798 }
 0x98a   :  { %v5801_v11 = vpop.eup %5800  ;;  %v2043_v56 = vadd.f32 1.0, %v5799_v61  ;;  %v2335_v61 = vld [vmem:[#allocation11 + $0x3a0] sm:$0xff] }
 0x98b   :  { %v2042_v21 = vadd.f32 1.0, %v5801_v11  ;;  %v2340_v11 = vld [vmem:[#allocation11 + $0x3c8] sm:$0xff] }
 0x98c   :  { %v2051_v40 = vmul.f32 %v2043_v56, %v1987_v26  ;;  %v2346_v56 = vld [vmem:[#allocation11 + $0x3f8] sm:$0xff] }
 0x98d   :  { %v2050_v2 = vmul.f32 %v2042_v21, %v1986_v12  ;;  %v5429_v12 = vpack.c.bf16 %v2335_v61, %v2329_v42  ;;  %v5399_v21 = vpack.c.bf16 %v2346_v56, %v2340_v11  ;;  %v2342_v26 = vld [vmem:[#allocation11 + $0x3d8] sm:$0xff]  ;;  %v2351_v42 = vld [vmem:[#allocation11 + $0x420] sm:$0xff] }
 0x98f   :  { %4913 = vmatprep.mubr.f32.mxu0 %v2050_v2  ;;  %v2348_v2 = vld [vmem:[#allocation11 + $0x408] sm:$0xff]  ;;  %5430 = vmatpush1.bf16.msra.mxu0 %v5429_v12  ;;  %v2353_v12 = vld [vmem:[#allocation11 + $0x430] sm:$0xff] }
 0x990   :  { %4914 = vmatmul.mubr.f32.gmra.mrb[62].mxu0 %v2051_v40  ;;  %v2339_v40 = vld [vmem:[#allocation11 + $0x3c0] sm:$0xff] }
 0x991   :  { %2621 = vmatprep.mubr.f32.mxu0 %v6379_v8 }
 0xa4b   :  { %v4906_v49 = vpop.f32.mrb[56].mxu0 }
 0xa4c   :  { %v2147_v29 = vadd.f32 %v4906_v49, %v4342_v16  ;;  %v2141_v34 = vpop.f32.mrb[57].mxu0  ;;  %v2345_v49 = vld [vmem:[#allocation11 + $0x3f0] sm:$0xff] }
 0xa4d   :  { %v2142_v55 = vadd.f32 %v4342_v16, %v2141_v34  ;;  %v2347_v34 = vld [vmem:[#allocation11 + $0x400] sm:$0xff] }
 0xa4e   :  { %v7346_v4 = vadd.f32 %v2147_v29, %v7316_v7  ;;  %v2341_v29 = vld [vmem:[#allocation11 + $0x3d0] sm:$0xff] }
 0xa4f   :  { %v7349_v33 = vadd.f32 %v2142_v55, %v7313_v47  ;;  %v5401_v55 = vpack.c.bf16 %v2345_v49, %v2339_v40  ;;  %v2370_v49 = vld [vmem:[#allocation11 + $0x4b8] sm:$0xff] }
 0xa50   :  { %2192 = vadd.xlane.f32.xlu1 %v7346_v4 }
 0xa51   :  { %2190 = vadd.xlane.f32.xlu0 %v7349_v33 }
 0xa53   :  { %v4909_v18 = vpop.f32.mrb[58].mxu0 }
 0xa54   :  { %v2157_v0 = vadd.f32 %v4909_v18, %v4342_v16  ;;  %v2151_v36 = vpop.f32.mrb[59].mxu0  ;;  %v5433_v18 = vpack.c.bf16 %v2347_v34, %v2341_v29  ;;  %v2366_v29 = vld [vmem:[#allocation11 + $0x498] sm:$0xff] }
 0xa55   :  { %v2152_v9 = vadd.f32 %v4342_v16, %v2151_v36 }
 0xa56   :  { %v7354_v48 = vadd.f32 %v2157_v0, %v7324_v46 }
 0xa57   :  { %v7357_v37 = vadd.f32 %v2152_v9, %v7320_v62 }
 0xa58   :  { %2196 = vadd.xlane.f32.xlu1 %v7354_v48 }
 0xa59   :  { %2194 = vadd.xlane.f32.xlu0 %v7357_v37 }
 0xa5b   :  { %v4912_v47 = vpop.f32.mrb[60].mxu0 }
 0xa5c   :  { %v2167_v7 = vadd.f32 %v4912_v47, %v4342_v16  ;;  %v2161_v57 = vpop.f32.mrb[61].mxu0 }
 0xa5d   :  { %v2162_v13 = vadd.f32 %v4342_v16, %v2161_v57 }
 0xa5e   :  { %v7362_v31 = vadd.f32 %v2167_v7, %v7332_v32  ;;  %v2322_v32 = vld [vmem:[#allocation11 + $0x338] sm:$0xff] }
 0xa5f   :  { %v7365_v5 = vadd.f32 %v2162_v13, %v7328_v22  ;;  %v2316_v22 = vld [vmem:[#allocation11 + $0x308] sm:$0xff] }
 0xa60   :  { %2200 = vadd.xlane.f32.xlu1 %v7362_v31  ;;  %v5391_v54 = vpack.c.bf16 %v2322_v32, %v2316_v22 }
 0xa61   :  { %2198 = vadd.xlane.f32.xlu0 %v7365_v5 }
 0xa62   :  { %5392 = vmatprep.subr.bf16.mxu1 %v5391_v54 }
 0xa63   :  { %v4915_v62 = vpop.f32.mrb[62].mxu0  ;;  %5394 = vmatpush1.bf16.msra.mxu1 %v5393_v25 }
 0xa64   :  { %v2177_v46 = vadd.f32 %v4915_v62, %v4342_v16  ;;  %v2171_v53 = vpop.f32.mrb[63].mxu0 }
 0xa65   :  { %v2172_v23 = vadd.f32 %v4342_v16, %v2171_v53  ;;  %v5431_v16 = vpack.c.bf16 %v2348_v2, %v2342_v26 }
 0xa66   :  { %v7370_v39 = vadd.f32 %v2177_v46, %v7340_v30  ;;  %v2328_v30 = vld [vmem:[#allocation11 + $0x368] sm:$0xff] }
 0xa67   :  { %v7373_v35 = vadd.f32 %v2172_v23, %v7336_v59  ;;  %v2334_v59 = vld [vmem:[#allocation11 + $0x398] sm:$0xff]  ;;  %5432 = vmatprep.subr.bf16.mxu0 %v5431_v16  ;;  %v2364_v16 = vld [vmem:[#allocation11 + $0x488] sm:$0xff] }
 0xa68   :  { %2204 = vadd.xlane.f32.xlu1 %v7370_v39  ;;  %v5395_v50 = vpack.c.bf16 %v2334_v59, %v2328_v30  ;;  %5434 = vmatpush1.bf16.msra.mxu0 %v5433_v18  ;;  %v2372_v18 = vld [vmem:[#allocation11 + $0x4c8] sm:$0xff] }
 0xa69   :  { %2202 = vadd.xlane.f32.xlu0 %v7373_v35 }
 0xa6a   :  { %5396 = vmatprep.subr.bf16.mxu1 %v5395_v50  ;;  %v2354_v50 = vld [vmem:[#allocation11 + $0x438] sm:$0xff] }
 0xa6b   :  { %5398 = vmatpush1.bf16.msra.mxu1 %v5397_v52 }
 0xa6c   :  { %5400 = vmatprep.subr.bf16.mxu1 %v5399_v21  ;;  %v2359_v21 = vld [vmem:[#allocation11 + $0x460] sm:$0xff] }
 0xa6d   :  { %v5437_v2 = vpack.c.bf16 %v2359_v21, %v2353_v12  ;;  %v2408_v21 = vld [vmem:[#allocation11 + $0x5e8] sm:$0xff] }
 0xa6f   :  { %5402 = vmatpush1.bf16.msra.mxu1 %v5401_v55  ;;  %v5407_v55 = vpack.c.bf16 %v2370_v49, %v2364_v16  ;;  %v2401_v49 = vld [vmem:[#allocation11 + $0x5b0] sm:$0xff] }
 0xa70   :  { %5404 = vmatprep.subr.bf16.mxu1 %v5403_v6 }
 0xadd   :  { %v2193_v0 = vpop.xlane.xlu1 %2192 }
 0xade   :  { %v2207_v36 = vmul.f32 0.03125, %v2193_v0  ;;  %v2191_v9 = vpop.xlane.xlu0 %2190  ;;  %v2363_v0 = vld [vmem:[#allocation11 + $0x480] sm:$0xff] }
 0xadf   :  { %v2206_v47 = vmul.f32 0.03125, %v2191_v9 }
 0xae0   :  { %v2215_v7 = vsub.f32 %v7346_v4, %v2207_v36  ;;  %v2369_v36 = vld [vmem:[#allocation11 + $0x4b0] sm:$0xff] }
 0xae1   :  { %v2214_v57 = vsub.f32 %v7349_v33, %v2206_v47  ;;  %v5439_v47 = vpack.c.bf16 %v2372_v18, %v2366_v29  ;;  %v2407_v29 = vld [vmem:[#allocation11 + $0x5e0] sm:$0xff]  ;;  %v2326_v18 = vld [vmem:[#allocation11 + $0x358] sm:$0xff] }
 0xae2   :  { %v7380_v13 = vmul.f32 %v6792_v51, %v2215_v7  ;;  %v5409_v7 = vpack.c.bf16 %v2369_v36, %v2363_v0 }
 0xae3   :  { %v7383_v62 = vmul.f32 %v6792_v51, %v2214_v57  ;;  %v2365_v57 = vld [vmem:[#allocation11 + $0x490] sm:$0xff] }
 0xae4   :  { %v2231_v46 = vmul.f32 %v7380_v13, %v7380_v13 }
 0xae5   :  { %v2197_v53 = vpop.xlane.xlu1 %2196  ;;  %v2230_v23 = vmul.f32 %v7383_v62, %v7383_v62 }
 0xae6   :  { %v2209_v22 = vmul.f32 0.03125, %v2197_v53  ;;  %2240 = vadd.xlane.f32.xlu1 %v2231_v46  ;;  %v2195_v32 = vpop.xlane.xlu0 %2194  ;;  %v2371_v46 = vld [vmem:[#allocation11 + $0x4c0] sm:$0xff] }
 0xae7   :  { %v2208_v3 = vmul.f32 0.03125, %v2195_v32  ;;  %2238 = vadd.xlane.f32.xlu0 %v2230_v23  ;;  %v5441_v53 = vpack.c.bf16 %v2371_v46, %v2365_v57  ;;  %v2376_v23 = vld [vmem:[#allocation11 + $0x4e8] sm:$0xff]  ;;  %v2378_v32 = vld [vmem:[#allocation11 + $0x4f8] sm:$0xff] }
 0xae8   :  { %v2217_v4 = vsub.f32 %v7354_v48, %v2209_v22  ;;  %v2382_v22 = vld [vmem:[#allocation11 + $0x518] sm:$0xff] }
 0xae9   :  { %v2216_v33 = vsub.f32 %v7357_v37, %v2208_v3 }
 0xaea   :  { %v7392_v54 = vmul.f32 %v6792_v51, %v2217_v4  ;;  %v5411_v4 = vpack.c.bf16 %v2382_v22, %v2376_v23 }
 0xaeb   :  { %v7395_v20 = vmul.f32 %v6792_v51, %v2216_v33  ;;  %v2384_v33 = vld [vmem:[#allocation11 + $0x528] sm:$0xff] }
 0xaec   :  { %v2233_v43 = vmul.f32 %v7392_v54, %v7392_v54 }
 0xaed   :  { %v2201_v15 = vpop.xlane.xlu1 %2200  ;;  %v2232_v63 = vmul.f32 %v7395_v20, %v7395_v20 }
 0xaee   :  { %v2211_v25 = vmul.f32 0.03125, %v2201_v15  ;;  %2244 = vadd.xlane.f32.xlu1 %v2233_v43  ;;  %v2199_v41 = vpop.xlane.xlu0 %2198  ;;  %v2375_v43 = vld [vmem:[#allocation11 + $0x4e0] sm:$0xff]  ;;  %v2381_v15 = vld [vmem:[#allocation11 + $0x510] sm:$0xff] }
 0xaef   :  { %v2210_v10 = vmul.f32 0.03125, %v2199_v41  ;;  %2242 = vadd.xlane.f32.xlu0 %v2232_v63  ;;  %v5443_v63 = vpack.c.bf16 %v2384_v33, %v2378_v32  ;;  %v2377_v41 = vld [vmem:[#allocation11 + $0x4f0] sm:$0xff] }
 0xaf0   :  { %v2219_v48 = vsub.f32 %v7362_v31, %v2211_v25  ;;  %v2360_v31 = vld [vmem:[#allocation11 + $0x468] sm:$0xff]  ;;  %v5413_v25 = vpack.c.bf16 %v2381_v15, %v2375_v43 }
 0xaf1   :  { %v2218_v37 = vsub.f32 %v7365_v5, %v2210_v10  ;;  %v2357_v5 = vld [vmem:[#allocation11 + $0x450] sm:$0xff]  ;;  %v5435_v11 = vpack.c.bf16 %v2360_v31, %v2354_v50  ;;  %v2383_v10 = vld [vmem:[#allocation11 + $0x520] sm:$0xff]  ;;  %v2396_v50 = vld [vmem:[#allocation11 + $0x588] sm:$0xff] }
 0xaf2   :  { %v7404_v30 = vmul.f32 %v6792_v51, %v2219_v48  ;;  %v5405_v56 = vpack.c.bf16 %v2357_v5, %v2351_v42  ;;  %v5445_v48 = vpack.c.bf16 %v2383_v10, %v2377_v41  ;;  %v5447_v6 = vpack.c.bf16 %v2396_v50, %v2390_v14  ;;  %v2389_v42 = vld [vmem:[#allocation11 + $0x550] sm:$0xff]  ;;  %v2395_v5 = vld [vmem:[#allocation11 + $0x580] sm:$0xff]  ;;  %v2332_v50 = vld [vmem:[#allocation11 + $0x388] sm:$0xff] }
 0xaf3   :  { %v7407_v38 = vmul.f32 %v6792_v51, %v2218_v37  ;;  %5436 = vmatprep.subr.bf16.mxu0 %v5435_v11  ;;  %v2388_v37 = vld [vmem:[#allocation11 + $0x548] sm:$0xff]  ;;  %v2406_v11 = vld [vmem:[#allocation11 + $0x5d8] sm:$0xff] }
 0xaf4   :  { %v2235_v59 = vmul.f32 %v7404_v30, %v7404_v30  ;;  %5406 = vmatpush1.bf16.msra.mxu1 %v5405_v56  ;;  %5438 = vmatpush1.bf16.msra.mxu0 %v5437_v2  ;;  %v2402_v56 = vld [vmem:[#allocation11 + $0x5b8] sm:$0xff]  ;;  %v2405_v2 = vld [vmem:[#allocation11 + $0x5d0] sm:$0xff] }
 0xaf5   :  { %v2205_v58 = vpop.xlane.xlu1 %2204  ;;  %v2234_v24 = vmul.f32 %v7407_v38, %v7407_v38  ;;  %5408 = vmatprep.subr.bf16.mxu1 %v5407_v55  ;;  %5440 = vmatprep.subr.bf16.mxu0 %v5439_v47  ;;  %v2320_v55 = vld [vmem:[#allocation11 + $0x328] sm:$0xff] }
 0xaf6   :  { %v2213_v52 = vmul.f32 0.03125, %v2205_v58  ;;  %2248 = vadd.xlane.f32.xlu1 %v2235_v59  ;;  %v2203_v61 = vpop.xlane.xlu0 %2202  ;;  %v2394_v59 = vld [vmem:[#allocation11 + $0x578] sm:$0xff]  ;;  %v2387_v58 = vld [vmem:[#allocation11 + $0x540] sm:$0xff]  ;;  %v5455_v0 = vpack.c.bf16 %v2326_v18, %v2320_v55  ;;  %v2349_v18 = vld [vmem:[#allocation11 + $0x410] sm:$0xff] }
 0xaf7   :  { %v2212_v26 = vmul.f32 0.03125, %v2203_v61  ;;  %2246 = vadd.xlane.f32.xlu0 %v2234_v24  ;;  %v5415_v17 = vpack.c.bf16 %v2394_v59, %v2388_v37  ;;  %v2393_v24 = vld [vmem:[#allocation11 + $0x570] sm:$0xff]  ;;  %v2400_v61 = vld [vmem:[#allocation11 + $0x5a8] sm:$0xff]  ;;  %v2343_v55 = vld [vmem:[#allocation11 + $0x3e0] sm:$0xff] }
 0xaf8   :  { %v2221_v40 = vsub.f32 %v7370_v39, %v2213_v52  ;;  %5410 = vmatpush1.bf16.msra.mxu1 %v5409_v7  ;;  %5442 = vmatpush1.bf16.msra.mxu0 %v5441_v53  ;;  %v5417_v31 = vpack.c.bf16 %v2393_v24, %v2387_v58  ;;  %v5449_v52 = vpack.c.bf16 %v2395_v5, %v2389_v42  ;;  %v2325_v37 = vld [vmem:[#allocation11 + $0x350] sm:$0xff]  ;;  %v2338_v58 = vld [vmem:[#allocation11 + $0x3b8] sm:$0xff]  ;;  %v2331_v5 = vld [vmem:[#allocation11 + $0x380] sm:$0xff] }
 0xaf9   :  { %v2220_v34 = vsub.f32 %v7373_v35, %v2212_v26  ;;  %5412 = vmatprep.subr.bf16.mxu1 %v5411_v4  ;;  %5444 = vmatprep.subr.bf16.mxu0 %v5443_v63  ;;  %v5419_v12 = vpack.c.bf16 %v2406_v11, %v2400_v61  ;;  %v2399_v26 = vld [vmem:[#allocation11 + $0x5a0] sm:$0xff]  ;;  %v7425_v63 = vld [vmem:[#allocation26] ss:$0 sm:$0xff]  ;;  %v5459_v61 = vpack.c.bf16 %v2338_v58, %v2332_v50  ;;  %v2386_v50 = vld [vmem:[#allocation11 + $0x538] sm:$0xff] }
 0xafa   :  { %v7416_v9 = vmul.f32 %v6792_v51, %v2221_v40  ;;  %v5451_v40 = vpack.c.bf16 %v2408_v21, %v2402_v56  ;;  %v5421_v16 = vpack.c.bf16 %v2405_v2, %v2399_v26  ;;  %v2337_v11 = vld [vmem:[#allocation11 + $0x3b0] sm:$0xff]  ;;  %v2350_v56 = vld [vmem:[#allocation11 + $0x418] sm:$0xff] }
 0xafb   :  { %v7419_v39 = vmul.f32 %v6792_v51, %v2220_v34  ;;  %v5453_v34 = vpack.c.bf16 %v2407_v29, %v2401_v49  ;;  %v5461_v2 = vpack.c.bf16 %v2337_v11, %v2331_v5  ;;  %v2392_v5 = vld [vmem:[#allocation11 + $0x568] sm:$0xff] }
 0xafc   :  { %v2237_v35 = vmul.f32 %v7416_v9, %v7416_v9  ;;  %5414 = vmatpush1.bf16.msra.mxu1 %v5413_v25  ;;  %5446 = vmatpush1.bf16.msra.mxu0 %v5445_v48  ;;  %v2319_v48 = vld [vmem:[#allocation11 + $0x320] sm:$0xff] }
 0xafd   :  { %v2236_v3 = vmul.f32 %v7419_v39, %v7419_v39  ;;  %5416 = vmatprep.subr.bf16.mxu1 %v5415_v17  ;;  %5448 = vmatprep.subr.bf16.mxu0 %v5447_v6  ;;  %v7429_v17 = vld [vmem:[#allocation28] ss:$0 sm:$0xff]  ;;  %v5457_v42 = vpack.c.bf16 %v2325_v37, %v2319_v48  ;;  %v2367_v48 = vld [vmem:[#allocation11 + $0x4a0] sm:$0xff]  ;;  %v2373_v37 = vld [vmem:[#allocation11 + $0x4d0] sm:$0xff] }
 0xafe   :  { %2252 = vadd.xlane.f32.xlu1 %v2237_v35 }
 0xaff   :  { %2250 = vadd.xlane.f32.xlu0 %v2236_v3 }
 0xb00   :  { %5418 = vmatpush1.bf16.msra.mxu1 %v5417_v31  ;;  %5450 = vmatpush1.bf16.msra.mxu0 %v5449_v52 }
 0xb01   :  { %5420 = vmatprep.subr.bf16.mxu1 %v5419_v12  ;;  %5452 = vmatprep.subr.bf16.mxu0 %v5451_v40 }
 0xb04   :  { %5422 = vmatpush1.bf16.msra.mxu1 %v5421_v16  ;;  %5454 = vmatpush1.bf16.msra.mxu0 %v5453_v34 }
 0xb05   :  { %5456 = vmatprep.subr.bf16.mxu1 %v5455_v0 }
 0xb73   :  { %v2241_v36 = vpop.xlane.xlu1 %2240 }
 0xb74   :  { %v2255_v47 = vmul.f32 0.03125, %v2241_v36  ;;  %v2239_v7 = vpop.xlane.xlu0 %2238 }
 0xb75   :  { %v2254_v57 = vmul.f32 0.03125, %v2239_v7  ;;  %v2362_v7 = vld [vmem:[#allocation11 + $0x478] sm:$0xff] }
 0xb76   :  { %v2263_v46 = vadd.f32 1e-12, %v2255_v47  ;;  %v2356_v47 = vld [vmem:[#allocation11 + $0x448] sm:$0xff] }
 0xb77   :  { %v2262_v53 = vadd.f32 1e-12, %v2254_v57 }
 0xb78   :  { %5802 = vrsqrt.f32 %v2263_v46 }
 0xb79   :  { %5804 = vrsqrt.f32 %v2262_v53 }
 0xb7b   :  { %v2245_v35 = vpop.xlane.xlu1 %2244 }
 0xb7c   :  { %v2257_v23 = vmul.f32 0.03125, %v2245_v35  ;;  %v2243_v22 = vpop.xlane.xlu0 %2242  ;;  %v5465_v35 = vpack.c.bf16 %v2349_v18, %v2343_v55 }
 0xb7d   :  { %v2256_v32 = vmul.f32 0.03125, %v2243_v22  ;;  %v5467_v22 = vpack.c.bf16 %v2362_v7, %v2356_v47 }
 0xb7e   :  { %v2265_v3 = vadd.f32 1e-12, %v2257_v23 }
 0xb7f   :  { %v2264_v4 = vadd.f32 1e-12, %v2256_v32  ;;  %v2361_v32 = vld [vmem:[#allocation11 + $0x470] sm:$0xff] }
 0xb80   :  { %5806 = vrsqrt.f32 %v2265_v3  ;;  %v2368_v3 = vld [vmem:[#allocation11 + $0x4a8] sm:$0xff] }
 0xb81   :  { %5808 = vrsqrt.f32 %v2264_v4  ;;  %v2374_v4 = vld [vmem:[#allocation11 + $0x4d8] sm:$0xff] }
 0xb82   :  { %v5803_v33 = vpop.eup %5802 }
 0xb83   :  { %v5805_v43 = vpop.eup %5804  ;;  %v2249_v15 = vpop.xlane.xlu1 %2248  ;;  %v2279_v59 = vmul.f32 %v5803_v33, %v7380_v13  ;;  %v2344_v13 = vld [vmem:[#allocation11 + $0x3e8] sm:$0xff] }
 0xb84   :  { %v2278_v25 = vmul.f32 %v5805_v43, %v7383_v62  ;;  %v2259_v41 = vmul.f32 0.03125, %v2249_v15  ;;  %v2247_v10 = vpop.xlane.xlu0 %2246  ;;  %v5463_v40 = vpack.c.bf16 %v2350_v56, %v2344_v13 }
 0xb85   :  { %v2258_v14 = vmul.f32 0.03125, %v2247_v10  ;;  %v2293_v52 = vmul.f32 %v7425_v63, %v2279_v59 }
 0xb86   :  { %v2267_v24 = vadd.f32 1e-12, %v2259_v41  ;;  %v2292_v6 = vmul.f32 %v7425_v63, %v2278_v25  ;;  %v5471_v25 = vpack.c.bf16 %v2374_v4, %v2368_v3 }
 0xb87   :  { %v2266_v31 = vadd.f32 1e-12, %v2258_v14  ;;  %v7441_v29 = vadd.f32 %v7429_v17, %v2293_v52  ;;  %v2380_v14 = vld [vmem:[#allocation11 + $0x508] sm:$0xff]  ;;  %v2398_v52 = vld [vmem:[#allocation11 + $0x598] sm:$0xff] }
 0xb88   :  { %5810 = vrsqrt.f32 %v2267_v24  ;;  %v7433_v62 = vadd.f32 %v7429_v17, %v2292_v6  ;;  %v5473_v24 = vpack.c.bf16 %v2373_v37, %v2367_v48  ;;  %v2379_v6 = vld [vmem:[#allocation11 + $0x500] sm:$0xff]  ;;  %v5479_v56 = vpack.c.bf16 %v2398_v52, %v2392_v5 }
 0xb89   :  { %5812 = vrsqrt.f32 %v2266_v31  ;;  %v5475_v31 = vpack.c.bf16 %v2386_v50, %v2380_v14 }
 0xb8a   :  { %v5807_v12 = vpop.eup %5806  ;;  %2509 = vmatmul.mubr.f32.vlgmr.msra.gmra.mrb[48].mxu1 %v7433_v62  ;;  %2622 = vmatmul.mubr.f32.vlgmr.msra.gmra.mrb[64].mxu0 %v7433_v62 }
 0xb8b   :  { %v5809_v21 = vpop.eup %5808  ;;  %v2253_v26 = vpop.xlane.xlu1 %2252  ;;  %5458 = vmatpush1.bf16.msra.mxu1 %v5457_v42  ;;  %2514 = vmatprep.mubr.f32.mxu1 %v6379_v8  ;;  %v2281_v0 = vmul.f32 %v5807_v12, %v7392_v54  ;;  %v2385_v42 = vld [vmem:[#allocation11 + $0x530] sm:$0xff] }
 0xb8c   :  { %v2261_v16 = vmul.f32 0.03125, %v2253_v26  ;;  %v2251_v49 = vpop.xlane.xlu0 %2250  ;;  %2627 = vmatprep.mubr.f32.mxu0 %v6379_v8  ;;  %5460 = vmatprep.subr.bf16.mxu1 %v5459_v61  ;;  %v2280_v34 = vmul.f32 %v5809_v21, %v7395_v20  ;;  %v2355_v20 = vld [vmem:[#allocation11 + $0x440] sm:$0xff]  ;;  %v5477_v13 = vpack.c.bf16 %v2385_v42, %v2379_v6 }
 0xb8d   :  { %v2260_v36 = vmul.f32 0.03125, %v2251_v49  ;;  %v2295_v23 = vmul.f32 %v7425_v63, %v2281_v0  ;;  %v5469_v15 = vpack.c.bf16 %v2361_v32, %v2355_v20  ;;  %v2391_v26 = vld [vmem:[#allocation11 + $0x560] sm:$0xff]  ;;  %v2410_v49 = vld [vmem:[#allocation11 + $0x5f8] sm:$0xff] }
 0xb8e   :  { %v2269_v57 = vadd.f32 1e-12, %v2261_v16  ;;  %2515 = vmatmul.mubr.f32.gmra.mrb[50].mxu1 %v7441_v29  ;;  %2628 = vmatmul.mubr.f32.gmra.mrb[66].mxu0 %v7441_v29  ;;  %v2294_v46 = vmul.f32 %v7425_v63, %v2280_v34  ;;  %v2404_v16 = vld [vmem:[#allocation11 + $0x5c8] sm:$0xff]  ;;  %v2403_v0 = vld [vmem:[#allocation11 + $0x5c0] sm:$0xff] }
 0xb8f   :  { %v2268_v53 = vadd.f32 1e-12, %v2260_v36  ;;  %5462 = vmatpush1.bf16.msra.mxu1 %v5461_v2  ;;  %2520 = vmatprep.mubr.f32.mxu1 %v6379_v8  ;;  %v7459_v41 = vadd.f32 %v7429_v17, %v2295_v23  ;;  %v2397_v2 = vld [vmem:[#allocation11 + $0x590] sm:$0xff]  ;;  %v5483_v18 = vpack.c.bf16 %v2410_v49, %v2404_v16 }
 0xb90   :  { %5814 = vrsqrt.f32 %v2269_v57  ;;  %2633 = vmatprep.mubr.f32.mxu0 %v6379_v8  ;;  %v7451_v54 = vadd.f32 %v7429_v17, %v2294_v46  ;;  %5464 = vmatprep.subr.bf16.mxu1 %v5463_v40  ;;  %v5481_v55 = vpack.c.bf16 %v2397_v2, %v2391_v26  ;;  %v2409_v36 = vld [vmem:[#allocation11 + $0x5f0] sm:$0xff] }
 0xb91   :  { %5816 = vrsqrt.f32 %v2268_v53  ;;  %v5485_v47 = vpack.c.bf16 %v2409_v36, %v2403_v0 }
 0xb92   :  { %v5811_v33 = vpop.eup %5810  ;;  %2521 = vmatmul.mubr.f32.gmra.mrb[52].mxu1 %v7451_v54  ;;  %2634 = vmatmul.mubr.f32.gmra.mrb[68].mxu0 %v7451_v54 }
 0xb93   :  { %v5813_v43 = vpop.eup %5812  ;;  %5466 = vmatpush1.bf16.msra.mxu1 %v5465_v35  ;;  %2526 = vmatprep.mubr.f32.mxu1 %v6379_v8  ;;  %v2283_v59 = vmul.f32 %v5811_v33, %v7404_v30 }
 0xb94   :  { %2639 = vmatprep.mubr.f32.mxu0 %v6379_v8  ;;  %5468 = vmatprep.subr.bf16.mxu1 %v5467_v22  ;;  %v2282_v10 = vmul.f32 %v5813_v43, %v7407_v38 }
 0xb95   :  { %v2297_v30 = vmul.f32 %v7425_v63, %v2283_v59 }
 0xb96   :  { %2527 = vmatmul.mubr.f32.gmra.mrb[54].mxu1 %v7459_v41  ;;  %2640 = vmatmul.mubr.f32.gmra.mrb[70].mxu0 %v7459_v41  ;;  %v2296_v58 = vmul.f32 %v7425_v63, %v2282_v10 }
 0xb97   :  { %5470 = vmatpush1.bf16.msra.mxu1 %v5469_v15  ;;  %2532 = vmatprep.mubr.f32.mxu1 %v6379_v8  ;;  %v7477_v12 = vadd.f32 %v7429_v17, %v2297_v30 }
 0xb98   :  { %2645 = vmatprep.mubr.f32.mxu0 %v6379_v8  ;;  %v7469_v38 = vadd.f32 %v7429_v17, %v2296_v58  ;;  %5472 = vmatprep.subr.bf16.mxu1 %v5471_v25 }
 0xb9a   :  { %v5815_v61 = vpop.eup %5814  ;;  %2533 = vmatmul.mubr.f32.gmra.mrb[56].mxu1 %v7469_v38  ;;  %2646 = vmatmul.mubr.f32.gmra.mrb[72].mxu0 %v7469_v38 }
 0xb9b   :  { %v5817_v11 = vpop.eup %5816  ;;  %5474 = vmatpush1.bf16.msra.mxu1 %v5473_v24  ;;  %2538 = vmatprep.mubr.f32.mxu1 %v6379_v8  ;;  %v2285_v40 = vmul.f32 %v5815_v61, %v7416_v9 }
 0xb9c   :  { %2651 = vmatprep.mubr.f32.mxu0 %v6379_v8  ;;  %5476 = vmatprep.subr.bf16.mxu1 %v5475_v31  ;;  %v2284_v21 = vmul.f32 %v5817_v11, %v7419_v39 }
 0xb9d   :  { %v2299_v9 = vmul.f32 %v7425_v63, %v2285_v40 }
 0xb9e   :  { %2539 = vmatmul.mubr.f32.gmra.mrb[58].mxu1 %v7477_v12  ;;  %2652 = vmatmul.mubr.f32.gmra.mrb[74].mxu0 %v7477_v12  ;;  %v2298_v34 = vmul.f32 %v7425_v63, %v2284_v21  ;;  %v7515_v63 = vld [vmem:[#allocation13 + $0x6] sm:$0x3f] }
 0xb9f   :  { %5478 = vmatpush1.bf16.msra.mxu1 %v5477_v13  ;;  %2544 = vmatprep.mubr.f32.mxu1 %v6379_v8  ;;  %v7495_v7 = vadd.f32 %v7429_v17, %v2299_v9  ;;  %v2425_v35 = vrot.slane %v7515_v63, %v538_v28  ;;  %v2429_v23 = vrot.slane %v7515_v63, %v542_v45 }
 0xba0   :  { %2657 = vmatprep.mubr.f32.mxu0 %v6379_v8  ;;  %v7487_v39 = vadd.f32 %v7429_v17, %v2298_v34  ;;  %5480 = vmatprep.subr.bf16.mxu1 %v5479_v56  ;;  %v7520_v17 = vrot.slane %v7515_v63, %v530_v1 }
 0xba2   :  { %2545 = vmatmul.mubr.f32.gmra.mrb[60].mxu1 %v7487_v39  ;;  %2658 = vmatmul.mubr.f32.gmra.mrb[76].mxu0 %v7487_v39 }
 0xba3   :  { %5482 = vmatpush1.bf16.msra.mxu1 %v5481_v55  ;;  %2550 = vmatprep.mubr.f32.mxu1 %v6379_v8 }
 0xba4   :  { %2663 = vmatprep.mubr.f32.mxu0 %v6379_v8  ;;  %5484 = vmatprep.subr.bf16.mxu1 %v5483_v18 }
 0xba6   :  { %2551 = vmatmul.mubr.f32.gmra.mrb[62].mxu1 %v7495_v7  ;;  %2664 = vmatmul.mubr.f32.gmra.mrb[78].mxu0 %v7495_v7 }
 0xba7   :  { %5486 = vmatpush1.bf16.msra.mxu1 %v5485_v47  ;;  %2734 = vmatprep.mubr.f32.mxu1 %v6379_v8 }
 0xbaa   :  { %2735 = vmatmul.mubr.f32.vlgmr.msra.gmra.mrb[64].mxu1 %v7433_v62 }
 0xbab   :  { %2740 = vmatprep.mubr.f32.mxu1 %v6379_v8 }
 0xbae   :  { %2741 = vmatmul.mubr.f32.gmra.mrb[66].mxu1 %v7441_v29 }
 0xbaf   :  { %2746 = vmatprep.mubr.f32.mxu1 %v6379_v8 }
 0xbb2   :  { %2747 = vmatmul.mubr.f32.gmra.mrb[68].mxu1 %v7451_v54 }
 0xbb3   :  { %2752 = vmatprep.mubr.f32.mxu1 %v6379_v8 }
 0xbb6   :  { %2753 = vmatmul.mubr.f32.gmra.mrb[70].mxu1 %v7459_v41 }
 0xbb7   :  { %2758 = vmatprep.mubr.f32.mxu1 %v6379_v8 }
 0xbba   :  { %2759 = vmatmul.mubr.f32.gmra.mrb[72].mxu1 %v7469_v38 }
 0xbbb   :  { %2764 = vmatprep.mubr.f32.mxu1 %v6379_v8 }
 0xbbe   :  { %2765 = vmatmul.mubr.f32.gmra.mrb[74].mxu1 %v7477_v12 }
 0xbbf   :  { %2770 = vmatprep.mubr.f32.mxu1 %v6379_v8 }
 0xbc2   :  { %2771 = vmatmul.mubr.f32.gmra.mrb[76].mxu1 %v7487_v39 }
 0xbc3   :  { %2776 = vmatprep.mubr.f32.mxu1 %v6379_v8 }
 0xbc6   :  { %2777 = vmatmul.mubr.f32.gmra.mrb[78].mxu1 %v7495_v7 }
 0xc5d   :  { %v2510_v57 = vpop.f32.mrb[48].mxu1  ;;  %v2623_v46 = vpop.f32.mrb[64].mxu0 }
 0xc5e   :  { %v2511_v53 = vadd.f32 %v2510_v57, %v7520_v17  ;;  %v7526_v20 = vpop.f32.mrb[49].mxu1  ;;  %v2625_v8 = vpop.f32.mrb[65].mxu0  ;;  %v2624_v32 = vadd.f32 %v2623_v46, %v2425_v35 }
 0xc5f   :  { %v2626_v43 = vadd.f32 %v2625_v8, %v2429_v23 }
 0xc60   :  { %4932 = vmatprep.mubr.f32.mxu0 %v2511_v53 }
 0xc61   :  { %v7531_v22 = vpop.f32.mrb[50].mxu1  ;;  %v2629_v1 = vpop.f32.mrb[66].mxu0 }
 0xc62   :  { %v2630_v3 = vadd.f32 %v2629_v1, %v2425_v35  ;;  %v7533_v4 = vpop.f32.mrb[51].mxu1  ;;  %v2631_v33 = vpop.f32.mrb[67].mxu0 }
 0xc63   :  { %v2632_v15 = vadd.f32 %v2631_v33, %v2429_v23 }
 0xc64   :  { %v5487_v25 = vpack.c.bf16 %v2630_v3, %v2624_v32 }
 0xc65   :  { %v7535_v28 = vpack.c.bf16 %v2632_v15, %v2626_v43  ;;  %v7537_v10 = vpop.f32.mrb[52].mxu1  ;;  %v2635_v48 = vpop.f32.mrb[68].mxu0 }
 0xc66   :  { %v7539_v37 = vpop.f32.mrb[53].mxu1  ;;  %v2637_v45 = vpop.f32.mrb[69].mxu0  ;;  %5488 = vmatprep.subr.bf16.mxu0 %v5487_v25  ;;  %v2636_v50 = vadd.f32 %v2635_v48, %v2425_v35  ;;  %v7562_v48 = vrot.slane %v7515_v63, %v546_v44 }
 0xc67   :  { %5490 = vmatpush3.bf16.xpose.msra.mxu0 %v5487_v25  ;;  %v2638_v30 = vadd.f32 %v2637_v45, %v2429_v23 }
 0xc69   :  { %v7541_v59 = vpop.f32.mrb[54].mxu1  ;;  %v2641_v14 = vpop.f32.mrb[70].mxu0 }
 0xc6a   :  { %v2642_v58 = vadd.f32 %v2641_v14, %v2425_v35  ;;  %v7543_v24 = vpop.f32.mrb[55].mxu1  ;;  %v2643_v6 = vpop.f32.mrb[71].mxu0 }
 0xc6b   :  { %v2644_v31 = vadd.f32 %v2643_v6, %v2429_v23 }
 0xc6c   :  { %v5491_v42 = vpack.c.bf16 %v2642_v58, %v2636_v50 }
 0xc6d   :  { %v7545_v5 = vpack.c.bf16 %v2644_v31, %v2638_v30  ;;  %v2534_v52 = vpop.f32.mrb[56].mxu1  ;;  %v2647_v61 = vpop.f32.mrb[72].mxu0  ;;  %v2517_v30 = vadd.f32 %v7531_v22, %v7520_v17 }
 0xc6e   :  { %v7547_v11 = vpop.f32.mrb[57].mxu1  ;;  %v2649_v13 = vpop.f32.mrb[73].mxu0  ;;  %5492 = vmatprep.subr.bf16.mxu0 %v5491_v42  ;;  %v2648_v26 = vadd.f32 %v2647_v61, %v2425_v35  ;;  %v2535_v22 = vadd.f32 %v2534_v52, %v7520_v17 }
 0xc6f   :  { %5494 = vmatpush3.bf16.xpose.msra.mxu0 %v5491_v42  ;;  %v2650_v49 = vadd.f32 %v2649_v13, %v2429_v23 }
 0xc71   :  { %v2540_v56 = vpop.f32.mrb[58].mxu1  ;;  %v2653_v21 = vpop.f32.mrb[74].mxu0 }
 0xc72   :  { %v2654_v2 = vadd.f32 %v2653_v21, %v2425_v35  ;;  %v7549_v40 = vpop.f32.mrb[59].mxu1  ;;  %v2655_v16 = vpop.f32.mrb[75].mxu0 }
 0xc73   :  { %v2656_v34 = vadd.f32 %v2655_v16, %v2429_v23 }
 0xc74   :  { %v5495_v55 = vpack.c.bf16 %v2654_v2, %v2648_v26  ;;  %v2529_v26 = vadd.f32 %v7541_v59, %v7520_v17 }
 0xc75   :  { %v7551_v9 = vpack.c.bf16 %v2656_v34, %v2650_v49  ;;  %v2546_v18 = vpop.f32.mrb[60].mxu1  ;;  %v2659_v0 = vpop.f32.mrb[76].mxu0 }
 0xc76   :  { %v7553_v36 = vpop.f32.mrb[61].mxu1  ;;  %v2661_v47 = vpop.f32.mrb[77].mxu0  ;;  %5496 = vmatprep.subr.bf16.mxu0 %v5495_v55  ;;  %v2660_v53 = vadd.f32 %v2659_v0, %v2425_v35  ;;  %v2547_v59 = vadd.f32 %v2546_v18, %v7520_v17 }
 0xc77   :  { %5498 = vmatpush3.bf16.xpose.msra.mxu0 %v5495_v55  ;;  %v2662_v3 = vadd.f32 %v2661_v47, %v2429_v23  ;;  %v2541_v55 = vadd.f32 %v2540_v56, %v7520_v17 }
 0xc79   :  { %v2552_v57 = vpop.f32.mrb[62].mxu1  ;;  %v2665_v46 = vpop.f32.mrb[78].mxu0 }
 0xc7a   :  { %v2666_v8 = vadd.f32 %v2665_v46, %v2425_v35  ;;  %v7555_v1 = vpop.f32.mrb[63].mxu1  ;;  %v2667_v32 = vpop.f32.mrb[79].mxu0  ;;  %v7567_v35 = vrot.slane %v7515_v63, %v550_v19  ;;  %v2523_v19 = vadd.f32 %v7537_v10, %v7520_v17 }
 0xc7b   :  { %v2668_v33 = vadd.f32 %v2667_v32, %v2429_v23 }
 0xc7c   :  { %v5499_v43 = vpack.c.bf16 %v2666_v8, %v2660_v53  ;;  %v2553_v8 = vadd.f32 %v2552_v57, %v7520_v17 }
 0xc7d   :  { %v7557_v15 = vpack.c.bf16 %v2668_v33, %v2662_v3  ;;  %v2736_v25 = vpop.f32.mrb[64].mxu1 }
 0xc7e   :  { %v2738_v45 = vpop.f32.mrb[65].mxu1  ;;  %5500 = vmatprep.subr.bf16.mxu0 %v5499_v43  ;;  %v2737_v14 = vadd.f32 %v2736_v25, %v7562_v48 }
 0xc7f   :  { %5502 = vmatpush3.bf16.xpose.msra.mxu0 %v5499_v43  ;;  %v2739_v6 = vadd.f32 %v2738_v45, %v7567_v35 }
 0xc80   :  { %5520 = vmatprep.subr.bf16.mxu0 %v7535_v28 }
 0xc81   :  { %v2742_v23 = vpop.f32.mrb[66].mxu1 }
 0xc82   :  { %v2743_v50 = vadd.f32 %v2742_v23, %v7562_v48  ;;  %v2744_v58 = vpop.f32.mrb[67].mxu1 }
 0xc83   :  { %v2745_v44 = vadd.f32 %v2744_v58, %v7567_v35 }
 0xc84   :  { %v5503_v31 = vpack.c.bf16 %v2743_v50, %v2737_v14 }
 0xc85   :  { %v7578_v42 = vpack.c.bf16 %v2745_v44, %v2739_v6  ;;  %v2748_v61 = vpop.f32.mrb[68].mxu1 }
 0xc86   :  { %v2750_v13 = vpop.f32.mrb[69].mxu1  ;;  %4933 = vmatmul.mubr.f32.vlgmr.msra.gmra.mrb[80].mxu0 %v2517_v30  ;;  %5504 = vmatprep.subr.bf16.mxu1 %v5503_v31  ;;  %v2749_v2 = vadd.f32 %v2748_v61, %v7562_v48 }
 0xc87   :  { %v2751_v21 = vadd.f32 %v2750_v13, %v7567_v35  ;;  %4935 = vmatprep.mubr.f32.mxu0 %v2523_v19  ;;  %5506 = vmatpush3.bf16.msra.mxu1 %v5503_v31  ;;  %v5930_v19 = vld [vmem:[#allocation5 + $0x8] sm:$0xff] }
 0xc88   :  { %5522 = vmatpush3.bf16.xpose.msra.mxu0 %v7535_v28  ;;  %v2421_v28 = vrot.slane %v7515_v63, %v534_v27 }
 0xc89   :  { %5524 = vmatprep.subr.bf16.mxu0 %v7545_v5  ;;  %v2754_v10 = vpop.f32.mrb[70].mxu1 }
 0xc8a   :  { %v2755_v16 = vadd.f32 %v2754_v10, %v7562_v48  ;;  %v2756_v49 = vpop.f32.mrb[71].mxu1  ;;  %4936 = vmatmul.mubr.f32.gmra.mrb[82].mxu0 %v2529_v26  ;;  %v2513_v60 = vadd.f32 %v7526_v20, %v2421_v28  ;;  %v2525_v58 = vadd.f32 %v7539_v37, %v2421_v28  ;;  %v2537_v6 = vadd.f32 %v7547_v11, %v2421_v28  ;;  %v5931_v11 = vld [vmem:[#allocation5] sm:$0xff] }
 0xc8b   :  { %v2757_v34 = vadd.f32 %v2756_v49, %v7567_v35  ;;  %4938 = vmatprep.mubr.f32.mxu0 %v2535_v22  ;;  %v2549_v44 = vadd.f32 %v7553_v36, %v2421_v28  ;;  %v5932_v22 = vld [vmem:[#allocation5 + $0x18] sm:$0xff] }
 0xc8c   :  { %v5507_v0 = vpack.c.bf16 %v2755_v16, %v2749_v2  ;;  %v5933_v16 = vld [vmem:[#allocation5 + $0x10] sm:$0xff] }
 0xc8d   :  { %v7594_v52 = vpack.c.bf16 %v2757_v34, %v2751_v21  ;;  %v2760_v47 = vpop.f32.mrb[72].mxu1 }
 0xc8e   :  { %v2762_v46 = vpop.f32.mrb[73].mxu1  ;;  %4939 = vmatmul.mubr.f32.gmra.mrb[84].mxu0 %v2541_v55  ;;  %5508 = vmatprep.subr.bf16.mxu1 %v5507_v0  ;;  %v2761_v63 = vadd.f32 %v2760_v47, %v7562_v48  ;;  %v5934_v47 = vld [vmem:[#allocation5 + $0x28] sm:$0xff] }
 0xc8f   :  { %v2763_v53 = vadd.f32 %v2762_v46, %v7567_v35  ;;  %4941 = vmatprep.mubr.f32.mxu0 %v2547_v59  ;;  %5510 = vmatpush3.bf16.msra.mxu1 %v5507_v0 }
 0xc90   :  { %5526 = vmatpush3.bf16.xpose.msra.mxu0 %v7545_v5 }
 0xc91   :  { %5528 = vmatprep.subr.bf16.mxu0 %v7551_v9  ;;  %v2766_v27 = vpop.f32.mrb[74].mxu1 }
 0xc92   :  { %v2767_v56 = vadd.f32 %v2766_v27, %v7562_v48  ;;  %v2768_v18 = vpop.f32.mrb[75].mxu1  ;;  %4942 = vmatmul.mubr.f32.gmra.mrb[86].mxu0 %v2553_v8  ;;  %v5935_v8 = vld [vmem:[#allocation5 + $0x20] sm:$0xff] }
 0xc93   :  { %v2769_v32 = vadd.f32 %v2768_v18, %v7567_v35  ;;  %4988 = vmatprep.mubr.f32.mxu0 %v2513_v60 }
 0xc94   :  { %v5511_v3 = vpack.c.bf16 %v2767_v56, %v2761_v63 }
 0xc95   :  { %v7604_v33 = vpack.c.bf16 %v2769_v32, %v2763_v53  ;;  %v2772_v17 = vpop.f32.mrb[76].mxu1 }
 0xc96   :  { %v2774_v57 = vpop.f32.mrb[77].mxu1  ;;  %5512 = vmatprep.subr.bf16.mxu1 %v5511_v3  ;;  %v2773_v43 = vadd.f32 %v2772_v17, %v7562_v48 }
 0xc97   :  { %v2775_v20 = vadd.f32 %v2774_v57, %v7567_v35  ;;  %5514 = vmatpush3.bf16.msra.mxu1 %v5511_v3  ;;  %v5936_v3 = vld [vmem:[#allocation5 + $0x38] sm:$0xff]  ;;  %v5937_v57 = vld [vmem:[#allocation5 + $0x30] sm:$0xff] }
 0xc98   :  { %5530 = vmatpush3.bf16.xpose.msra.mxu0 %v7551_v9  ;;  %v2519_v9 = vadd.f32 %v7533_v4, %v2421_v28 }
 0xc99   :  { %5532 = vmatprep.subr.bf16.mxu0 %v7557_v15  ;;  %v2778_v5 = vpop.f32.mrb[78].mxu1 }
 0xc9a   :  { %v2779_v25 = vadd.f32 %v2778_v5, %v7562_v48  ;;  %v2780_v45 = vpop.f32.mrb[79].mxu1  ;;  %v2531_v48 = vadd.f32 %v7543_v24, %v2421_v28 }
 0xc9b   :  { %v2781_v23 = vadd.f32 %v2780_v45, %v7567_v35  ;;  %v2543_v35 = vadd.f32 %v7549_v40, %v2421_v28 }
 0xc9c   :  { %v5515_v14 = vpack.c.bf16 %v2779_v25, %v2773_v43 }
 0xc9d   :  { %v7612_v50 = vpack.c.bf16 %v2781_v23, %v2775_v20 }
 0xc9e   :  { %5516 = vmatprep.subr.bf16.mxu1 %v5515_v14 }
 0xc9f   :  { %5518 = vmatpush3.bf16.msra.mxu1 %v5515_v14 }
 0xca0   :  { %5534 = vmatpush3.bf16.xpose.msra.mxu0 %v7557_v15  ;;  %5536 = vmatprep.subr.bf16.mxu1 %v7578_v42  ;;  %v2555_v15 = vadd.f32 %v7555_v1, %v2421_v28 }
 0xca7   :  { %4989 = vmatmul.mubr.f32.vlgmr.msra.gmra.mrb[88].mxu0 %v2519_v9 }
 0xca8   :  { %4991 = vmatprep.mubr.f32.mxu0 %v2525_v58 }
 0xcab   :  { %4992 = vmatmul.mubr.f32.gmra.mrb[90].mxu0 %v2531_v48 }
 0xcac   :  { %4994 = vmatprep.mubr.f32.mxu0 %v2537_v6 }
 0xcaf   :  { %4995 = vmatmul.mubr.f32.gmra.mrb[92].mxu0 %v2543_v35 }
 0xcb0   :  { %4997 = vmatprep.mubr.f32.mxu0 %v2549_v44 }
 0xcb3   :  { %4998 = vmatmul.mubr.f32.gmra.mrb[94].mxu0 %v2555_v15 }
 0xd59   :  { %v4934_v4 = vpop.f32.mrb[80].mxu0 }
 0xd5a   :  { %v2889_v30 = vmul.f32 0.25, %v4934_v4  ;;  %v2849_v37 = vpop.f32.mrb[81].mxu0 }
 0xd5b   :  { %v2888_v31 = vmul.f32 0.25, %v2849_v37 }
 0xd5c   :  { %v7623_v61 = vadd.f32 %v5930_v19, %v2889_v30 }
 0xd5d   :  { %v4937_v24 = vpop.f32.mrb[82].mxu0  ;;  %v7625_v13 = vadd.f32 %v5931_v11, %v2888_v31 }
 0xd5e   :  { %v2891_v21 = vmul.f32 0.25, %v4937_v24  ;;  %v2859_v40 = vpop.f32.mrb[83].mxu0  ;;  %v2907_v36 = vsel %vm1018_vm1, %v7623_v61, -inf }
 0xd5f   :  { %v2890_v26 = vmul.f32 0.25, %v2859_v40  ;;  %2908 = vmax.xlane.f32.xlu1 %v2907_v36  ;;  %v2904_v1 = vsel %vm1018_vm1, %v7625_v13, -inf }
 0xd60   :  { %2905 = vmax.xlane.f32.xlu0 %v2904_v1  ;;  %v7631_v10 = vadd.f32 %v5932_v22, %v2891_v21 }
 0xd61   :  { %v4940_v2 = vpop.f32.mrb[84].mxu0  ;;  %v7633_v49 = vadd.f32 %v5933_v16, %v2890_v26 }
 0xd62   :  { %v2893_v34 = vmul.f32 0.25, %v4940_v2  ;;  %v2869_v55 = vpop.f32.mrb[85].mxu0  ;;  %v2913_v0 = vsel %vm1018_vm1, %v7631_v10, -inf }
 0xd63   :  { %v2892_v28 = vmul.f32 0.25, %v2869_v55  ;;  %2914 = vmax.xlane.f32.xlu1 %v2913_v0  ;;  %v2910_v59 = vsel %vm1018_vm1, %v7633_v49, -inf }
 0xd64   :  { %2911 = vmax.xlane.f32.xlu0 %v2910_v59  ;;  %v7639_v46 = vadd.f32 %v5934_v47, %v2893_v34 }
 0xd65   :  { %v4943_v53 = vpop.f32.mrb[86].mxu0  ;;  %v7641_v60 = vadd.f32 %v5935_v8, %v2892_v28 }
 0xd66   :  { %v2895_v27 = vmul.f32 0.25, %v4943_v53  ;;  %v2879_v63 = vpop.f32.mrb[87].mxu0  ;;  %v2919_v56 = vsel %vm1018_vm1, %v7639_v46, -inf }
 0xd67   :  { %v2894_v18 = vmul.f32 0.25, %v2879_v63  ;;  %2920 = vmax.xlane.f32.xlu1 %v2919_v56  ;;  %v2916_v32 = vsel %vm1018_vm1, %v7641_v60, -inf }
 0xd68   :  { %2917 = vmax.xlane.f32.xlu0 %v2916_v32  ;;  %v7647_v17 = vadd.f32 %v5936_v3, %v2895_v27 }
 0xd69   :  { %v7649_v20 = vadd.f32 %v5937_v57, %v2894_v18 }
 0xd6a   :  { %v2925_v5 = vsel %vm1018_vm1, %v7647_v17, -inf }
 0xd6b   :  { %2926 = vmax.xlane.f32.xlu1 %v2925_v5  ;;  %v2922_v43 = vsel %vm1018_vm1, %v7649_v20, -inf }
 0xd6c   :  { %2923 = vmax.xlane.f32.xlu0 %v2922_v43 }
 0xd7a   :  { %v4990_v25 = vpop.f32.mrb[88].mxu0 }
 0xd7b   :  { %v3227_v45 = vmul.f32 0.25, %v4990_v25  ;;  %v3187_v23 = vpop.f32.mrb[89].mxu0 }
 0xd7c   :  { %v3226_v14 = vmul.f32 0.25, %v3187_v23 }
 0xd7d   :  { %v7655_v9 = vadd.f32 %v5930_v19, %v3227_v45 }
 0xd7e   :  { %v4993_v58 = vpop.f32.mrb[90].mxu0  ;;  %v7657_v48 = vadd.f32 %v5931_v11, %v3226_v14 }
 0xd7f   :  { %v3229_v6 = vmul.f32 0.25, %v4993_v58  ;;  %v3197_v35 = vpop.f32.mrb[91].mxu0  ;;  %v3245_v44 = vsel %vm1018_vm1, %v7655_v9, -inf }
 0xd80   :  { %v3228_v15 = vmul.f32 0.25, %v3197_v35  ;;  %3246 = vmax.xlane.f32.xlu1 %v3245_v44  ;;  %v3242_v4 = vsel %vm1018_vm1, %v7657_v48, -inf }
 0xd81   :  { %3243 = vmax.xlane.f32.xlu0 %v3242_v4  ;;  %v7663_v30 = vadd.f32 %v5932_v22, %v3229_v6 }
 0xd82   :  { %v4996_v37 = vpop.f32.mrb[92].mxu0  ;;  %v7665_v31 = vadd.f32 %v5933_v16, %v3228_v15 }
 0xd83   :  { %v3231_v19 = vmul.f32 0.25, %v4996_v37  ;;  %v3207_v24 = vpop.f32.mrb[93].mxu0  ;;  %v3251_v11 = vsel %vm1018_vm1, %v7663_v30, -inf }
 0xd84   :  { %v3230_v21 = vmul.f32 0.25, %v3207_v24  ;;  %3252 = vmax.xlane.f32.xlu1 %v3251_v11  ;;  %v3248_v40 = vsel %vm1018_vm1, %v7665_v31, -inf }
 0xd85   :  { %3249 = vmax.xlane.f32.xlu0 %v3248_v40  ;;  %v7671_v36 = vadd.f32 %v5934_v47, %v3231_v19 }
 0xd86   :  { %v4999_v26 = vpop.f32.mrb[94].mxu0  ;;  %v7673_v1 = vadd.f32 %v5935_v8, %v3230_v21 }
 0xd87   :  { %v3233_v22 = vmul.f32 0.25, %v4999_v26  ;;  %v3217_v2 = vpop.f32.mrb[95].mxu0  ;;  %v3257_v16 = vsel %vm1018_vm1, %v7671_v36, -inf }
 0xd88   :  { %v3232_v34 = vmul.f32 0.25, %v3217_v2  ;;  %3258 = vmax.xlane.f32.xlu1 %v3257_v16  ;;  %v3254_v55 = vsel %vm1018_vm1, %v7673_v1, -inf }
 0xd89   :  { %3255 = vmax.xlane.f32.xlu0 %v3254_v55  ;;  %v7679_v0 = vadd.f32 %v5936_v3, %v3233_v22 }
 0xd8a   :  { %v7681_v28 = vadd.f32 %v5937_v57, %v3232_v34 }
 0xd8b   :  { %v3263_v59 = vsel %vm1018_vm1, %v7679_v0, -inf }
 0xd8c   :  { %3264 = vmax.xlane.f32.xlu1 %v3263_v59  ;;  %v3260_v47 = vsel %vm1018_vm1, %v7681_v28, -inf }
 0xd8d   :  { %3261 = vmax.xlane.f32.xlu0 %v3260_v47 }
 0xdec   :  { %v2909_v53 = vpop.xlane.xlu1 %2908 }
 0xded   :  { %v2929_v8 = vsub.f32 %v7623_v61, %v2909_v53  ;;  %v2906_v27 = vpop.xlane.xlu0 %2905 }
 0xdee   :  { %v2928_v63 = vsub.f32 %v7625_v13, %v2906_v27 }
 0xdef   :  { %v2938_v56 = vmul.f32 1.442695, %v2929_v8 }
 0xdf0   :  { %v2936_v18 = vmul.f32 1.442695, %v2928_v63  ;;  %v2915_v32 = vpop.xlane.xlu1 %2914 }
 0xdf1   :  { %5818 = vpow2.f32 %v2938_v56  ;;  %v2931_v3 = vsub.f32 %v7631_v10, %v2915_v32  ;;  %v2912_v57 = vpop.xlane.xlu0 %2911 }
 0xdf2   :  { %5820 = vpow2.f32 %v2936_v18  ;;  %v2930_v5 = vsub.f32 %v7633_v49, %v2912_v57 }
 0xdf3   :  { %v2942_v43 = vmul.f32 1.442695, %v2931_v3 }
 0xdf4   :  { %v2940_v25 = vmul.f32 1.442695, %v2930_v5  ;;  %v2921_v45 = vpop.xlane.xlu1 %2920 }
 0xdf5   :  { %5822 = vpow2.f32 %v2942_v43  ;;  %v2933_v23 = vsub.f32 %v7639_v46, %v2921_v45  ;;  %v2918_v61 = vpop.xlane.xlu0 %2917 }
 0xdf6   :  { %5824 = vpow2.f32 %v2940_v25  ;;  %v2932_v13 = vsub.f32 %v7641_v60, %v2918_v61 }
 0xdf7   :  { %v2946_v14 = vmul.f32 1.442695, %v2933_v23 }
 0xdf8   :  { %v2944_v58 = vmul.f32 1.442695, %v2932_v13  ;;  %v2927_v6 = vpop.xlane.xlu1 %2926 }
 0xdf9   :  { %5826 = vpow2.f32 %v2946_v14  ;;  %v2935_v10 = vsub.f32 %v7647_v17, %v2927_v6  ;;  %v2924_v35 = vpop.xlane.xlu0 %2923 }
 0xdfa   :  { %5828 = vpow2.f32 %v2944_v58  ;;  %v2934_v49 = vsub.f32 %v7649_v20, %v2924_v35 }
 0xdfb   :  { %v7695_v44 = vpop.eup %5818  ;;  %v2950_v15 = vmul.f32 1.442695, %v2935_v10 }
 0xdfc   :  { %v7697_v4 = vpop.eup %5820  ;;  %v2948_v46 = vmul.f32 1.442695, %v2934_v49  ;;  %v2955_v37 = vsel %vm1018_vm1, %v7695_v44, 0.0 }
 0xdfd   :  { %5830 = vpow2.f32 %v2950_v15  ;;  %2956 = vadd.xlane.f32.xlu1 %v2955_v37  ;;  %v2952_v60 = vsel %vm1018_vm1, %v7697_v4, 0.0 }
 0xdfe   :  { %5832 = vpow2.f32 %v2948_v46  ;;  %2953 = vadd.xlane.f32.xlu0 %v2952_v60 }
 0xdff   :  { %v7703_v17 = vpop.eup %5822 }
 0xe00   :  { %v7705_v19 = vpop.eup %5824  ;;  %v2961_v20 = vsel %vm1018_vm1, %v7703_v17, 0.0 }
 0xe01   :  { %2962 = vadd.xlane.f32.xlu1 %v2961_v20  ;;  %v2958_v24 = vsel %vm1018_vm1, %v7705_v19, 0.0 }
 0xe02   :  { %2959 = vadd.xlane.f32.xlu0 %v2958_v24 }
 0xe03   :  { %v7711_v11 = vpop.eup %5826 }
 0xe04   :  { %v7713_v21 = vpop.eup %5828  ;;  %v2967_v40 = vsel %vm1018_vm1, %v7711_v11, 0.0 }
 0xe05   :  { %2968 = vadd.xlane.f32.xlu1 %v2967_v40  ;;  %v2964_v26 = vsel %vm1018_vm1, %v7713_v21, 0.0 }
 0xe06   :  { %2965 = vadd.xlane.f32.xlu0 %v2964_v26 }
 0xe07   :  { %v7719_v22 = vpop.eup %5830 }
 0xe08   :  { %v7721_v2 = vpop.eup %5832  ;;  %v2973_v16 = vsel %vm1018_vm1, %v7719_v22, 0.0 }
 0xe09   :  { %2974 = vadd.xlane.f32.xlu1 %v2973_v16  ;;  %v2970_v34 = vsel %vm1018_vm1, %v7721_v2, 0.0 }
 0xe0a   :  { %2971 = vadd.xlane.f32.xlu0 %v2970_v34 }
 0xe0d   :  { %v3247_v55 = vpop.xlane.xlu1 %3246 }
 0xe0e   :  { %v3267_v59 = vsub.f32 %v7655_v9, %v3247_v55  ;;  %v3244_v47 = vpop.xlane.xlu0 %3243 }
 0xe0f   :  { %v3266_v53 = vsub.f32 %v7657_v48, %v3244_v47 }
 0xe10   :  { %v3276_v8 = vmul.f32 1.442695, %v3267_v59 }
 0xe11   :  { %v3274_v27 = vmul.f32 1.442695, %v3266_v53  ;;  %v3253_v63 = vpop.xlane.xlu1 %3252 }
 0xe12   :  { %5834 = vpow2.f32 %v3276_v8  ;;  %v3269_v56 = vsub.f32 %v7663_v30, %v3253_v63  ;;  %v3250_v18 = vpop.xlane.xlu0 %3249 }
 0xe13   :  { %5836 = vpow2.f32 %v3274_v27  ;;  %v3268_v32 = vsub.f32 %v7665_v31, %v3250_v18 }
 0xe14   :  { %v3280_v3 = vmul.f32 1.442695, %v3269_v56 }
 0xe15   :  { %v3278_v57 = vmul.f32 1.442695, %v3268_v32  ;;  %v3259_v5 = vpop.xlane.xlu1 %3258 }
 0xe16   :  { %5838 = vpow2.f32 %v3280_v3  ;;  %v3271_v43 = vsub.f32 %v7671_v36, %v3259_v5  ;;  %v3256_v9 = vpop.xlane.xlu0 %3255 }
 0xe17   :  { %5840 = vpow2.f32 %v3278_v57  ;;  %v3270_v48 = vsub.f32 %v7673_v1, %v3256_v9 }
 0xe18   :  { %v3284_v25 = vmul.f32 1.442695, %v3271_v43 }
 0xe19   :  { %v3282_v45 = vmul.f32 1.442695, %v3270_v48  ;;  %v3265_v23 = vpop.xlane.xlu1 %3264 }
 0xe1a   :  { %5842 = vpow2.f32 %v3284_v25  ;;  %v3273_v30 = vsub.f32 %v7679_v0, %v3265_v23  ;;  %v3262_v61 = vpop.xlane.xlu0 %3261 }
 0xe1b   :  { %5844 = vpow2.f32 %v3282_v45  ;;  %v3272_v31 = vsub.f32 %v7681_v28, %v3262_v61 }
 0xe1c   :  { %v7735_v13 = vpop.eup %5834  ;;  %v3288_v14 = vmul.f32 1.442695, %v3273_v30 }
 0xe1d   :  { %v7737_v58 = vpop.eup %5836  ;;  %v3286_v36 = vmul.f32 1.442695, %v3272_v31  ;;  %v3293_v6 = vsel %vm1018_vm1, %v7735_v13, 0.0 }
 0xe1e   :  { %5846 = vpow2.f32 %v3288_v14  ;;  %3294 = vadd.xlane.f32.xlu1 %v3293_v6  ;;  %v3290_v1 = vsel %vm1018_vm1, %v7737_v58, 0.0 }
 0xe1f   :  { %5848 = vpow2.f32 %v3286_v36  ;;  %3291 = vadd.xlane.f32.xlu0 %v3290_v1 }
 0xe20   :  { %v7743_v0 = vpop.eup %5838 }
 0xe21   :  { %v7745_v10 = vpop.eup %5840  ;;  %v3299_v28 = vsel %vm1018_vm1, %v7743_v0, 0.0 }
 0xe22   :  { %3300 = vadd.xlane.f32.xlu1 %v3299_v28  ;;  %v3296_v35 = vsel %vm1018_vm1, %v7745_v10, 0.0 }
 0xe23   :  { %3297 = vadd.xlane.f32.xlu0 %v3296_v35 }
 0xe24   :  { %v7751_v49 = vpop.eup %5842 }
 0xe25   :  { %v7753_v15 = vpop.eup %5844  ;;  %v3305_v46 = vsel %vm1018_vm1, %v7751_v49, 0.0 }
 0xe26   :  { %3306 = vadd.xlane.f32.xlu1 %v3305_v46  ;;  %v3302_v37 = vsel %vm1018_vm1, %v7753_v15, 0.0 }
 0xe27   :  { %3303 = vadd.xlane.f32.xlu0 %v3302_v37  ;;  %v3476_v37 = vld [vmem:[#allocation14 + $0x180] sm:$0xff] }
 0xe28   :  { %v7759_v60 = vpop.eup %5846 }
 0xe29   :  { %v7761_v20 = vpop.eup %5848  ;;  %v3311_v24 = vsel %vm1018_vm1, %v7759_v60, 0.0 }
 0xe2a   :  { %3312 = vadd.xlane.f32.xlu1 %v3311_v24  ;;  %v3308_v40 = vsel %vm1018_vm1, %v7761_v20, 0.0  ;;  %v3477_v24 = vld [vmem:[#allocation14 + $0x188] sm:$0xff] }
 0xe2b   :  { %3309 = vadd.xlane.f32.xlu0 %v3308_v40  ;;  %v5551_v40 = vpack.c.bf16 %v3477_v24, %v3476_v37 }
 0xe8a   :  { %v2957_v26 = vpop.xlane.xlu1 %2956 }
 0xe8b   :  { %5850 = vrcp.f32 %v2957_v26  ;;  %v2954_v16 = vpop.xlane.xlu0 %2953  ;;  %v3461_v26 = vld [vmem:[#allocation14 + $0x108] sm:$0xff] }
 0xe8c   :  { %5852 = vrcp.f32 %v2954_v16  ;;  %v3478_v16 = vld [vmem:[#allocation14 + $0x190] sm:$0xff] }
 0xe8e   :  { %v2963_v34 = vpop.xlane.xlu1 %2962 }
 0xe8f   :  { %5854 = vrcp.f32 %v2963_v34  ;;  %v2960_v55 = vpop.xlane.xlu0 %2959  ;;  %v3479_v34 = vld [vmem:[#allocation14 + $0x198] sm:$0xff] }
 0xe90   :  { %5856 = vrcp.f32 %v2960_v55  ;;  %v5555_v55 = vpack.c.bf16 %v3479_v34, %v3478_v16 }
 0xe92   :  { %v2969_v59 = vpop.xlane.xlu1 %2968 }
 0xe93   :  { %5858 = vrcp.f32 %v2969_v59  ;;  %v2966_v47 = vpop.xlane.xlu0 %2965  ;;  %v3462_v59 = vld [vmem:[#allocation14 + $0x110] sm:$0xff] }
 0xe94   :  { %5860 = vrcp.f32 %v2966_v47  ;;  %v3463_v47 = vld [vmem:[#allocation14 + $0x118] sm:$0xff] }
 0xe95   :  { %v5851_v53 = vpop.eup %5850 }
 0xe96   :  { %v5853_v8 = vpop.eup %5852  ;;  %v2975_v27 = vpop.xlane.xlu1 %2974  ;;  %v2985_v18 = vmul.f32 %v5851_v53, %v7695_v44  ;;  %v3481_v53 = vld [vmem:[#allocation14 + $0x1a8] sm:$0xff] }
 0xe97   :  { %5862 = vrcp.f32 %v2975_v27  ;;  %v2972_v63 = vpop.xlane.xlu0 %2971  ;;  %v2984_v56 = vmul.f32 %v5853_v8, %v7697_v4  ;;  %v3464_v27 = vld [vmem:[#allocation14 + $0x120] sm:$0xff] }
 0xe98   :  { %5864 = vrcp.f32 %v2972_v63  ;;  %v3465_v63 = vld [vmem:[#allocation14 + $0x128] sm:$0xff] }
 0xe99   :  { %v5855_v32 = vpop.eup %5854  ;;  %4960 = vmatprep.mubr.msk.f32.mxu1 %vm1018_vm1, %v2984_v56  ;;  %v5561_v56 = vpack.c.bf16 %v3465_v63, %v3464_v27 }
 0xe9a   :  { %v5857_v3 = vpop.eup %5856  ;;  %4961 = vmatmul.mubr.msk.f32.vlgmr.msra.gmra.mrb[80].mxu1 %vm1018_vm1, %v2985_v18  ;;  %v2987_v5 = vmul.f32 %v5855_v32, %v7703_v17  ;;  %v3482_v18 = vld [vmem:[#allocation14 + $0x1b0] sm:$0xff]  ;;  %v3483_v32 = vld [vmem:[#allocation14 + $0x1b8] sm:$0xff] }
 0xe9b   :  { %5538 = vmatpush3.bf16.msra.mxu1 %v7578_v42  ;;  %v2986_v57 = vmul.f32 %v5857_v3, %v7705_v19  ;;  %v3466_v3 = vld [vmem:[#allocation14 + $0x130] sm:$0xff] }
 0xe9c   :  { %5540 = vmatprep.subr.bf16.mxu1 %v7594_v52 }
 0xe9d   :  { %v5859_v43 = vpop.eup %5858  ;;  %4963 = vmatprep.mubr.msk.f32.mxu1 %vm1018_vm1, %v2986_v57  ;;  %v5563_v57 = vpack.c.bf16 %v3483_v32, %v3482_v18 }
 0xe9e   :  { %v5861_v4 = vpop.eup %5860  ;;  %4964 = vmatmul.mubr.msk.f32.gmra.mrb[82].mxu1 %vm1018_vm1, %v2987_v5  ;;  %v2989_v42 = vmul.f32 %v5859_v43, %v7711_v11  ;;  %v3467_v5 = vld [vmem:[#allocation14 + $0x138] sm:$0xff]  ;;  %v3484_v43 = vld [vmem:[#allocation14 + $0x1c0] sm:$0xff] }
 0xe9f   :  { %5542 = vmatpush3.bf16.msra.mxu1 %v7594_v52  ;;  %v2988_v44 = vmul.f32 %v5861_v4, %v7713_v21  ;;  %v3485_v4 = vld [vmem:[#allocation14 + $0x1c8] sm:$0xff] }
 0xea0   :  { %5544 = vmatprep.subr.bf16.mxu1 %v7604_v33 }
 0xea1   :  { %v5863_v9 = vpop.eup %5862  ;;  %4966 = vmatprep.mubr.msk.f32.mxu1 %vm1018_vm1, %v2988_v44  ;;  %v5565_v44 = vpack.c.bf16 %v3467_v5, %v3466_v3 }
 0xea2   :  { %v5865_v19 = vpop.eup %5864  ;;  %4967 = vmatmul.mubr.msk.f32.gmra.mrb[84].mxu1 %vm1018_vm1, %v2989_v42  ;;  %v2991_v52 = vmul.f32 %v5863_v9, %v7719_v22  ;;  %v5567_v42 = vpack.c.bf16 %v3485_v4, %v3484_v43  ;;  %v3468_v9 = vld [vmem:[#allocation14 + $0x140] sm:$0xff] }
 0xea3   :  { %5546 = vmatpush3.bf16.msra.mxu1 %v7604_v33  ;;  %v2990_v17 = vmul.f32 %v5865_v19, %v7721_v2  ;;  %v3469_v19 = vld [vmem:[#allocation14 + $0x148] sm:$0xff] }
 0xea4   :  { %5548 = vmatprep.subr.bf16.mxu1 %v7612_v50 }
 0xea5   :  { %4969 = vmatprep.mubr.msk.f32.mxu1 %vm1018_vm1, %v2990_v17  ;;  %v3486_v17 = vld [vmem:[#allocation14 + $0x1d0] sm:$0xff] }
 0xea6   :  { %4970 = vmatmul.mubr.msk.f32.gmra.mrb[86].mxu1 %vm1018_vm1, %v2991_v52  ;;  %v3487_v52 = vld [vmem:[#allocation14 + $0x1d8] sm:$0xff] }
 0xea7   :  { %5550 = vmatpush3.bf16.msra.mxu1 %v7612_v50 }
 0xea8   :  { %5552 = vmatprep.subr.bf16.mxu1 %v5551_v40 }
 0xeab   :  { %v3295_v11 = vpop.xlane.xlu1 %3294 }
 0xeac   :  { %5866 = vrcp.f32 %v3295_v11  ;;  %v3292_v21 = vpop.xlane.xlu0 %3291  ;;  %v5569_v11 = vpack.c.bf16 %v3469_v19, %v3468_v9 }
 0xead   :  { %5868 = vrcp.f32 %v3292_v21  ;;  %v5571_v21 = vpack.c.bf16 %v3487_v52, %v3486_v17 }
 0xeaf   :  { %v3301_v48 = vpop.xlane.xlu1 %3300 }
 0xeb0   :  { %5870 = vrcp.f32 %v3301_v48  ;;  %v3298_v25 = vpop.xlane.xlu0 %3297  ;;  %v3470_v48 = vld [vmem:[#allocation14 + $0x150] sm:$0xff] }
 0xeb1   :  { %5872 = vrcp.f32 %v3298_v25  ;;  %v3471_v25 = vld [vmem:[#allocation14 + $0x158] sm:$0xff] }
 0xeb3   :  { %v3307_v33 = vpop.xlane.xlu1 %3306 }
 0xeb4   :  { %5874 = vrcp.f32 %v3307_v33  ;;  %v3304_v2 = vpop.xlane.xlu0 %3303  ;;  %v3488_v33 = vld [vmem:[#allocation14 + $0x1e0] sm:$0xff] }
 0xeb5   :  { %5876 = vrcp.f32 %v3304_v2  ;;  %v3489_v2 = vld [vmem:[#allocation14 + $0x1e8] sm:$0xff] }
 0xeb6   :  { %v5867_v45 = vpop.eup %5866 }
 0xeb7   :  { %v5869_v22 = vpop.eup %5868  ;;  %v3313_v23 = vpop.xlane.xlu1 %3312  ;;  %v3323_v50 = vmul.f32 %v5867_v45, %v7735_v13  ;;  %v5573_v45 = vpack.c.bf16 %v3471_v25, %v3470_v48 }
 0xeb8   :  { %5878 = vrcp.f32 %v3313_v23  ;;  %v3310_v30 = vpop.xlane.xlu0 %3309  ;;  %v3322_v61 = vmul.f32 %v5869_v22, %v7737_v58  ;;  %v5575_v22 = vpack.c.bf16 %v3489_v2, %v3488_v33  ;;  %v3472_v23 = vld [vmem:[#allocation14 + $0x160] sm:$0xff] }
 0xeb9   :  { %5880 = vrcp.f32 %v3310_v30  ;;  %v3473_v30 = vld [vmem:[#allocation14 + $0x168] sm:$0xff] }
 0xeba   :  { %v5871_v31 = vpop.eup %5870  ;;  %5016 = vmatprep.mubr.msk.f32.mxu1 %vm1018_vm1, %v3322_v61  ;;  %v3490_v61 = vld [vmem:[#allocation14 + $0x1f0] sm:$0xff] }
 0xebb   :  { %v5873_v14 = vpop.eup %5872  ;;  %5017 = vmatmul.mubr.msk.f32.vlgmr.msra.gmra.mrb[88].mxu1 %vm1018_vm1, %v3323_v50  ;;  %v3325_v6 = vmul.f32 %v5871_v31, %v7743_v0  ;;  %v3491_v50 = vld [vmem:[#allocation14 + $0x1f8] sm:$0xff]  ;;  %v5577_v31 = vpack.c.bf16 %v3473_v30, %v3472_v23 }
 0xebc   :  { %v3324_v36 = vmul.f32 %v5873_v14, %v7745_v10  ;;  %v5579_v14 = vpack.c.bf16 %v3491_v50, %v3490_v61 }
 0xebe   :  { %v5875_v1 = vpop.eup %5874  ;;  %5019 = vmatprep.mubr.msk.f32.mxu1 %vm1018_vm1, %v3324_v36  ;;  %v3474_v36 = vld [vmem:[#allocation14 + $0x170] sm:$0xff] }
 0xebf   :  { %v5877_v28 = vpop.eup %5876  ;;  %5020 = vmatmul.mubr.msk.f32.gmra.mrb[90].mxu1 %vm1018_vm1, %v3325_v6  ;;  %v3327_v13 = vmul.f32 %v5875_v1, %v7751_v49  ;;  %v3475_v6 = vld [vmem:[#allocation14 + $0x178] sm:$0xff] }
 0xec0   :  { %v3326_v58 = vmul.f32 %v5877_v28, %v7753_v15  ;;  %v3460_v15 = vld [vmem:[#allocation14 + $0x100] sm:$0xff]  ;;  %v5581_v1 = vpack.c.bf16 %v3475_v6, %v3474_v36  ;;  %v3743_v6 = vld [vmem:[#allocation20 + $0x88] sm:$0xff] }
 0xec1   :  { %v5553_v49 = vpack.c.bf16 %v3461_v26, %v3460_v15  ;;  %v3742_v36 = vld [vmem:[#allocation20 + $0x80] sm:$0xff] }
 0xec2   :  { %v5879_v35 = vpop.eup %5878  ;;  %5022 = vmatprep.mubr.msk.f32.mxu1 %vm1018_vm1, %v3326_v58 }
 0xec3   :  { %v5881_v46 = vpop.eup %5880  ;;  %5023 = vmatmul.mubr.msk.f32.gmra.mrb[92].mxu1 %vm1018_vm1, %v3327_v13  ;;  %v3329_v0 = vmul.f32 %v5879_v35, %v7759_v60  ;;  %v3480_v60 = vld [vmem:[#allocation14 + $0x1a0] sm:$0xff] }
 0xec4   :  { %v3328_v10 = vmul.f32 %v5881_v46, %v7761_v20  ;;  %5554 = vmatpush3.bf16.msra.mxu1 %v5553_v49  ;;  %v5557_v20 = vpack.c.bf16 %v3463_v47, %v3462_v59  ;;  %v5559_v8 = vpack.c.bf16 %v3481_v53, %v3480_v60  ;;  %v4361_v47 = vld [vmem:[#allocation16 + $0x1] ss:$0 sm:$0xff] }
 0xec5   :  { %5556 = vmatprep.subr.bf16.mxu1 %v5555_v55 }
 0xec6   :  { %5025 = vmatprep.mubr.msk.f32.mxu1 %vm1018_vm1, %v3328_v10 }
 0xec7   :  { %5026 = vmatmul.mubr.msk.f32.gmra.mrb[94].mxu1 %vm1018_vm1, %v3329_v0 }
 0xec8   :  { %5558 = vmatpush3.bf16.msra.mxu1 %v5557_v20 }
 0xec9   :  { %5560 = vmatprep.subr.bf16.mxu1 %v5559_v8 }
 0xecc   :  { %5562 = vmatpush3.bf16.msra.mxu1 %v5561_v56 }
 0xecd   :  { %5564 = vmatprep.subr.bf16.mxu1 %v5563_v57 }
 0xed0   :  { %5566 = vmatpush3.bf16.msra.mxu1 %v5565_v44 }
 0xed1   :  { %5568 = vmatprep.subr.bf16.mxu1 %v5567_v42 }
 0xed4   :  { %5570 = vmatpush3.bf16.msra.mxu1 %v5569_v11 }
 0xed5   :  { %5572 = vmatprep.subr.bf16.mxu1 %v5571_v21 }
 0xed8   :  { %5574 = vmatpush3.bf16.msra.mxu1 %v5573_v45 }
 0xed9   :  { %5576 = vmatprep.subr.bf16.mxu1 %v5575_v22 }
 0xedc   :  { %5578 = vmatpush3.bf16.msra.mxu1 %v5577_v31 }
 0xedd   :  { %5580 = vmatprep.subr.bf16.mxu1 %v5579_v14 }
 0xee0   :  { %5582 = vmatpush3.bf16.msra.mxu1 %v5581_v1  ;;  %v3744_v1 = vld [vmem:[#allocation20 + $0x90] sm:$0xff] }
 0xf6d   :  { %v4962_v28 = vpop.f32.mrb[80].mxu1 }
 0xf6e   :  { %v3082_v58 = vpop.f32.mrb[81].mxu1 }
 0xf71   :  { %v4965_v13 = vpop.f32.mrb[82].mxu1 }
 0xf72   :  { %v3092_v35 = vpop.f32.mrb[83].mxu1 }
 0xf75   :  { %v4968_v46 = vpop.f32.mrb[84].mxu1 }
 0xf76   :  { %v3102_v10 = vpop.f32.mrb[85].mxu1 }
 0xf79   :  { %v4971_v0 = vpop.f32.mrb[86].mxu1 }
 0xf7a   :  { %v3112_v37 = vpop.f32.mrb[87].mxu1 }
 0xf8e   :  { %v5018_v24 = vpop.f32.mrb[88].mxu1 }
 0xf8f   :  { %v3420_v40 = vpop.f32.mrb[89].mxu1 }
 0xf90   :  { %3564 = vmatprep.mubr.f32.mxu1 %v3420_v40 }
 0xf91   :  { %3565 = vmatmul.mubr.f32.vlgmr.msra.gmra.mrb[96].mxu1 %v3082_v58 }
 0xf92   :  { %v5021_v15 = vpop.f32.mrb[90].mxu1  ;;  %3569 = vmatprep.mubr.f32.mxu1 %v5018_v24 }
 0xf93   :  { %v3430_v26 = vpop.f32.mrb[91].mxu1 }
 0xf95   :  { %3570 = vmatmul.mubr.f32.gmra.mrb[98].mxu1 %v4962_v28  ;;  %v3745_v28 = vld [vmem:[#allocation20 + $0x98] sm:$0xff] }
 0xf96   :  { %v5024_v49 = vpop.f32.mrb[92].mxu1  ;;  %3574 = vmatprep.mubr.f32.mxu1 %v3430_v26  ;;  %v5587_v58 = vpack.c.bf16 %v3745_v28, %v3744_v1  ;;  %v3945_v1 = vld [vmem:[#allocation23 + $0x88] sm:$0xff] }
 0xf97   :  { %v3440_v16 = vpop.f32.mrb[93].mxu1 }
 0xf99   :  { %3575 = vmatmul.mubr.f32.gmra.mrb[100].mxu1 %v3092_v35 }
 0xf9a   :  { %v5027_v34 = vpop.f32.mrb[94].mxu1  ;;  %3579 = vmatprep.mubr.f32.mxu1 %v5021_v15 }
 0xf9b   :  { %v3450_v55 = vpop.f32.mrb[95].mxu1 }
 0xf9d   :  { %3580 = vmatmul.mubr.f32.gmra.mrb[102].mxu1 %v4965_v13 }
 0xf9e   :  { %3584 = vmatprep.mubr.f32.mxu1 %v3440_v16 }
 0xfa1   :  { %3585 = vmatmul.mubr.f32.gmra.mrb[104].mxu1 %v3102_v10 }
 0xfa2   :  { %3589 = vmatprep.mubr.f32.mxu1 %v5024_v49 }
 0xfa5   :  { %3590 = vmatmul.mubr.f32.gmra.mrb[106].mxu1 %v4968_v46 }
 0xfa6   :  { %3594 = vmatprep.mubr.f32.mxu1 %v3450_v55 }
 0xfa9   :  { %3595 = vmatmul.mubr.f32.gmra.mrb[108].mxu1 %v3112_v37 }
 0xfaa   :  { %3599 = vmatprep.mubr.f32.mxu1 %v5027_v34 }
 0xfad   :  { %3600 = vmatmul.mubr.f32.gmra.mrb[110].mxu1 %v4971_v0 }
0x1064   :  { %v4634_v59 = vpop.f32.mrb[96].mxu1 }
0x1065   :  { %v4635_v20 = vpop.f32.mrb[97].mxu1 }
0x1066   :  { %v4636_v60 = vadd.f32 %v4635_v20, %v4634_v59 }
0x1068   :  { %v3567_v53 = vadd.f32 %v4636_v60, %v4361_v47  ;;  %v4637_v8 = vpop.f32.mrb[98].mxu1 }
0x1069   :  { %v4638_v27 = vpop.f32.mrb[99].mxu1 }
0x106a   :  { %v4639_v63 = vadd.f32 %v4638_v27, %v4637_v8  ;;  %v3605_v56 = vadd.f32 %v3567_v53, %v7433_v62 }
0x106c   :  { %v3572_v18 = vadd.f32 %v4639_v63, %v4361_v47  ;;  %v4640_v32 = vpop.f32.mrb[100].mxu1  ;;  %3617 = vadd.xlane.f32.xlu0 %v3605_v56 }
0x106d   :  { %v4641_v3 = vpop.f32.mrb[101].mxu1 }
0x106e   :  { %v4642_v57 = vadd.f32 %v4641_v3, %v4640_v32  ;;  %v3606_v5 = vadd.f32 %v3572_v18, %v7441_v29  ;;  %v3746_v32 = vld [vmem:[#allocation20 + $0xa0] sm:$0xff]  ;;  %v3747_v3 = vld [vmem:[#allocation20 + $0xa8] sm:$0xff] }
0x1070   :  { %v3577_v43 = vadd.f32 %v4642_v57, %v4361_v47  ;;  %v4643_v4 = vpop.f32.mrb[102].mxu1  ;;  %3619 = vadd.xlane.f32.xlu1 %v3606_v5  ;;  %v5591_v57 = vpack.c.bf16 %v3747_v3, %v3746_v32 }
0x1071   :  { %v4644_v44 = vpop.f32.mrb[103].mxu1 }
0x1072   :  { %v4645_v42 = vadd.f32 %v4644_v44, %v4643_v4  ;;  %v3607_v9 = vadd.f32 %v3577_v43, %v7451_v54 }
0x1074   :  { %v3582_v19 = vadd.f32 %v4645_v42, %v4361_v47  ;;  %v4646_v17 = vpop.f32.mrb[104].mxu1  ;;  %3621 = vadd.xlane.f32.xlu0 %v3607_v9 }
0x1075   :  { %v4647_v52 = vpop.f32.mrb[105].mxu1 }
0x1076   :  { %v4648_v11 = vadd.f32 %v4647_v52, %v4646_v17  ;;  %v3608_v62 = vadd.f32 %v3582_v19, %v7459_v41  ;;  %v3749_v19 = vld [vmem:[#allocation20 + $0xb8] sm:$0xff] }
0x1078   :  { %v3587_v21 = vadd.f32 %v4648_v11, %v4361_v47  ;;  %v4649_v48 = vpop.f32.mrb[106].mxu1  ;;  %3623 = vadd.xlane.f32.xlu1 %v3608_v62 }
0x1079   :  { %v4650_v25 = vpop.f32.mrb[107].mxu1 }
0x107a   :  { %v4651_v33 = vadd.f32 %v4650_v25, %v4649_v48  ;;  %v3609_v29 = vadd.f32 %v3587_v21, %v7469_v38  ;;  %v3750_v25 = vld [vmem:[#allocation20 + $0xc0] sm:$0xff] }
0x107c   :  { %v3592_v2 = vadd.f32 %v4651_v33, %v4361_v47  ;;  %v4652_v45 = vpop.f32.mrb[108].mxu1  ;;  %3625 = vadd.xlane.f32.xlu0 %v3609_v29  ;;  %v3751_v33 = vld [vmem:[#allocation20 + $0xc8] sm:$0xff] }
0x107d   :  { %v4653_v22 = vpop.f32.mrb[109].mxu1 }
0x107e   :  { %v4654_v23 = vadd.f32 %v4653_v22, %v4652_v45  ;;  %v3610_v54 = vadd.f32 %v3592_v2, %v7477_v12  ;;  %v5583_v12 = vpack.c.bf16 %v3743_v6, %v3742_v36  ;;  %v3944_v6 = vld [vmem:[#allocation23 + $0x80] sm:$0xff] }
0x1080   :  { %v3597_v30 = vadd.f32 %v4654_v23, %v4361_v47  ;;  %v4655_v61 = vpop.f32.mrb[110].mxu1  ;;  %3627 = vadd.xlane.f32.xlu1 %v3610_v54  ;;  %5584 = vmatprep.subr.bf16.mxu0 %v5583_v12  ;;  %v3752_v23 = vld [vmem:[#allocation20 + $0xd0] sm:$0xff] }
0x1081   :  { %v4656_v50 = vpop.f32.mrb[111].mxu1  ;;  %5586 = vmatpush3.bf16.msra.mxu0 %v5583_v12  ;;  %v5615_v12 = vpack.c.bf16 %v3945_v1, %v3944_v6  ;;  %v3946_v6 = vld [vmem:[#allocation23 + $0x90] sm:$0xff]  ;;  %v3947_v1 = vld [vmem:[#allocation23 + $0x98] sm:$0xff] }
0x1082   :  { %v4657_v31 = vadd.f32 %v4656_v50, %v4655_v61  ;;  %v7813_v41 = vadd.f32 %v3597_v30, %v7487_v39  ;;  %5588 = vmatprep.subr.bf16.mxu0 %v5587_v58  ;;  %v3754_v50 = vld [vmem:[#allocation20 + $0xe0] sm:$0xff] }
0x1083   :  { %5616 = vmatprep.subr.bf16.mxu1 %v5615_v12 }
0x1084   :  { %v3602_v14 = vadd.f32 %v4657_v31, %v4361_v47  ;;  %3629 = vadd.xlane.f32.xlu0 %v7813_v41  ;;  %v3755_v31 = vld [vmem:[#allocation20 + $0xe8] sm:$0xff]  ;;  %5618 = vmatpush3.bf16.msra.mxu1 %v5615_v12  ;;  %v5619_v12 = vpack.c.bf16 %v3947_v1, %v3946_v6 }
0x1085   :  { %5590 = vmatpush3.bf16.msra.mxu0 %v5587_v58 }
0x1086   :  { %v7817_v38 = vadd.f32 %v3602_v14, %v7495_v7  ;;  %5592 = vmatprep.subr.bf16.mxu0 %v5591_v57  ;;  %v3756_v14 = vld [vmem:[#allocation20 + $0xf0] sm:$0xff]  ;;  %5620 = vmatprep.subr.bf16.mxu1 %v5619_v12 }
0x1088   :  { %3631 = vadd.xlane.f32.xlu1 %v7817_v38  ;;  %5622 = vmatpush3.bf16.msra.mxu1 %v5619_v12 }
0x1089   :  { %5594 = vmatpush3.bf16.msra.mxu0 %v5591_v57 }
0x10f9   :  { %v3618_v39 = vpop.xlane.xlu0 %3617 }
0x10fa   :  { %v3633_v13 = vmul.f32 0.03125, %v3618_v39 }
0x10fc   :  { %v3641_v35 = vsub.f32 %v3605_v56, %v3633_v13 }
0x10fd   :  { %v3620_v46 = vpop.xlane.xlu1 %3619 }
0x10fe   :  { %v7821_v10 = vmul.f32 %v6792_v51, %v3641_v35  ;;  %v3634_v7 = vmul.f32 0.03125, %v3620_v46 }
0x1100   :  { %v3642_v0 = vsub.f32 %v3606_v5, %v3634_v7  ;;  %v3657_v37 = vmul.f32 %v7821_v10, %v7821_v10 }
0x1101   :  { %v3622_v24 = vpop.xlane.xlu0 %3621 }
0x1102   :  { %v7826_v40 = vmul.f32 %v6792_v51, %v3642_v0  ;;  %v3635_v15 = vmul.f32 0.03125, %v3622_v24  ;;  %3665 = vadd.xlane.f32.xlu0 %v3657_v37 }
0x1104   :  { %v3643_v26 = vsub.f32 %v3607_v9, %v3635_v15  ;;  %v3658_v49 = vmul.f32 %v7826_v40, %v7826_v40  ;;  %v3748_v9 = vld [vmem:[#allocation20 + $0xb0] sm:$0xff] }
0x1105   :  { %v3624_v16 = vpop.xlane.xlu1 %3623  ;;  %v5595_v17 = vpack.c.bf16 %v3749_v19, %v3748_v9 }
0x1106   :  { %v7831_v34 = vmul.f32 %v6792_v51, %v3643_v26  ;;  %v3636_v55 = vmul.f32 0.03125, %v3624_v16  ;;  %3667 = vadd.xlane.f32.xlu1 %v3658_v49  ;;  %v4362_v16 = vld [vmem:[#allocation17 + $0x1] ss:$0 sm:$0xff] }
0x1107   :  { %5596 = vmatprep.subr.bf16.mxu0 %v5595_v17 }
0x1108   :  { %v3644_v59 = vsub.f32 %v3608_v62, %v3636_v55  ;;  %v3659_v47 = vmul.f32 %v7831_v34, %v7831_v34  ;;  %5598 = vmatpush3.bf16.msra.mxu0 %v5595_v17 }
0x1109   :  { %v3626_v20 = vpop.xlane.xlu0 %3625 }
0x110a   :  { %v7836_v60 = vmul.f32 %v6792_v51, %v3644_v59  ;;  %v3637_v53 = vmul.f32 0.03125, %v3626_v20  ;;  %3669 = vadd.xlane.f32.xlu0 %v3659_v47  ;;  %v4363_v20 = vld [vmem:[#allocation19 + $0x1] ss:$0 sm:$0xff] }
0x110c   :  { %v3645_v8 = vsub.f32 %v3609_v29, %v3637_v53  ;;  %v3660_v27 = vmul.f32 %v7836_v60, %v7836_v60  ;;  %v5599_v29 = vpack.c.bf16 %v3751_v33, %v3750_v25 }
0x110d   :  { %v3628_v63 = vpop.xlane.xlu1 %3627 }
0x110e   :  { %v7841_v56 = vmul.f32 %v6792_v51, %v3645_v8  ;;  %v3638_v18 = vmul.f32 0.03125, %v3628_v63  ;;  %3671 = vadd.xlane.f32.xlu1 %v3660_v27  ;;  %5600 = vmatprep.subr.bf16.mxu0 %v5599_v29 }
0x110f   :  { %5602 = vmatpush3.bf16.msra.mxu0 %v5599_v29 }
0x1110   :  { %v3646_v5 = vsub.f32 %v3610_v54, %v3638_v18  ;;  %v3661_v43 = vmul.f32 %v7841_v56, %v7841_v56  ;;  %v3753_v54 = vld [vmem:[#allocation20 + $0xd8] sm:$0xff] }
0x1111   :  { %v3630_v4 = vpop.xlane.xlu0 %3629  ;;  %v5603_v30 = vpack.c.bf16 %v3753_v54, %v3752_v23 }
0x1112   :  { %v7846_v44 = vmul.f32 %v6792_v51, %v3646_v5  ;;  %v3639_v42 = vmul.f32 0.03125, %v3630_v4  ;;  %3673 = vadd.xlane.f32.xlu0 %v3661_v43 }
0x1113   :  { %5604 = vmatprep.subr.bf16.mxu0 %v5603_v30 }
0x1114   :  { %v3647_v52 = vsub.f32 %v7813_v41, %v3639_v42  ;;  %v3662_v11 = vmul.f32 %v7846_v44, %v7846_v44  ;;  %5606 = vmatpush3.bf16.msra.mxu0 %v5603_v30  ;;  %v5607_v41 = vpack.c.bf16 %v3755_v31, %v3754_v50 }
0x1115   :  { %v3632_v62 = vpop.xlane.xlu1 %3631 }
0x1116   :  { %v7852_v21 = vmul.f32 %v6792_v51, %v3647_v52  ;;  %v3640_v48 = vmul.f32 0.03125, %v3632_v62  ;;  %3675 = vadd.xlane.f32.xlu1 %v3662_v11  ;;  %5608 = vmatprep.subr.bf16.mxu0 %v5607_v41 }
0x1118   :  { %v3648_v2 = vsub.f32 %v7817_v38, %v3640_v48  ;;  %v3663_v45 = vmul.f32 %v7852_v21, %v7852_v21  ;;  %5610 = vmatpush3.bf16.msra.mxu0 %v5607_v41  ;;  %v3757_v38 = vld [vmem:[#allocation20 + $0xf8] sm:$0xff] }
0x1119   :  { %v5611_v36 = vpack.c.bf16 %v3757_v38, %v3756_v14 }
0x111a   :  { %v7858_v22 = vmul.f32 %v6792_v51, %v3648_v2  ;;  %3677 = vadd.xlane.f32.xlu0 %v3663_v45 }
0x111b   :  { %5612 = vmatprep.subr.bf16.mxu0 %v5611_v36 }
0x111c   :  { %v3664_v61 = vmul.f32 %v7858_v22, %v7858_v22  ;;  %5614 = vmatpush3.bf16.msra.mxu0 %v5611_v36 }
0x111e   :  { %3679 = vadd.xlane.f32.xlu1 %v3664_v61 }
0x118f   :  { %v3666_v28 = vpop.xlane.xlu0 %3665 }
0x1190   :  { %v3681_v58 = vmul.f32 0.03125, %v3666_v28  ;;  %v3949_v28 = vld [vmem:[#allocation23 + $0xa8] sm:$0xff] }
0x1192   :  { %v3689_v39 = vadd.f32 1e-12, %v3681_v58 }
0x1193   :  { %v3668_v13 = vpop.xlane.xlu1 %3667 }
0x1194   :  { %5882 = vrsqrt.f32 %v3689_v39  ;;  %v3682_v35 = vmul.f32 0.03125, %v3668_v13  ;;  %v3950_v39 = vld [vmem:[#allocation23 + $0xb0] sm:$0xff]  ;;  %v3951_v13 = vld [vmem:[#allocation23 + $0xb8] sm:$0xff] }
0x1196   :  { %v3690_v46 = vadd.f32 1e-12, %v3682_v35  ;;  %v3952_v35 = vld [vmem:[#allocation23 + $0xc0] sm:$0xff] }
0x1197   :  { %v3670_v7 = vpop.xlane.xlu0 %3669 }
0x1198   :  { %5884 = vrsqrt.f32 %v3690_v46  ;;  %v3683_v0 = vmul.f32 0.03125, %v3670_v7  ;;  %v3953_v46 = vld [vmem:[#allocation23 + $0xc8] sm:$0xff] }
0x1199   :  { %v5631_v7 = vpack.c.bf16 %v3953_v46, %v3952_v35 }
0x119a   :  { %v3691_v37 = vadd.f32 1e-12, %v3683_v0  ;;  %v3954_v0 = vld [vmem:[#allocation23 + $0xd0] sm:$0xff] }
0x119b   :  { %v3672_v24 = vpop.xlane.xlu1 %3671 }
0x119c   :  { %5886 = vrsqrt.f32 %v3691_v37  ;;  %v3684_v15 = vmul.f32 0.03125, %v3672_v24  ;;  %v3955_v37 = vld [vmem:[#allocation23 + $0xd8] sm:$0xff] }
0x119d   :  { %v5635_v24 = vpack.c.bf16 %v3955_v37, %v3954_v0 }
0x119e   :  { %v5883_v26 = vpop.eup %5882  ;;  %v3692_v49 = vadd.f32 1e-12, %v3684_v15  ;;  %v3956_v15 = vld [vmem:[#allocation23 + $0xe0] sm:$0xff] }
0x119f   :  { %v3674_v55 = vpop.xlane.xlu0 %3673  ;;  %v3705_v59 = vmul.f32 %v5883_v26, %v7821_v10  ;;  %v3957_v26 = vld [vmem:[#allocation23 + $0xe8] sm:$0xff] }
0x11a0   :  { %5888 = vrsqrt.f32 %v3692_v49  ;;  %v3685_v47 = vmul.f32 0.03125, %v3674_v55  ;;  %v5639_v49 = vpack.c.bf16 %v3957_v26, %v3956_v15  ;;  %v3959_v55 = vld [vmem:[#allocation23 + $0xf8] sm:$0xff] }
0x11a1   :  { %v3719_v53 = vmul.f32 %v4362_v16, %v3705_v59 }
0x11a2   :  { %v5885_v8 = vpop.eup %5884  ;;  %v3693_v27 = vadd.f32 1e-12, %v3685_v47  ;;  %v4364_v47 = vld [vmem:[#allocation22 + $0x1] ss:$0 sm:$0xff] }
0x11a3   :  { %v3706_v63 = vmul.f32 %v5885_v8, %v7826_v40  ;;  %v3676_v18 = vpop.xlane.xlu1 %3675  ;;  %v7864_v32 = vadd.f32 %v4363_v20, %v3719_v53 }
0x11a4   :  { %5890 = vrsqrt.f32 %v3693_v27  ;;  %v3686_v3 = vmul.f32 0.03125, %v3676_v18 }
0x11a5   :  { %5060 = vmatprep.mubr.f32.mxu0 %v7864_v32  ;;  %v3720_v57 = vmul.f32 %v4362_v16, %v3706_v63 }
0x11a6   :  { %v5887_v5 = vpop.eup %5886  ;;  %v3694_v43 = vadd.f32 1e-12, %v3686_v3 }
0x11a7   :  { %v3678_v4 = vpop.xlane.xlu0 %3677  ;;  %v7867_v10 = vadd.f32 %v4363_v20, %v3720_v57  ;;  %v3707_v42 = vmul.f32 %v5887_v5, %v7831_v34 }
0x11a8   :  { %5892 = vrsqrt.f32 %v3694_v43  ;;  %v3687_v9 = vmul.f32 0.03125, %v3678_v4 }
0x11a9   :  { %5061 = vmatmul.mubr.f32.vlgmr.msra.gmra.mrb[96].mxu0 %v7867_v10  ;;  %v3721_v40 = vmul.f32 %v4362_v16, %v3707_v42 }
0x11aa   :  { %v5889_v19 = vpop.eup %5888  ;;  %v3695_v17 = vadd.f32 1e-12, %v3687_v9 }
0x11ab   :  { %v3680_v52 = vpop.xlane.xlu1 %3679  ;;  %v7871_v11 = vadd.f32 %v4363_v20, %v3721_v40  ;;  %v3708_v62 = vmul.f32 %v5889_v19, %v7836_v60 }
0x11ac   :  { %5894 = vrsqrt.f32 %v3695_v17  ;;  %v3688_v48 = vmul.f32 0.03125, %v3680_v52 }
0x11ad   :  { %5063 = vmatprep.mubr.f32.mxu0 %v7871_v11  ;;  %v3722_v25 = vmul.f32 %v4362_v16, %v3708_v62 }
0x11ae   :  { %v5891_v33 = vpop.eup %5890  ;;  %v3696_v29 = vadd.f32 1e-12, %v3688_v48 }
0x11af   :  { %v7875_v34 = vadd.f32 %v4363_v20, %v3722_v25  ;;  %v3709_v2 = vmul.f32 %v5891_v33, %v7841_v56 }
0x11b0   :  { %5896 = vrsqrt.f32 %v3696_v29 }
0x11b1   :  { %5064 = vmatmul.mubr.f32.gmra.mrb[98].mxu0 %v7875_v34  ;;  %v3723_v45 = vmul.f32 %v4362_v16, %v3709_v2 }
0x11b2   :  { %v5893_v23 = vpop.eup %5892 }
0x11b3   :  { %v7879_v54 = vadd.f32 %v4363_v20, %v3723_v45  ;;  %v3710_v60 = vmul.f32 %v5893_v23, %v7846_v44 }
0x11b5   :  { %5066 = vmatprep.mubr.f32.mxu0 %v7879_v54  ;;  %v3724_v30 = vmul.f32 %v4362_v16, %v3710_v60 }
0x11b6   :  { %v5895_v61 = vpop.eup %5894 }
0x11b7   :  { %v7883_v50 = vadd.f32 %v4363_v20, %v3724_v30  ;;  %v3711_v31 = vmul.f32 %v5895_v61, %v7852_v21  ;;  %v3948_v21 = vld [vmem:[#allocation23 + $0xa0] sm:$0xff] }
0x11b8   :  { %v5623_v58 = vpack.c.bf16 %v3949_v28, %v3948_v21 }
0x11b9   :  { %5067 = vmatmul.mubr.f32.gmra.mrb[100].mxu0 %v7883_v50  ;;  %v3725_v56 = vmul.f32 %v4362_v16, %v3711_v31 }
0x11ba   :  { %v5897_v41 = vpop.eup %5896  ;;  %5624 = vmatprep.subr.bf16.mxu1 %v5623_v58 }
0x11bb   :  { %v7887_v14 = vadd.f32 %v4363_v20, %v3725_v56  ;;  %v3712_v38 = vmul.f32 %v5897_v41, %v7858_v22  ;;  %5626 = vmatpush3.bf16.msra.mxu1 %v5623_v58  ;;  %v5627_v22 = vpack.c.bf16 %v3951_v13, %v3950_v39 }
0x11bd   :  { %5069 = vmatprep.mubr.f32.mxu0 %v7887_v14  ;;  %v3726_v36 = vmul.f32 %v4362_v16, %v3712_v38  ;;  %5628 = vmatprep.subr.bf16.mxu1 %v5627_v22  ;;  %v3958_v16 = vld [vmem:[#allocation23 + $0xf0] sm:$0xff] }
0x11be   :  { %v5643_v59 = vpack.c.bf16 %v3959_v55, %v3958_v16 }
0x11bf   :  { %v7891_v44 = vadd.f32 %v4363_v20, %v3726_v36  ;;  %5630 = vmatpush3.bf16.msra.mxu1 %v5627_v22 }
0x11c0   :  { %5632 = vmatprep.subr.bf16.mxu1 %v5631_v7 }
0x11c1   :  { %5070 = vmatmul.mubr.f32.gmra.mrb[102].mxu0 %v7891_v44 }
0x11c3   :  { %5634 = vmatpush3.bf16.msra.mxu1 %v5631_v7 }
0x11c4   :  { %5636 = vmatprep.subr.bf16.mxu1 %v5635_v24 }
0x11c7   :  { %5638 = vmatpush3.bf16.msra.mxu1 %v5635_v24 }
0x11c8   :  { %5640 = vmatprep.subr.bf16.mxu1 %v5639_v49 }
0x11cb   :  { %5642 = vmatpush3.bf16.msra.mxu1 %v5639_v49 }
0x11cc   :  { %5644 = vmatprep.subr.bf16.mxu1 %v5643_v59 }
0x11cf   :  { %5646 = vmatpush3.bf16.msra.mxu1 %v5643_v59 }
0x127c   :  { %v5062_v20 = vpop.f32.mrb[96].mxu0 }
0x127d   :  { %v3838_v53 = vadd.f32 %v5062_v20, %v4364_v47  ;;  %v3832_v8 = vpop.f32.mrb[97].mxu0 }
0x127e   :  { %v3833_v27 = vadd.f32 %v4364_v47, %v3832_v8 }
0x127f   :  { %v3880_v63 = vmul.f32 0.044715, %v3838_v53  ;;  %v3872_v24 = vmul.f32 0.5, %v3838_v53 }
0x1280   :  { %v3879_v18 = vmul.f32 0.044715, %v3833_v27  ;;  %v3871_v7 = vmul.f32 0.5, %v3833_v27 }
0x1281   :  { %v3888_v3 = vmul.f32 %v3880_v63, %v3838_v53 }
0x1282   :  { %v3887_v57 = vmul.f32 %v3879_v18, %v3833_v27 }
0x1283   :  { %v3896_v5 = vmul.f32 %v3888_v3, %v3838_v53 }
0x1284   :  { %v5065_v43 = vpop.f32.mrb[98].mxu0  ;;  %v3895_v4 = vmul.f32 %v3887_v57, %v3833_v27 }
0x1285   :  { %v3904_v42 = vadd.f32 %v3896_v5, %v3838_v53  ;;  %v3848_v9 = vadd.f32 %v5065_v43, %v4364_v47  ;;  %v3842_v40 = vpop.f32.mrb[99].mxu0 }
0x1286   :  { %v3843_v19 = vadd.f32 %v4364_v47, %v3842_v40  ;;  %v3903_v17 = vadd.f32 %v3895_v4, %v3833_v27 }
0x1287   :  { %v3912_v52 = vmul.f32 0.7978846, %v3904_v42  ;;  %v3882_v62 = vmul.f32 0.044715, %v3848_v9  ;;  %v3874_v42 = vmul.f32 0.5, %v3848_v9 }
0x1288   :  { %v3881_v48 = vmul.f32 0.044715, %v3843_v19  ;;  %v3911_v25 = vmul.f32 0.7978846, %v3903_v17  ;;  %v3873_v53 = vmul.f32 0.5, %v3843_v19 }
0x1289   :  { %5898 = vtanh.f32 %v3912_v52  ;;  %v3890_v33 = vmul.f32 %v3882_v62, %v3848_v9 }
0x128a   :  { %v3889_v29 = vmul.f32 %v3881_v48, %v3843_v19  ;;  %5900 = vtanh.f32 %v3911_v25 }
0x128b   :  { %v3898_v2 = vmul.f32 %v3890_v33, %v3848_v9 }
0x128c   :  { %v5068_v45 = vpop.f32.mrb[100].mxu0  ;;  %v3897_v23 = vmul.f32 %v3889_v29, %v3843_v19 }
0x128d   :  { %v3858_v60 = vadd.f32 %v5068_v45, %v4364_v47  ;;  %v3852_v30 = vpop.f32.mrb[101].mxu0  ;;  %v3906_v61 = vadd.f32 %v3898_v2, %v3848_v9 }
0x128e   :  { %v3853_v31 = vadd.f32 %v4364_v47, %v3852_v30  ;;  %v3905_v56 = vadd.f32 %v3897_v23, %v3843_v19 }
0x128f   :  { %v3884_v41 = vmul.f32 0.044715, %v3858_v60  ;;  %v3914_v38 = vmul.f32 0.7978846, %v3906_v61  ;;  %v3876_v23 = vmul.f32 0.5, %v3858_v60 }
0x1290   :  { %v3883_v36 = vmul.f32 0.044715, %v3853_v31  ;;  %v3913_v6 = vmul.f32 0.7978846, %v3905_v56  ;;  %v3875_v2 = vmul.f32 0.5, %v3853_v31 }
0x1291   :  { %v3892_v1 = vmul.f32 %v3884_v41, %v3858_v60  ;;  %5902 = vtanh.f32 %v3914_v38 }
0x1292   :  { %v3891_v12 = vmul.f32 %v3883_v36, %v3853_v31  ;;  %5904 = vtanh.f32 %v3913_v6 }
0x1293   :  { %v5899_v21 = vpop.eup %5898  ;;  %v3900_v28 = vmul.f32 %v3892_v1, %v3858_v60 }
0x1294   :  { %v5901_v58 = vpop.eup %5900  ;;  %v5071_v39 = vpop.f32.mrb[102].mxu0  ;;  %v3928_v13 = vadd.f32 1.0, %v5899_v21  ;;  %v3899_v22 = vmul.f32 %v3891_v12, %v3853_v31  ;;  %v4365_v12 = vld [vmem:[#allocation25 + $0x1] ss:$0 sm:$0xff] }
0x1295   :  { %v3868_v35 = vadd.f32 %v5071_v39, %v4364_v47  ;;  %v3862_v46 = vpop.f32.mrb[103].mxu0  ;;  %v3927_v0 = vadd.f32 1.0, %v5901_v58  ;;  %v3908_v37 = vadd.f32 %v3900_v28, %v3858_v60 }
0x1296   :  { %v3863_v15 = vadd.f32 %v4364_v47, %v3862_v46  ;;  %v3907_v26 = vadd.f32 %v3899_v22, %v3853_v31  ;;  %v3936_v20 = vmul.f32 %v3928_v13, %v3872_v24 }
0x1297   :  { %v3886_v49 = vmul.f32 0.044715, %v3868_v35  ;;  %v3935_v16 = vmul.f32 %v3927_v0, %v3871_v7  ;;  %v3916_v55 = vmul.f32 0.7978846, %v3908_v37  ;;  %v3878_v36 = vmul.f32 0.5, %v3868_v35 }
0x1298   :  { %v3885_v59 = vmul.f32 0.044715, %v3863_v15  ;;  %v3915_v8 = vmul.f32 0.7978846, %v3907_v26  ;;  %v3877_v41 = vmul.f32 0.5, %v3863_v15 }
0x1299   :  { %v3894_v63 = vmul.f32 %v3886_v49, %v3868_v35  ;;  %5104 = vmatprep.mubr.f32.mxu1 %v3935_v16  ;;  %5906 = vtanh.f32 %v3916_v55 }
0x129a   :  { %v3893_v18 = vmul.f32 %v3885_v59, %v3863_v15  ;;  %5105 = vmatmul.mubr.f32.vlgmr.msra.gmra.mrb[112].mxu1 %v3936_v20  ;;  %5908 = vtanh.f32 %v3915_v8 }
0x129b   :  { %v5903_v3 = vpop.eup %5902  ;;  %v3902_v57 = vmul.f32 %v3894_v63, %v3868_v35 }
0x129c   :  { %v5905_v27 = vpop.eup %5904  ;;  %v3930_v5 = vadd.f32 1.0, %v5903_v3  ;;  %v3901_v43 = vmul.f32 %v3893_v18, %v3863_v15 }
0x129d   :  { %v3929_v47 = vadd.f32 1.0, %v5905_v27  ;;  %v3910_v4 = vadd.f32 %v3902_v57, %v3868_v35 }
0x129e   :  { %v3909_v40 = vadd.f32 %v3901_v43, %v3863_v15  ;;  %v3938_v62 = vmul.f32 %v3930_v5, %v3874_v42 }
0x129f   :  { %v3937_v17 = vmul.f32 %v3929_v47, %v3873_v53  ;;  %v3918_v52 = vmul.f32 0.7978846, %v3910_v4 }
0x12a0   :  { %v3917_v48 = vmul.f32 0.7978846, %v3909_v40 }
0x12a1   :  { %5107 = vmatprep.mubr.f32.mxu1 %v3937_v17  ;;  %5910 = vtanh.f32 %v3918_v52 }
0x12a2   :  { %5108 = vmatmul.mubr.f32.gmra.mrb[114].mxu1 %v3938_v62  ;;  %5912 = vtanh.f32 %v3917_v48 }
0x12a3   :  { %v5907_v25 = vpop.eup %5906 }
0x12a4   :  { %v5909_v33 = vpop.eup %5908  ;;  %v3932_v29 = vadd.f32 1.0, %v5907_v25 }
0x12a5   :  { %v3931_v45 = vadd.f32 1.0, %v5909_v33 }
0x12a6   :  { %v3940_v19 = vmul.f32 %v3932_v29, %v3876_v23 }
0x12a7   :  { %v3939_v30 = vmul.f32 %v3931_v45, %v3875_v2 }
0x12a9   :  { %5110 = vmatprep.mubr.f32.mxu1 %v3939_v30 }
0x12aa   :  { %5111 = vmatmul.mubr.f32.gmra.mrb[116].mxu1 %v3940_v19 }
0x12ab   :  { %v5911_v9 = vpop.eup %5910 }
0x12ac   :  { %v5913_v61 = vpop.eup %5912  ;;  %v3934_v56 = vadd.f32 1.0, %v5911_v9 }
0x12ad   :  { %v3933_v38 = vadd.f32 1.0, %v5913_v61 }
0x12ae   :  { %v3942_v1 = vmul.f32 %v3934_v56, %v3878_v36 }
0x12af   :  { %v3941_v6 = vmul.f32 %v3933_v38, %v3877_v41 }
0x12b1   :  { %5113 = vmatprep.mubr.f32.mxu1 %v3941_v6 }
0x12b2   :  { %5114 = vmatmul.mubr.f32.gmra.mrb[118].mxu1 %v3942_v1 }
0x136d   :  { %v5106_v21 = vpop.f32.mrb[112].mxu1 }
0x136e   :  { %v4040_v28 = vadd.f32 %v5106_v21, %v4365_v12  ;;  %v4034_v31 = vpop.f32.mrb[113].mxu1 }
0x136f   :  { %v4035_v58 = vadd.f32 %v4365_v12, %v4034_v31 }
0x1370   :  { %v4074_v60 = vadd.f32 %v4040_v28, %v7867_v10  ;;  %v4209_v28 = vld [vmem:[#allocation7] sm:$0xff] }
0x1371   :  { %v4073_v39 = vadd.f32 %v4035_v58, %v7864_v32  ;;  %5132 = vmatprep.mubr.msk.f32.mxu0 %vm1018_vm1, %v4209_v28 }
0x1372   :  { %4087 = vadd.xlane.f32.xlu1 %v4074_v60 }
0x1373   :  { %4085 = vadd.xlane.f32.xlu0 %v4073_v39 }
0x1375   :  { %v5109_v13 = vpop.f32.mrb[114].mxu1 }
0x1376   :  { %v4050_v22 = vadd.f32 %v5109_v13, %v4365_v12  ;;  %v4044_v46 = vpop.f32.mrb[115].mxu1 }
0x1377   :  { %v4045_v7 = vadd.f32 %v4365_v12, %v4044_v46 }
0x1378   :  { %v4076_v35 = vadd.f32 %v4050_v22, %v7875_v34 }
0x1379   :  { %v4075_v0 = vadd.f32 %v4045_v7, %v7871_v11 }
0x137a   :  { %4091 = vadd.xlane.f32.xlu1 %v4076_v35 }
0x137b   :  { %4089 = vadd.xlane.f32.xlu0 %v4075_v0 }
0x137d   :  { %v5112_v37 = vpop.f32.mrb[116].mxu1 }
0x137e   :  { %v4060_v24 = vadd.f32 %v5112_v37, %v4365_v12  ;;  %v4054_v15 = vpop.f32.mrb[117].mxu1 }
0x137f   :  { %v4055_v26 = vadd.f32 %v4365_v12, %v4054_v15  ;;  %v4366_v15 = vld [vmem:[#allocation26 + $0x1] ss:$0 sm:$0xff] }
0x1380   :  { %v4078_v10 = vadd.f32 %v4060_v24, %v7883_v50 }
0x1381   :  { %v4077_v32 = vadd.f32 %v4055_v26, %v7879_v54 }
0x1382   :  { %4095 = vadd.xlane.f32.xlu1 %v4078_v10 }
0x1383   :  { %4093 = vadd.xlane.f32.xlu0 %v4077_v32 }
0x1385   :  { %v5115_v49 = vpop.f32.mrb[118].mxu1 }
0x1386   :  { %v4070_v16 = vadd.f32 %v5115_v49, %v4365_v12  ;;  %v4064_v55 = vpop.f32.mrb[119].mxu1 }
0x1387   :  { %v4065_v59 = vadd.f32 %v4365_v12, %v4064_v55  ;;  %v4367_v55 = vld [vmem:[#allocation28 + $0x1] ss:$0 sm:$0xff] }
0x1388   :  { %v4080_v34 = vadd.f32 %v4070_v16, %v7891_v44 }
0x1389   :  { %v4079_v11 = vadd.f32 %v4065_v59, %v7887_v14 }
0x138a   :  { %4099 = vadd.xlane.f32.xlu1 %v4080_v34 }
0x138b   :  { %4097 = vadd.xlane.f32.xlu0 %v4079_v11 }
0x13ff   :  { %v4088_v20 = vpop.xlane.xlu1 %4087 }
0x1400   :  { %v4102_v8 = vmul.f32 0.03125, %v4088_v20  ;;  %v4086_v63 = vpop.xlane.xlu0 %4085 }
0x1401   :  { %v4101_v18 = vmul.f32 0.03125, %v4086_v63 }
0x1402   :  { %v4110_v3 = vsub.f32 %v4074_v60, %v4102_v8 }
0x1403   :  { %v4109_v50 = vsub.f32 %v4073_v39, %v4101_v18 }
0x1404   :  { %v7903_v54 = vmul.f32 %v6792_v51, %v4110_v3 }
0x1405   :  { %v7906_v57 = vmul.f32 %v6792_v51, %v4109_v50 }
0x1406   :  { %v4126_v27 = vmul.f32 %v7903_v54, %v7903_v54 }
0x1407   :  { %v4092_v44 = vpop.xlane.xlu1 %4091  ;;  %v4125_v14 = vmul.f32 %v7906_v57, %v7906_v57 }
0x1408   :  { %v4104_v5 = vmul.f32 0.03125, %v4092_v44  ;;  %4135 = vadd.xlane.f32.xlu1 %v4126_v27  ;;  %v4090_v43 = vpop.xlane.xlu0 %4089 }
0x1409   :  { %v4103_v53 = vmul.f32 0.03125, %v4090_v43  ;;  %4133 = vadd.xlane.f32.xlu0 %v4125_v14 }
0x140a   :  { %v4112_v47 = vsub.f32 %v4076_v35, %v4104_v5 }
0x140b   :  { %v4111_v4 = vsub.f32 %v4075_v0, %v4103_v53 }
0x140c   :  { %v7913_v42 = vmul.f32 %v6792_v51, %v4112_v47 }
0x140d   :  { %v7916_v40 = vmul.f32 %v6792_v51, %v4111_v4 }
0x140e   :  { %v4128_v17 = vmul.f32 %v7913_v42, %v7913_v42 }
0x140f   :  { %v4096_v52 = vpop.xlane.xlu1 %4095  ;;  %v4127_v62 = vmul.f32 %v7916_v40, %v7916_v40 }
0x1410   :  { %v4106_v48 = vmul.f32 0.03125, %v4096_v52  ;;  %4139 = vadd.xlane.f32.xlu1 %v4128_v17  ;;  %v4094_v25 = vpop.xlane.xlu0 %4093 }
0x1411   :  { %v4105_v33 = vmul.f32 0.03125, %v4094_v25  ;;  %4137 = vadd.xlane.f32.xlu0 %v4127_v62 }
0x1412   :  { %v4114_v29 = vsub.f32 %v4078_v10, %v4106_v48 }
0x1413   :  { %v4113_v2 = vsub.f32 %v4077_v32, %v4105_v33 }
0x1414   :  { %v7923_v45 = vmul.f32 %v6792_v51, %v4114_v29 }
0x1415   :  { %v7926_v23 = vmul.f32 %v6792_v51, %v4113_v2 }
0x1416   :  { %v4130_v30 = vmul.f32 %v7923_v45, %v7923_v45 }
0x1417   :  { %v4100_v19 = vpop.xlane.xlu1 %4099  ;;  %v4129_v9 = vmul.f32 %v7926_v23, %v7926_v23 }
0x1418   :  { %v4108_v61 = vmul.f32 0.03125, %v4100_v19  ;;  %4143 = vadd.xlane.f32.xlu1 %v4130_v30  ;;  %v4098_v56 = vpop.xlane.xlu0 %4097 }
0x1419   :  { %v4107_v41 = vmul.f32 0.03125, %v4098_v56  ;;  %4141 = vadd.xlane.f32.xlu0 %v4129_v9 }
0x141a   :  { %v4116_v38 = vsub.f32 %v4080_v34, %v4108_v61 }
0x141b   :  { %v4115_v36 = vsub.f32 %v4079_v11, %v4107_v41 }
0x141c   :  { %v7933_v6 = vmul.f32 %v6792_v51, %v4116_v38 }
0x141d   :  { %v7936_v1 = vmul.f32 %v6792_v51, %v4115_v36 }
0x141e   :  { %v4132_v12 = vmul.f32 %v7933_v6, %v7933_v6 }
0x141f   :  { %v4131_v21 = vmul.f32 %v7936_v1, %v7936_v1 }
0x1420   :  { %4147 = vadd.xlane.f32.xlu1 %v4132_v12 }
0x1421   :  { %4145 = vadd.xlane.f32.xlu0 %v4131_v21 }
0x1495   :  { %v4136_v31 = vpop.xlane.xlu1 %4135 }
0x1496   :  { %v4150_v58 = vmul.f32 0.03125, %v4136_v31  ;;  %v4134_v60 = vpop.xlane.xlu0 %4133 }
0x1497   :  { %v4149_v39 = vmul.f32 0.03125, %v4134_v60 }
0x1498   :  { %v4158_v13 = vadd.f32 1e-12, %v4150_v58 }
0x1499   :  { %v4157_v22 = vadd.f32 1e-12, %v4149_v39 }
0x149a   :  { %5914 = vrsqrt.f32 %v4158_v13 }
0x149b   :  { %5916 = vrsqrt.f32 %v4157_v22 }
0x149d   :  { %v4140_v51 = vpop.xlane.xlu1 %4139 }
0x149e   :  { %v4152_v46 = vmul.f32 0.03125, %v4140_v51  ;;  %v4138_v7 = vpop.xlane.xlu0 %4137 }
0x149f   :  { %v4151_v35 = vmul.f32 0.03125, %v4138_v7 }
0x14a0   :  { %v4160_v0 = vadd.f32 1e-12, %v4152_v46 }
0x14a1   :  { %v4159_v37 = vadd.f32 1e-12, %v4151_v35 }
0x14a2   :  { %5918 = vrsqrt.f32 %v4160_v0 }
0x14a3   :  { %5920 = vrsqrt.f32 %v4159_v37 }
0x14a4   :  { %v5915_v24 = vpop.eup %5914 }
0x14a5   :  { %v5917_v26 = vpop.eup %5916  ;;  %v4144_v10 = vpop.xlane.xlu1 %4143  ;;  %v4174_v32 = vmul.f32 %v5915_v24, %v7903_v54 }
0x14a6   :  { %v4154_v49 = vmul.f32 0.03125, %v4144_v10  ;;  %v4142_v16 = vpop.xlane.xlu0 %4141  ;;  %v4173_v59 = vmul.f32 %v5917_v26, %v7906_v57 }
0x14a7   :  { %v4153_v34 = vmul.f32 0.03125, %v4142_v16  ;;  %v4188_v11 = vmul.f32 %v4366_v15, %v4174_v32 }
0x14a8   :  { %v4162_v20 = vadd.f32 1e-12, %v4154_v49  ;;  %v4187_v8 = vmul.f32 %v4366_v15, %v4173_v59 }
0x14a9   :  { %v4161_v63 = vadd.f32 1e-12, %v4153_v34  ;;  %v4202_v18 = vadd.f32 %v4367_v55, %v4188_v11 }
0x14aa   :  { %5922 = vrsqrt.f32 %v4162_v20  ;;  %v4201_v3 = vadd.f32 %v4367_v55, %v4187_v8 }
0x14ab   :  { %5924 = vrsqrt.f32 %v4161_v63 }
0x14ac   :  { %v5919_v50 = vpop.eup %5918  ;;  %v5647_v27 = vpack.c.bf16 %v4202_v18, %v4201_v3 }
0x14ad   :  { %v5921_v44 = vpop.eup %5920  ;;  %v4148_v14 = vpop.xlane.xlu1 %4147  ;;  %v4176_v54 = vmul.f32 %v5919_v50, %v7913_v42 }
0x14ae   :  { %v4156_v5 = vmul.f32 0.03125, %v4148_v14  ;;  %5648 = vmatprep.subr.bf16.mxu0 %v5647_v27  ;;  %v4146_v43 = vpop.xlane.xlu0 %4145  ;;  %v4175_v57 = vmul.f32 %v5921_v44, %v7916_v40 }
0x14af   :  { %v4155_v53 = vmul.f32 0.03125, %v4146_v43  ;;  %5650 = vmatpush3.bf16.msra.mxu0 %v5647_v27  ;;  %v4190_v47 = vmul.f32 %v4366_v15, %v4176_v54 }
0x14b0   :  { %v4164_v4 = vadd.f32 1e-12, %v4156_v5  ;;  %v4189_v17 = vmul.f32 %v4366_v15, %v4175_v57 }
0x14b1   :  { %v4163_v52 = vadd.f32 1e-12, %v4155_v53  ;;  %v4204_v62 = vadd.f32 %v4367_v55, %v4190_v47 }
0x14b2   :  { %5926 = vrsqrt.f32 %v4164_v4  ;;  %v4203_v48 = vadd.f32 %v4367_v55, %v4189_v17 }
0x14b3   :  { %5928 = vrsqrt.f32 %v4163_v52 }
0x14b4   :  { %v5923_v25 = vpop.eup %5922  ;;  %v5651_v33 = vpack.c.bf16 %v4204_v62, %v4203_v48 }
0x14b5   :  { %v5925_v29 = vpop.eup %5924  ;;  %v4178_v42 = vmul.f32 %v5923_v25, %v7923_v45 }
0x14b6   :  { %5652 = vmatprep.subr.bf16.mxu0 %v5651_v33  ;;  %v4177_v2 = vmul.f32 %v5925_v29, %v7926_v23  ;;  %v4210_v23 = vld [vmem:[#allocation7 + $0x8] sm:$0xff] }
0x14b7   :  { %5654 = vmatpush3.bf16.msra.mxu0 %v5651_v33  ;;  %v4192_v40 = vmul.f32 %v4366_v15, %v4178_v42 }
0x14b8   :  { %v4191_v30 = vmul.f32 %v4366_v15, %v4177_v2 }
0x14b9   :  { %v4206_v19 = vadd.f32 %v4367_v55, %v4192_v40 }
0x14ba   :  { %v4205_v9 = vadd.f32 %v4367_v55, %v4191_v30 }
0x14bc   :  { %v5927_v61 = vpop.eup %5926  ;;  %v5655_v56 = vpack.c.bf16 %v4206_v19, %v4205_v9 }
0x14bd   :  { %v5929_v41 = vpop.eup %5928  ;;  %v4180_v38 = vmul.f32 %v5927_v61, %v7933_v6 }
0x14be   :  { %5656 = vmatprep.subr.bf16.mxu0 %v5655_v56  ;;  %v4179_v36 = vmul.f32 %v5929_v41, %v7936_v1 }
0x14bf   :  { %5658 = vmatpush3.bf16.msra.mxu0 %v5655_v56  ;;  %v4194_v12 = vmul.f32 %v4366_v15, %v4180_v38 }
0x14c0   :  { %v4193_v21 = vmul.f32 %v4366_v15, %v4179_v36 }
0x14c1   :  { %v4208_v45 = vadd.f32 %v4367_v55, %v4194_v12 }
0x14c2   :  { %v4207_v28 = vadd.f32 %v4367_v55, %v4193_v21 }
0x14c4   :  { %v5659_v31 = vpack.c.bf16 %v4208_v45, %v4207_v28 }
0x14c6   :  { %5660 = vmatprep.subr.bf16.mxu0 %v5659_v31 }
0x14c7   :  { %5662 = vmatpush3.bf16.msra.mxu0 %v5659_v31 }
0x14ca   :  { %5133 = vmatmul.mubr.msk.f32.vlgmr.msra.gmra.mrb[104].mxu0 %vm1018_vm1, %v4210_v23 }
0x159d   :  { %v5134_v58 = vpop.f32.mrb[104].mxu0 }
0x159e   :  { %4293 = vst [vmem:[#allocation29 + $0x8] sm:$0xff] %v5134_v58  ;;  %v4283_v6 = vpop.f32.mrb[105].mxu0 }
0x159f   :  { %4292 = vst [vmem:[#allocation29] sm:$0xff] %v4283_v6 }
0x15a0   :  { %6323 = shalt.err (!%p6320_p0)
}
0x15a1   :  { %s6324_s27 = scalar_lea.hbm %s7984_s17, 256 }
0x15a2   :  { %p6325_p1 = scmp.ne.s32.totalorder %s7984_s17, %s6324_s27  ;;  %p6328_p2 = scmp.lt.u32.totalorder %s6324_s27, %s7984_s17 }
0x15a4   :  { %p6330_p3 = pnand %p6328_p2, %p6325_p1 }
0x15a6   :  { %6333 = shalt.err (!%p6330_p3)
}
0x15a7   :  { %4305 = dma.vmem_to_hbm [thread:$0]  %s4300_s29, 256, %s7984_s17, [#allocation4], %s7992_s5, %s7992_s5, %s6357_s23  }
0x15a8   :  { %6352 = dma.done.wait [#allocation4], 256  }
0x15a9   :  { %6353 = vsyncadd [#allocation4], 4294967040 }
0x15aa   :  { %4309 = vsyncpa [#allocation3], 1 }
0x15ab   :  { %4310 = vsyncpa [#allocation6], 1 }
0x15ac   :  { %4311 = vsyncpa [#allocation9], 1 }
0x15ad   :  { %4312 = vsyncpa [#allocation12], 1 }
0x15ae   :  { %4313 = vsyncpa [#allocation15], 1 }
0x15af   :  { %4314 = vsyncpa [#allocation18], 1 }
0x15b0   :  { %4315 = vsyncpa [#allocation21], 1 }
0x15b1   :  { %4316 = vsyncpa [#allocation24], 1 }
0x15b2   :  { %4317 = vsyncpa [#allocation27], 1 }
0x15b3   :  { %4318 = vsyncpa [#allocation4], 1 }

</bundles_post_ra>
